<compile_context>
chip_gen: v6e
topology: v6e:2x2x1
jax: 0.10.0
libtpu: 0.0.40
codegen_flags: <defaults>
</compile_context>

<pallas_src>
import functools

import jax
import jax.numpy as jnp
from jax.experimental import pallas as pl
from jax.experimental.pallas import tpu as pltpu

BN_EPS = 1e-5


# ----------------------------- Pallas kernel ------------------------------- #

def _c3_kernel(n, H, W, c_, P, x_ref, ml_ref, mr_ref, *refs):
    """Fully fused C3 forward for one image (one grid step).

    refs layout (after x, mask_l, mask_r):
      cv1: w, scale, shift                                   (3)
      cv2: w, scale, shift                                   (3)
      n x Bottleneck: w1, s1, b1, w2_taps(9c_,c_), s2, b2    (6 each)
      cv3: w_m (c_, c2), w_y2 (c_, c2), scale, shift         (4)
      out_ref                                                (1)
      pad_ref (VMEM scratch, (HW + 2P, c_))                  (1)
    """
    HW = H * W
    w1_ref, sc1_ref, sh1_ref, w2_ref, sc2_ref, sh2_ref = refs[0:6]
    bots = [refs[6 + 6 * i: 12 + 6 * i] for i in range(n)]
    w3a_ref, w3b_ref, sc3_ref, sh3_ref = refs[6 + 6 * n: 10 + 6 * n]
    out_ref = refs[10 + 6 * n]
    pad_ref = refs[11 + 6 * n]

    cdt = pad_ref.dtype          # matmul-input / staging dtype (f32 or bf16)

    # Zero the scratch: its pad rows provide the 3x3 conv's h-boundary zeros.
    pad_ref[...] = jnp.zeros_like(pad_ref)

    mask_l = ml_ref[...]         # 1.0 where (w - 1) is in-bounds
    mask_r = mr_ref[...]         # 1.0 where (w + 1) is in-bounds

    x = x_ref[0]                 # (HW, C1), already in cdt

    def conv_bn_silu(lhs, w_ref, sc_ref, sh_ref):
        y = jnp.dot(lhs.astype(cdt), w_ref[...],
                    preferred_element_type=jnp.float32)
        y = y * sc_ref[...] + sh_ref[...]
        return y * jax.nn.sigmoid(y)          # f32 epilogue

    # cv1(x), cv2(x): 1x1 conv + folded BN + SiLU, sharing the single read of x.
    y1 = conv_bn_silu(x, w1_ref, sc1_ref, sh1_ref)
    y2 = conv_bn_silu(x, w2_ref, sc2_ref, sh2_ref)

    # Bottleneck chain (statically unrolled).
    m = y1
    for bw1_ref, bsc1_ref, bsh1_ref, bw2_ref, bsc2_ref, bsh2_ref in bots:
        t = conv_bn_silu(m, bw1_ref, bsc1_ref, bsh1_ref)       # 1x1
        pad_ref[P:P + HW, :] = t.astype(cdt)                   # stage for 3x3

        acc = jnp.zeros((HW, c_), jnp.float32)
        for kh in range(3):
            for kw in range(3):
                dh, dw = kh - 1, kw - 1
                shift = dh * W + dw
                src = pad_ref[P + shift:P + shift + HW, :]     # static slice
                if dw == -1:
                    src = src * mask_l
                elif dw == 1:
                    src = src * mask_r
                tap = kh * 3 + kw
                acc = acc + jnp.dot(src, bw2_ref[tap * c_:(tap + 1) * c_, :],
                                    preferred_element_type=jnp.float32)
        yb = acc * bsc2_ref[...] + bsh2_ref[...]
        m = yb * jax.nn.sigmoid(yb) + m                        # shortcut add

    # cv3 on the (virtual) concat [m, y2]: weight split along K, two dots.
    y = (jnp.dot(m.astype(cdt), w3a_ref[...],
                 preferred_element_type=jnp.float32)
         + jnp.dot(y2.astype(cdt), w3b_ref[...],
                   preferred_element_type=jnp.float32))
    y = y * sc3_ref[...] + sh3_ref[...]
    out_ref[0] = (y * jax.nn.sigmoid(y)).astype(out_ref.dtype)


# ------------------------------- C3 forward --------------------------------- #

def c3_forward(x_nchw, params, compute_dtype=jnp.float32):
    """Fused C3 forward. x_nchw: (N, C1, H, W) f32 -> (N, C2, H, W) f32."""
    x = jnp.transpose(x_nchw, (0, 2, 3, 1)).astype(jnp.float32)   # NCHW -> NHWC
    N, H, W, C1 = x.shape
    HW = H * W
    c_ = params["cv1"]["w"].shape[1]
    c2 = params["cv3"]["w"].shape[1]
    n = len(params["m"])
    P = ((W + 1 + 7) // 8) * 8       # zero-pad rows (>= W+1, sublane aligned)

    x3 = x.reshape(N, HW, C1).astype(compute_dtype)

    # w-boundary masks for the in-kernel 3x3 conv (precomputed 0/1 tables).
    w_idx = jnp.arange(HW, dtype=jnp.int32) % W
    mask_l = jnp.broadcast_to((w_idx >= 1)[:, None], (HW, c_)).astype(compute_dtype)
    mask_r = jnp.broadcast_to((w_idx <= W - 2)[:, None], (HW, c_)).astype(compute_dtype)

    args = [x3, mask_l, mask_r]
    in_specs = [
        pl.BlockSpec((1, HW, C1), lambda i: (i, 0, 0)),
        pl.BlockSpec((HW, c_), lambda i: (0, 0)),
        pl.BlockSpec((HW, c_), lambda i: (0, 0)),
    ]

    def add_full(a):                     # whole-array (grid-invariant) input
        args.append(a)
        nd = a.ndim
        in_specs.append(pl.BlockSpec(a.shape, lambda i, nd=nd: (0,) * nd))

    def affine(p):                       # folded-BN affine, kept in f32
        return (p["s"].reshape(1, -1).astype(jnp.float32),
                p["b"].reshape(1, -1).astype(jnp.float32))

    for p in (params["cv1"], params["cv2"]):
        s, b = affine(p)
        add_full(p["w"].astype(compute_dtype)); add_full(s); add_full(b)
    for bp in params["m"]:
        s1, b1 = affine(bp["cv1"])
        s2, b2 = affine(bp["cv2"])
        add_full(bp["cv1"]["w"].astype(compute_dtype)); add_full(s1); add_full(b1)
        add_full(bp["cv2"]["w"].astype(compute_dtype)); add_full(s2); add_full(b2)
    s3, b3 = affine(params["cv3"])
    w3 = params["cv3"]["w"].astype(compute_dtype)
    add_full(w3[:c_, :]); add_full(w3[c_:, :]); add_full(s3); add_full(b3)

    out = pl.pallas_call(
        functools.partial(_c3_kernel, n, H, W, c_, P),
        out_shape=jax.ShapeDtypeStruct((N, HW, c2), jnp.float32),
        grid=(N,),
        in_specs=in_specs,
        out_specs=pl.BlockSpec((1, HW, c2), lambda i: (i, 0, 0)),
        scratch_shapes=[pltpu.VMEM((HW + 2 * P, c_), compute_dtype)],
        compiler_params=pltpu.CompilerParams(
            dimension_semantics=("parallel",)),
    )(*args)

    out = out.reshape(N, H, W, c2)
    return jnp.transpose(out, (0, 3, 1, 2))                      # back to NCHW


# --------------------------- Parameter synthesis ---------------------------- #

def _fold_bn(key, cout):
    k1, k2, k3, k4 = jax.random.split(key, 4)
    gamma = jax.random.uniform(k1, (cout,), jnp.float32, 0.5, 1.5)
    beta = jax.random.normal(k2, (cout,), jnp.float32) * 0.1
    mean = jax.random.normal(k3, (cout,), jnp.float32) * 0.1
    var = jax.random.uniform(k4, (cout,), jnp.float32, 0.5, 1.5)
    scale = gamma / jnp.sqrt(var + BN_EPS)
    shift = beta - mean * scale
    return scale, shift


def make_conv1x1(key, cin, cout):
    kw, kb = jax.random.split(key)
    w = jax.random.normal(kw, (cin, cout), jnp.float32) * 0.1
    s, b = _fold_bn(kb, cout)
    return {"w": w, "s": s, "b": b}


def make_conv3x3(key, cin, cout):
    kw, kb = jax.random.split(key)
    w33 = jax.random.normal(kw, (3, 3, cin, cout), jnp.float32) * 0.1
    s, b = _fold_bn(kb, cout)
    # (3,3,Cin,Cout) -> (9*Cin, Cout); row block `tap*Cin:(tap+1)*Cin` == w33[kh,kw]
    return {"w33": w33, "w": w33.reshape(9 * cin, cout), "s": s, "b": b}


def init_c3_params(key, c1, c2, n=1, e=0.5):
    c_ = int(c2 * e)
    keys = jax.random.split(key, 3 + 2 * n)
    params = {
        "cv1": make_conv1x1(keys[0], c1, c_),
        "cv2": make_conv1x1(keys[1], c1, c_),
        "cv3": make_conv1x1(keys[2], 2 * c_, c2),
        "m": [],
    }
    for i in range(n):
        # Bottleneck(c_, c_, e=1.0): cv1 1x1 (c_->c_), cv2 3x3 (c_->c_), shortcut
        params["m"].append({
            "cv1": make_conv1x1(keys[3 + 2 * i], c_, c_),
            "cv2": make_conv3x3(keys[4 + 2 * i], c_, c_),
        })
    return params


# -------------------------- Pure-JAX reference ------------------------------ #

def c3_reference(x_nchw, params):
    x = jnp.transpose(x_nchw, (0, 2, 3, 1)).astype(jnp.float32)

    def pw(t, p):
        y = jnp.einsum("nhwc,cd->nhwd", t, p["w"]) * p["s"] + p["b"]
        return y * jax.nn.sigmoid(y)

    y1 = pw(x, params["cv1"])
    y2 = pw(x, params["cv2"])
    m = y1
    for bp in params["m"]:
        b1 = pw(m, bp["cv1"])
        N, H, W, C = b1.shape
        xp = jnp.pad(b1, ((0, 0), (1, 1), (1, 1), (0, 0)))
        y = jnp.zeros(b1.shape[:3] + (bp["cv2"]["w33"].shape[-1],), jnp.float32)
        for kh in range(3):
            for kw in range(3):
                y = y + jnp.einsum("nhwc,cd->nhwd",
                                   xp[:, kh:kh + H, kw:kw + W, :],
                                   bp["cv2"]["w33"][kh, kw])
        y = y * bp["cv2"]["s"] + bp["cv2"]["b"]
        m = y * jax.nn.sigmoid(y) + m
    cat = jnp.concatenate([m, y2], axis=-1)
    out = pw(cat, params["cv3"])
    return jnp.transpose(out, (0, 3, 1, 2))


# ---------------------------------- main ------------------------------------ #

if __name__ == "__main__":
    key = jax.random.PRNGKey(0)
    kx, kp = jax.random.split(key)

    N, c1, c2, H, W = 2, 16, 16, 16, 16   # small shapes; c_ = int(c2*0.5) = 8
    x = jax.random.normal(kx, (N, c1, H, W), jnp.float32)
    params = init_c3_params(kp, c1, c2, n=1)

    ref = c3_reference(x, params)

    # f32 path (default): tight tolerance.
    fwd = jax.jit(functools.partial(c3_forward, params=params))
    out = jax.block_until_ready(fwd(x))
    assert out.shape == (N, c2, H, W), out.shape
    assert jnp.allclose(out, ref, rtol=1e-4, atol=1e-4), \
        float(jnp.max(jnp.abs(out - ref)))

    # bf16 matmul-input path (v6e/v7x advice): f32 accumulation + epilogue.
    fwd_bf16 = jax.jit(functools.partial(c3_forward, params=params,
                                         compute_dtype=jnp.bfloat16))
    out_bf16 = jax.block_until_ready(fwd_bf16(x))
    assert out_bf16.shape == (N, c2, H, W), out_bf16.shape
    assert jnp.allclose(out_bf16, ref, rtol=5e-2, atol=5e-2), \
        float(jnp.max(jnp.abs(out_bf16 - ref)))

    print("KERNEL_OK")
</pallas_src>

<mosaic_0001>
module attributes {stable_mosaic.version = 11 : i64} {
  func.func @_c3_kernel(%arg0: i32, %arg1: memref<1x256x16xf32, #tpu.memory_space<vmem>>, %arg2: memref<256x8xf32, #tpu.memory_space<vmem>>, %arg3: memref<256x8xf32, #tpu.memory_space<vmem>>, %arg4: memref<16x8xf32, #tpu.memory_space<vmem>>, %arg5: memref<1x8xf32, #tpu.memory_space<vmem>>, %arg6: memref<1x8xf32, #tpu.memory_space<vmem>>, %arg7: memref<16x8xf32, #tpu.memory_space<vmem>>, %arg8: memref<1x8xf32, #tpu.memory_space<vmem>>, %arg9: memref<1x8xf32, #tpu.memory_space<vmem>>, %arg10: memref<8x8xf32, #tpu.memory_space<vmem>>, %arg11: memref<1x8xf32, #tpu.memory_space<vmem>>, %arg12: memref<1x8xf32, #tpu.memory_space<vmem>>, %arg13: memref<72x8xf32, #tpu.memory_space<vmem>>, %arg14: memref<1x8xf32, #tpu.memory_space<vmem>>, %arg15: memref<1x8xf32, #tpu.memory_space<vmem>>, %arg16: memref<8x16xf32, #tpu.memory_space<vmem>>, %arg17: memref<8x16xf32, #tpu.memory_space<vmem>>, %arg18: memref<1x16xf32, #tpu.memory_space<vmem>>, %arg19: memref<1x16xf32, #tpu.memory_space<vmem>>, %arg20: memref<1x256x16xf32, #tpu.memory_space<vmem>>, %arg21: memref<304x8xf32, #tpu.memory_space<vmem>>) attributes {dimension_semantics = [#tpu.dimension_semantics<parallel>], iteration_bounds = array<i64: 2>, scalar_prefetch = 0 : i64, scratch_operands = 1 : i64, tpu.core_type = #tpu.core_type<tc>, window_params = [{transform_indices = @transform_0, window_bounds = array<i64: 1, 256, 16>}, {pipeline_mode = #tpu.pipeline_mode<synchronous>, transform_indices = @transform_1, window_bounds = array<i64: 256, 8>}, {pipeline_mode = #tpu.pipeline_mode<synchronous>, transform_indices = @transform_2, window_bounds = array<i64: 256, 8>}, {pipeline_mode = #tpu.pipeline_mode<synchronous>, transform_indices = @transform_3, window_bounds = array<i64: 16, 8>}, {pipeline_mode = #tpu.pipeline_mode<synchronous>, transform_indices = @transform_4, window_bounds = array<i64: 1, 8>}, {pipeline_mode = #tpu.pipeline_mode<synchronous>, transform_indices = @transform_5, window_bounds = array<i64: 1, 8>}, {pipeline_mode = #tpu.pipeline_mode<synchronous>, transform_indices = @transform_6, window_bounds = array<i64: 16, 8>}, {pipeline_mode = #tpu.pipeline_mode<synchronous>, transform_indices = @transform_7, window_bounds = array<i64: 1, 8>}, {pipeline_mode = #tpu.pipeline_mode<synchronous>, transform_indices = @transform_8, window_bounds = array<i64: 1, 8>}, {pipeline_mode = #tpu.pipeline_mode<synchronous>, transform_indices = @transform_9, window_bounds = array<i64: 8, 8>}, {pipeline_mode = #tpu.pipeline_mode<synchronous>, transform_indices = @transform_10, window_bounds = array<i64: 1, 8>}, {pipeline_mode = #tpu.pipeline_mode<synchronous>, transform_indices = @transform_11, window_bounds = array<i64: 1, 8>}, {pipeline_mode = #tpu.pipeline_mode<synchronous>, transform_indices = @transform_12, window_bounds = array<i64: 72, 8>}, {pipeline_mode = #tpu.pipeline_mode<synchronous>, transform_indices = @transform_13, window_bounds = array<i64: 1, 8>}, {pipeline_mode = #tpu.pipeline_mode<synchronous>, transform_indices = @transform_14, window_bounds = array<i64: 1, 8>}, {pipeline_mode = #tpu.pipeline_mode<synchronous>, transform_indices = @transform_15, window_bounds = array<i64: 8, 16>}, {pipeline_mode = #tpu.pipeline_mode<synchronous>, transform_indices = @transform_16, window_bounds = array<i64: 8, 16>}, {pipeline_mode = #tpu.pipeline_mode<synchronous>, transform_indices = @transform_17, window_bounds = array<i64: 1, 16>}, {pipeline_mode = #tpu.pipeline_mode<synchronous>, transform_indices = @transform_18, window_bounds = array<i64: 1, 16>}, {transform_indices = @transform_19, window_bounds = array<i64: 1, 256, 16>}]} {
    %cst = arith.constant 0.000000e+00 : f32
    %0 = vector.broadcast %cst : f32 to vector<304x8xf32>
    %c0 = arith.constant 0 : index
    %c0_0 = arith.constant 0 : index
    %1 = vector.load %arg21[%c0, %c0_0] : memref<304x8xf32, #tpu.memory_space<vmem>>, vector<304x8xf32>
    tpu.vector_store %arg21[%c0, %c0_0], %0 {strides = array<i32>} : memref<304x8xf32, #tpu.memory_space<vmem>>, vector<304x8xf32>,
    %c0_1 = arith.constant 0 : index
    %c0_2 = arith.constant 0 : index
    %2 = vector.load %arg2[%c0_1, %c0_2] : memref<256x8xf32, #tpu.memory_space<vmem>>, vector<256x8xf32>
    %c0_3 = arith.constant 0 : index
    %c0_4 = arith.constant 0 : index
    %3 = vector.load %arg3[%c0_3, %c0_4] : memref<256x8xf32, #tpu.memory_space<vmem>>, vector<256x8xf32>
    %c0_5 = arith.constant 0 : index
    %c0_6 = arith.constant 0 : index
    %c0_7 = arith.constant 0 : index
    %4 = vector.load %arg1[%c0_5, %c0_6, %c0_7] : memref<1x256x16xf32, #tpu.memory_space<vmem>>, vector<1x256x16xf32>
    %5 = vector.shape_cast %4 : vector<1x256x16xf32> to vector<256x16xf32>
    %c0_8 = arith.constant 0 : index
    %c0_9 = arith.constant 0 : index
    %6 = vector.load %arg4[%c0_8, %c0_9] : memref<16x8xf32, #tpu.memory_space<vmem>>, vector<16x8xf32>
    %cst_10 = arith.constant dense<0.000000e+00> : vector<256x8xf32>
    %7 = tpu.matmul %5, %6, %cst_10 {dimension_numbers = #tpu.dot_dimension_numbers<[1], [0], [0], [1], [0, 0, 1, 1], [], []>} : vector<256x16xf32>, vector<16x8xf32>, vector<256x8xf32> -> vector<256x8xf32>
    %c0_11 = arith.constant 0 : index
    %c0_12 = arith.constant 0 : index
    %8 = vector.load %arg5[%c0_11, %c0_12] : memref<1x8xf32, #tpu.memory_space<vmem>>, vector<1x8xf32>
    %9 = vector.broadcast %8 : vector<1x8xf32> to vector<256x8xf32>
    %10 = arith.mulf %7, %9 : vector<256x8xf32>
    %c0_13 = arith.constant 0 : index
    %c0_14 = arith.constant 0 : index
    %11 = vector.load %arg6[%c0_13, %c0_14] : memref<1x8xf32, #tpu.memory_space<vmem>>, vector<1x8xf32>
    %12 = vector.broadcast %11 : vector<1x8xf32> to vector<256x8xf32>
    %13 = arith.addf %10, %12 : vector<256x8xf32>
    %14 = arith.negf %13 : vector<256x8xf32>
    %15 = math.exp %14 : vector<256x8xf32>
    %cst_15 = arith.constant 1.000000e+00 : f32
    %16 = vector.broadcast %cst_15 : f32 to vector<256x8xf32>
    %17 = arith.addf %16, %15 : vector<256x8xf32>
    %18 = arith.divf %16, %17 : vector<256x8xf32>
    %19 = arith.mulf %13, %18 : vector<256x8xf32>
    %c0_16 = arith.constant 0 : index
    %c0_17 = arith.constant 0 : index
    %20 = vector.load %arg7[%c0_16, %c0_17] : memref<16x8xf32, #tpu.memory_space<vmem>>, vector<16x8xf32>
    %cst_18 = arith.constant dense<0.000000e+00> : vector<256x8xf32>
    %21 = tpu.matmul %5, %20, %cst_18 {dimension_numbers = #tpu.dot_dimension_numbers<[1], [0], [0], [1], [0, 0, 1, 1], [], []>} : vector<256x16xf32>, vector<16x8xf32>, vector<256x8xf32> -> vector<256x8xf32>
    %c0_19 = arith.constant 0 : index
    %c0_20 = arith.constant 0 : index
    %22 = vector.load %arg8[%c0_19, %c0_20] : memref<1x8xf32, #tpu.memory_space<vmem>>, vector<1x8xf32>
    %23 = vector.broadcast %22 : vector<1x8xf32> to vector<256x8xf32>
    %24 = arith.mulf %21, %23 : vector<256x8xf32>
    %c0_21 = arith.constant 0 : index
    %c0_22 = arith.constant 0 : index
    %25 = vector.load %arg9[%c0_21, %c0_22] : memref<1x8xf32, #tpu.memory_space<vmem>>, vector<1x8xf32>
    %26 = vector.broadcast %25 : vector<1x8xf32> to vector<256x8xf32>
    %27 = arith.addf %24, %26 : vector<256x8xf32>
    %28 = arith.negf %27 : vector<256x8xf32>
    %29 = math.exp %28 : vector<256x8xf32>
    %cst_23 = arith.constant 1.000000e+00 : f32
    %30 = vector.broadcast %cst_23 : f32 to vector<256x8xf32>
    %31 = arith.addf %30, %29 : vector<256x8xf32>
    %32 = arith.divf %30, %31 : vector<256x8xf32>
    %33 = arith.mulf %27, %32 : vector<256x8xf32>
    %c0_24 = arith.constant 0 : index
    %c0_25 = arith.constant 0 : index
    %34 = vector.load %arg10[%c0_24, %c0_25] : memref<8x8xf32, #tpu.memory_space<vmem>>, vector<8x8xf32>
    %cst_26 = arith.constant dense<0.000000e+00> : vector<256x8xf32>
    %35 = tpu.matmul %19, %34, %cst_26 {dimension_numbers = #tpu.dot_dimension_numbers<[1], [0], [0], [1], [0, 0, 1, 1], [], []>} : vector<256x8xf32>, vector<8x8xf32>, vector<256x8xf32> -> vector<256x8xf32>
    %c0_27 = arith.constant 0 : index
    %c0_28 = arith.constant 0 : index
    %36 = vector.load %arg11[%c0_27, %c0_28] : memref<1x8xf32, #tpu.memory_space<vmem>>, vector<1x8xf32>
    %37 = vector.broadcast %36 : vector<1x8xf32> to vector<256x8xf32>
    %38 = arith.mulf %35, %37 : vector<256x8xf32>
    %c0_29 = arith.constant 0 : index
    %c0_30 = arith.constant 0 : index
    %39 = vector.load %arg12[%c0_29, %c0_30] : memref<1x8xf32, #tpu.memory_space<vmem>>, vector<1x8xf32>
    %40 = vector.broadcast %39 : vector<1x8xf32> to vector<256x8xf32>
    %41 = arith.addf %38, %40 : vector<256x8xf32>
    %42 = arith.negf %41 : vector<256x8xf32>
    %43 = math.exp %42 : vector<256x8xf32>
    %cst_31 = arith.constant 1.000000e+00 : f32
    %44 = vector.broadcast %cst_31 : f32 to vector<256x8xf32>
    %45 = arith.addf %44, %43 : vector<256x8xf32>
    %46 = arith.divf %44, %45 : vector<256x8xf32>
    %47 = arith.mulf %41, %46 : vector<256x8xf32>
    %c24 = arith.constant 24 : index
    %c0_32 = arith.constant 0 : index
    %48 = vector.load %arg21[%c24, %c0_32] : memref<304x8xf32, #tpu.memory_space<vmem>>, vector<256x8xf32>
    tpu.vector_store %arg21[%c24, %c0_32], %47 {strides = array<i32>} : memref<304x8xf32, #tpu.memory_space<vmem>>, vector<256x8xf32>,
    %cst_33 = arith.constant 0.000000e+00 : f32
    %49 = vector.broadcast %cst_33 : f32 to vector<256x8xf32>
    %c7 = arith.constant 7 : index
    %c0_34 = arith.constant 0 : index
    %50 = vector.load %arg21[%c7, %c0_34] : memref<304x8xf32, #tpu.memory_space<vmem>>, vector<256x8xf32>
    %51 = arith.mulf %50, %2 : vector<256x8xf32>
    %c0_35 = arith.constant 0 : index
    %c0_36 = arith.constant 0 : index
    %52 = vector.load %arg13[%c0_35, %c0_36] : memref<72x8xf32, #tpu.memory_space<vmem>>, vector<8x8xf32>
    %cst_37 = arith.constant dense<0.000000e+00> : vector<256x8xf32>
    %53 = tpu.matmul %51, %52, %cst_37 {dimension_numbers = #tpu.dot_dimension_numbers<[1], [0], [0], [1], [0, 0, 1, 1], [], []>} : vector<256x8xf32>, vector<8x8xf32>, vector<256x8xf32> -> vector<256x8xf32>
    %54 = arith.addf %49, %53 : vector<256x8xf32>
    %c8 = arith.constant 8 : index
    %c0_38 = arith.constant 0 : index
    %55 = vector.load %arg21[%c8, %c0_38] : memref<304x8xf32, #tpu.memory_space<vmem>>, vector<256x8xf32>
    %c8_39 = arith.constant 8 : index
    %c0_40 = arith.constant 0 : index
    %56 = vector.load %arg13[%c8_39, %c0_40] : memref<72x8xf32, #tpu.memory_space<vmem>>, vector<8x8xf32>
    %cst_41 = arith.constant dense<0.000000e+00> : vector<256x8xf32>
    %57 = tpu.matmul %55, %56, %cst_41 {dimension_numbers = #tpu.dot_dimension_numbers<[1], [0], [0], [1], [0, 0, 1, 1], [], []>} : vector<256x8xf32>, vector<8x8xf32>, vector<256x8xf32> -> vector<256x8xf32>
    %58 = arith.addf %54, %57 : vector<256x8xf32>
    %c9 = arith.constant 9 : index
    %c0_42 = arith.constant 0 : index
    %59 = vector.load %arg21[%c9, %c0_42] : memref<304x8xf32, #tpu.memory_space<vmem>>, vector<256x8xf32>
    %60 = arith.mulf %59, %3 : vector<256x8xf32>
    %c16 = arith.constant 16 : index
    %c0_43 = arith.constant 0 : index
    %61 = vector.load %arg13[%c16, %c0_43] : memref<72x8xf32, #tpu.memory_space<vmem>>, vector<8x8xf32>
    %cst_44 = arith.constant dense<0.000000e+00> : vector<256x8xf32>
    %62 = tpu.matmul %60, %61, %cst_44 {dimension_numbers = #tpu.dot_dimension_numbers<[1], [0], [0], [1], [0, 0, 1, 1], [], []>} : vector<256x8xf32>, vector<8x8xf32>, vector<256x8xf32> -> vector<256x8xf32>
    %63 = arith.addf %58, %62 : vector<256x8xf32>
    %c23 = arith.constant 23 : index
    %c0_45 = arith.constant 0 : index
    %64 = vector.load %arg21[%c23, %c0_45] : memref<304x8xf32, #tpu.memory_space<vmem>>, vector<256x8xf32>
    %65 = arith.mulf %64, %2 : vector<256x8xf32>
    %c24_46 = arith.constant 24 : index
    %c0_47 = arith.constant 0 : index
    %66 = vector.load %arg13[%c24_46, %c0_47] : memref<72x8xf32, #tpu.memory_space<vmem>>, vector<8x8xf32>
    %cst_48 = arith.constant dense<0.000000e+00> : vector<256x8xf32>
    %67 = tpu.matmul %65, %66, %cst_48 {dimension_numbers = #tpu.dot_dimension_numbers<[1], [0], [0], [1], [0, 0, 1, 1], [], []>} : vector<256x8xf32>, vector<8x8xf32>, vector<256x8xf32> -> vector<256x8xf32>
    %68 = arith.addf %63, %67 : vector<256x8xf32>
    %c24_49 = arith.constant 24 : index
    %c0_50 = arith.constant 0 : index
    %69 = vector.load %arg21[%c24_49, %c0_50] : memref<304x8xf32, #tpu.memory_space<vmem>>, vector<256x8xf32>
    %c32 = arith.constant 32 : index
    %c0_51 = arith.constant 0 : index
    %70 = vector.load %arg13[%c32, %c0_51] : memref<72x8xf32, #tpu.memory_space<vmem>>, vector<8x8xf32>
    %cst_52 = arith.constant dense<0.000000e+00> : vector<256x8xf32>
    %71 = tpu.matmul %69, %70, %cst_52 {dimension_numbers = #tpu.dot_dimension_numbers<[1], [0], [0], [1], [0, 0, 1, 1], [], []>} : vector<256x8xf32>, vector<8x8xf32>, vector<256x8xf32> -> vector<256x8xf32>
    %72 = arith.addf %68, %71 : vector<256x8xf32>
    %c25 = arith.constant 25 : index
    %c0_53 = arith.constant 0 : index
    %73 = vector.load %arg21[%c25, %c0_53] : memref<304x8xf32, #tpu.memory_space<vmem>>, vector<256x8xf32>
    %74 = arith.mulf %73, %3 : vector<256x8xf32>
    %c40 = arith.constant 40 : index
    %c0_54 = arith.constant 0 : index
    %75 = vector.load %arg13[%c40, %c0_54] : memref<72x8xf32, #tpu.memory_space<vmem>>, vector<8x8xf32>
    %cst_55 = arith.constant dense<0.000000e+00> : vector<256x8xf32>
    %76 = tpu.matmul %74, %75, %cst_55 {dimension_numbers = #tpu.dot_dimension_numbers<[1], [0], [0], [1], [0, 0, 1, 1], [], []>} : vector<256x8xf32>, vector<8x8xf32>, vector<256x8xf32> -> vector<256x8xf32>
    %77 = arith.addf %72, %76 : vector<256x8xf32>
    %c39 = arith.constant 39 : index
    %c0_56 = arith.constant 0 : index
    %78 = vector.load %arg21[%c39, %c0_56] : memref<304x8xf32, #tpu.memory_space<vmem>>, vector<256x8xf32>
    %79 = arith.mulf %78, %2 : vector<256x8xf32>
    %c48 = arith.constant 48 : index
    %c0_57 = arith.constant 0 : index
    %80 = vector.load %arg13[%c48, %c0_57] : memref<72x8xf32, #tpu.memory_space<vmem>>, vector<8x8xf32>
    %cst_58 = arith.constant dense<0.000000e+00> : vector<256x8xf32>
    %81 = tpu.matmul %79, %80, %cst_58 {dimension_numbers = #tpu.dot_dimension_numbers<[1], [0], [0], [1], [0, 0, 1, 1], [], []>} : vector<256x8xf32>, vector<8x8xf32>, vector<256x8xf32> -> vector<256x8xf32>
    %82 = arith.addf %77, %81 : vector<256x8xf32>
    %c40_59 = arith.constant 40 : index
    %c0_60 = arith.constant 0 : index
    %83 = vector.load %arg21[%c40_59, %c0_60] : memref<304x8xf32, #tpu.memory_space<vmem>>, vector<256x8xf32>
    %c56 = arith.constant 56 : index
    %c0_61 = arith.constant 0 : index
    %84 = vector.load %arg13[%c56, %c0_61] : memref<72x8xf32, #tpu.memory_space<vmem>>, vector<8x8xf32>
    %cst_62 = arith.constant dense<0.000000e+00> : vector<256x8xf32>
    %85 = tpu.matmul %83, %84, %cst_62 {dimension_numbers = #tpu.dot_dimension_numbers<[1], [0], [0], [1], [0, 0, 1, 1], [], []>} : vector<256x8xf32>, vector<8x8xf32>, vector<256x8xf32> -> vector<256x8xf32>
    %86 = arith.addf %82, %85 : vector<256x8xf32>
    %c41 = arith.constant 41 : index
    %c0_63 = arith.constant 0 : index
    %87 = vector.load %arg21[%c41, %c0_63] : memref<304x8xf32, #tpu.memory_space<vmem>>, vector<256x8xf32>
    %88 = arith.mulf %87, %3 : vector<256x8xf32>
    %c64 = arith.constant 64 : index
    %c0_64 = arith.constant 0 : index
    %89 = vector.load %arg13[%c64, %c0_64] : memref<72x8xf32, #tpu.memory_space<vmem>>, vector<8x8xf32>
    %cst_65 = arith.constant dense<0.000000e+00> : vector<256x8xf32>
    %90 = tpu.matmul %88, %89, %cst_65 {dimension_numbers = #tpu.dot_dimension_numbers<[1], [0], [0], [1], [0, 0, 1, 1], [], []>} : vector<256x8xf32>, vector<8x8xf32>, vector<256x8xf32> -> vector<256x8xf32>
    %91 = arith.addf %86, %90 : vector<256x8xf32>
    %c0_66 = arith.constant 0 : index
    %c0_67 = arith.constant 0 : index
    %92 = vector.load %arg14[%c0_66, %c0_67] : memref<1x8xf32, #tpu.memory_space<vmem>>, vector<1x8xf32>
    %93 = vector.broadcast %92 : vector<1x8xf32> to vector<256x8xf32>
    %94 = arith.mulf %91, %93 : vector<256x8xf32>
    %c0_68 = arith.constant 0 : index
    %c0_69 = arith.constant 0 : index
    %95 = vector.load %arg15[%c0_68, %c0_69] : memref<1x8xf32, #tpu.memory_space<vmem>>, vector<1x8xf32>
    %96 = vector.broadcast %95 : vector<1x8xf32> to vector<256x8xf32>
    %97 = arith.addf %94, %96 : vector<256x8xf32>
    %98 = arith.negf %97 : vector<256x8xf32>
    %99 = math.exp %98 : vector<256x8xf32>
    %cst_70 = arith.constant 1.000000e+00 : f32
    %100 = vector.broadcast %cst_70 : f32 to vector<256x8xf32>
    %101 = arith.addf %100, %99 : vector<256x8xf32>
    %102 = arith.divf %100, %101 : vector<256x8xf32>
    %103 = arith.mulf %97, %102 : vector<256x8xf32>
    %104 = arith.addf %103, %19 : vector<256x8xf32>
    %c0_71 = arith.constant 0 : index
    %c0_72 = arith.constant 0 : index
    %105 = vector.load %arg16[%c0_71, %c0_72] : memref<8x16xf32, #tpu.memory_space<vmem>>, vector<8x16xf32>
    %cst_73 = arith.constant dense<0.000000e+00> : vector<256x16xf32>
    %106 = tpu.matmul %104, %105, %cst_73 {dimension_numbers = #tpu.dot_dimension_numbers<[1], [0], [0], [1], [0, 0, 1, 1], [], []>} : vector<256x8xf32>, vector<8x16xf32>, vector<256x16xf32> -> vector<256x16xf32>
    %c0_74 = arith.constant 0 : index
    %c0_75 = arith.constant 0 : index
    %107 = vector.load %arg17[%c0_74, %c0_75] : memref<8x16xf32, #tpu.memory_space<vmem>>, vector<8x16xf32>
    %cst_76 = arith.constant dense<0.000000e+00> : vector<256x16xf32>
    %108 = tpu.matmul %33, %107, %cst_76 {dimension_numbers = #tpu.dot_dimension_numbers<[1], [0], [0], [1], [0, 0, 1, 1], [], []>} : vector<256x8xf32>, vector<8x16xf32>, vector<256x16xf32> -> vector<256x16xf32>
    %109 = arith.addf %106, %108 : vector<256x16xf32>
    %c0_77 = arith.constant 0 : index
    %c0_78 = arith.constant 0 : index
    %110 = vector.load %arg18[%c0_77, %c0_78] : memref<1x16xf32, #tpu.memory_space<vmem>>, vector<1x16xf32>
    %111 = vector.broadcast %110 : vector<1x16xf32> to vector<256x16xf32>
    %112 = arith.mulf %109, %111 : vector<256x16xf32>
    %c0_79 = arith.constant 0 : index
    %c0_80 = arith.constant 0 : index
    %113 = vector.load %arg19[%c0_79, %c0_80] : memref<1x16xf32, #tpu.memory_space<vmem>>, vector<1x16xf32>
    %114 = vector.broadcast %113 : vector<1x16xf32> to vector<256x16xf32>
    %115 = arith.addf %112, %114 : vector<256x16xf32>
    %116 = arith.negf %115 : vector<256x16xf32>
    %117 = math.exp %116 : vector<256x16xf32>
    %cst_81 = arith.constant 1.000000e+00 : f32
    %118 = vector.broadcast %cst_81 : f32 to vector<256x16xf32>
    %119 = arith.addf %118, %117 : vector<256x16xf32>
    %120 = arith.divf %118, %119 : vector<256x16xf32>
    %121 = arith.mulf %115, %120 : vector<256x16xf32>
    %c0_82 = arith.constant 0 : index
    %c0_83 = arith.constant 0 : index
    %c0_84 = arith.constant 0 : index
    %122 = vector.load %arg20[%c0_82, %c0_83, %c0_84] : memref<1x256x16xf32, #tpu.memory_space<vmem>>, vector<1x256x16xf32>
    %123 = vector.shape_cast %122 : vector<1x256x16xf32> to vector<256x16xf32>
    %124 = vector.shape_cast %121 : vector<256x16xf32> to vector<1x256x16xf32>
    tpu.vector_store %arg20[%c0_82, %c0_83, %c0_84], %124 {strides = array<i32>} : memref<1x256x16xf32, #tpu.memory_space<vmem>>, vector<1x256x16xf32>,
    return
  }
  func.func @transform_0(%arg0: i32) -> (i32, i32, i32) {
    %c0_i32 = arith.constant 0 : i32
    %c0_i32_0 = arith.constant 0 : i32
    %c0_i32_1 = arith.constant 0 : i32
    return %arg0, %c0_i32, %c0_i32_0 : i32, i32, i32
  }
  func.func @transform_1(%arg0: i32) -> (i32, i32) {
    %c0_i32 = arith.constant 0 : i32
    %c0_i32_0 = arith.constant 0 : i32
    %c0_i32_1 = arith.constant 0 : i32
    return %c0_i32, %c0_i32_0 : i32, i32
  }
  func.func @transform_2(%arg0: i32) -> (i32, i32) {
    %c0_i32 = arith.constant 0 : i32
    %c0_i32_0 = arith.constant 0 : i32
    %c0_i32_1 = arith.constant 0 : i32
    return %c0_i32, %c0_i32_0 : i32, i32
  }
  func.func @transform_3(%arg0: i32) -> (i32, i32) {
    %c0_i32 = arith.constant 0 : i32
    %c0_i32_0 = arith.constant 0 : i32
    %c0_i32_1 = arith.constant 0 : i32
    return %c0_i32, %c0_i32_0 : i32, i32
  }
  func.func @transform_4(%arg0: i32) -> (i32, i32) {
    %c0_i32 = arith.constant 0 : i32
    %c0_i32_0 = arith.constant 0 : i32
    %c0_i32_1 = arith.constant 0 : i32
    return %c0_i32, %c0_i32_0 : i32, i32
  }
  func.func @transform_5(%arg0: i32) -> (i32, i32) {
    %c0_i32 = arith.constant 0 : i32
    %c0_i32_0 = arith.constant 0 : i32
    %c0_i32_1 = arith.constant 0 : i32
    return %c0_i32, %c0_i32_0 : i32, i32
  }
  func.func @transform_6(%arg0: i32) -> (i32, i32) {
    %c0_i32 = arith.constant 0 : i32
    %c0_i32_0 = arith.constant 0 : i32
    %c0_i32_1 = arith.constant 0 : i32
    return %c0_i32, %c0_i32_0 : i32, i32
  }
  func.func @transform_7(%arg0: i32) -> (i32, i32) {
    %c0_i32 = arith.constant 0 : i32
    %c0_i32_0 = arith.constant 0 : i32
    %c0_i32_1 = arith.constant 0 : i32
    return %c0_i32, %c0_i32_0 : i32, i32
  }
  func.func @transform_8(%arg0: i32) -> (i32, i32) {
    %c0_i32 = arith.constant 0 : i32
    %c0_i32_0 = arith.constant 0 : i32
    %c0_i32_1 = arith.constant 0 : i32
    return %c0_i32, %c0_i32_0 : i32, i32
  }
  func.func @transform_9(%arg0: i32) -> (i32, i32) {
    %c0_i32 = arith.constant 0 : i32
    %c0_i32_0 = arith.constant 0 : i32
    %c0_i32_1 = arith.constant 0 : i32
    return %c0_i32, %c0_i32_0 : i32, i32
  }
  func.func @transform_10(%arg0: i32) -> (i32, i32) {
    %c0_i32 = arith.constant 0 : i32
    %c0_i32_0 = arith.constant 0 : i32
    %c0_i32_1 = arith.constant 0 : i32
    return %c0_i32, %c0_i32_0 : i32, i32
  }
  func.func @transform_11(%arg0: i32) -> (i32, i32) {
    %c0_i32 = arith.constant 0 : i32
    %c0_i32_0 = arith.constant 0 : i32
    %c0_i32_1 = arith.constant 0 : i32
    return %c0_i32, %c0_i32_0 : i32, i32
  }
  func.func @transform_12(%arg0: i32) -> (i32, i32) {
    %c0_i32 = arith.constant 0 : i32
    %c0_i32_0 = arith.constant 0 : i32
    %c0_i32_1 = arith.constant 0 : i32
    return %c0_i32, %c0_i32_0 : i32, i32
  }
  func.func @transform_13(%arg0: i32) -> (i32, i32) {
    %c0_i32 = arith.constant 0 : i32
    %c0_i32_0 = arith.constant 0 : i32
    %c0_i32_1 = arith.constant 0 : i32
    return %c0_i32, %c0_i32_0 : i32, i32
  }
  func.func @transform_14(%arg0: i32) -> (i32, i32) {
    %c0_i32 = arith.constant 0 : i32
    %c0_i32_0 = arith.constant 0 : i32
    %c0_i32_1 = arith.constant 0 : i32
    return %c0_i32, %c0_i32_0 : i32, i32
  }
  func.func @transform_15(%arg0: i32) -> (i32, i32) {
    %c0_i32 = arith.constant 0 : i32
    %c0_i32_0 = arith.constant 0 : i32
    %c0_i32_1 = arith.constant 0 : i32
    return %c0_i32, %c0_i32_0 : i32, i32
  }
  func.func @transform_16(%arg0: i32) -> (i32, i32) {
    %c0_i32 = arith.constant 0 : i32
    %c0_i32_0 = arith.constant 0 : i32
    %c0_i32_1 = arith.constant 0 : i32
    return %c0_i32, %c0_i32_0 : i32, i32
  }
  func.func @transform_17(%arg0: i32) -> (i32, i32) {
    %c0_i32 = arith.constant 0 : i32
    %c0_i32_0 = arith.constant 0 : i32
    %c0_i32_1 = arith.constant 0 : i32
    return %c0_i32, %c0_i32_0 : i32, i32
  }
  func.func @transform_18(%arg0: i32) -> (i32, i32) {
    %c0_i32 = arith.constant 0 : i32
    %c0_i32_0 = arith.constant 0 : i32
    %c0_i32_1 = arith.constant 0 : i32
    return %c0_i32, %c0_i32_0 : i32, i32
  }
  func.func @transform_19(%arg0: i32) -> (i32, i32, i32) {
    %c0_i32 = arith.constant 0 : i32
    %c0_i32_0 = arith.constant 0 : i32
    %c0_i32_1 = arith.constant 0 : i32
    return %arg0, %c0_i32, %c0_i32_0 : i32, i32, i32
  }
}

</mosaic_0001>

<bundles_post_ra>
// kernel: c3_forward.1
= control target key start
LH: loop header
LB: loop body
LE: loop exit
PB: predicated region body
PF: predicated region fallthrough
CT: control target
= control target key end

     0   :  { %s13905_s0 = inlined_call_operand.vmem [shape: f32[2,256,16], index: 0, kind: input, shape index: {}]   ;;  %s13906_s1 = inlined_call_operand.vmem [shape: f32[256,8], index: 1, kind: input, shape index: {}]   ;;  %s13907_s2 = inlined_call_operand.vmem [shape: f32[256,8], index: 2, kind: input, shape index: {}]   ;;  %s13908_s3 = inlined_call_operand.vmem [shape: f32[16,8], index: 3, kind: input, shape index: {}]   ;;  %s13909_s4 = inlined_call_operand.vmem [shape: f32[1,8], index: 4, kind: input, shape index: {}]   ;;  %s13910_s5 = inlined_call_operand.vmem [shape: f32[1,8], index: 5, kind: input, shape index: {}]   ;;  %s13911_s6 = inlined_call_operand.vmem [shape: f32[16,8], index: 6, kind: input, shape index: {}]   ;;  %s13912_s7 = inlined_call_operand.vmem [shape: f32[1,8], index: 7, kind: input, shape index: {}]   ;;  %s13913_s8 = inlined_call_operand.vmem [shape: f32[1,8], index: 8, kind: input, shape index: {}]   ;;  %s13914_s9 = inlined_call_operand.vmem [shape: f32[8,8], index: 9, kind: input, shape index: {}]   ;;  %s13915_s10 = inlined_call_operand.vmem [shape: f32[1,8], index: 10, kind: input, shape index: {}]   ;;  %s13916_s11 = inlined_call_operand.vmem [shape: f32[1,8], index: 11, kind: input, shape index: {}]   ;;  %s13917_s12 = inlined_call_operand.vmem [shape: f32[72,8], index: 12, kind: input, shape index: {}]   ;;  %s13918_s13 = inlined_call_operand.vmem [shape: f32[1,8], index: 13, kind: input, shape index: {}]   ;;  %s13919_s14 = inlined_call_operand.vmem [shape: f32[1,8], index: 14, kind: input, shape index: {}]   ;;  %s13920_s15 = inlined_call_operand.vmem [shape: f32[8,16], index: 15, kind: input, shape index: {}]   ;;  %s13921_s16 = inlined_call_operand.vmem [shape: f32[8,16], index: 16, kind: input, shape index: {}]   ;;  %s13922_s17 = inlined_call_operand.vmem [shape: f32[1,16], index: 17, kind: input, shape index: {}]   ;;  %s13923_s18 = inlined_call_operand.vmem [shape: f32[1,16], index: 18, kind: input, shape index: {}]   ;;  %s13924_s19 = inlined_call_operand.vmem [shape: f32[2,256,16], index: 19, kind: output, shape index: {}]  }
   0x1   :  { %13989 = sst [smem:[#allocation90_spill]] %s13905_s0  ;;  %s10138_s0 = smov 0  }
   0x2   :  { %13990 = sst [smem:[#allocation91_spill]] %s13906_s1 }
   0x3   :  { %13991 = sst [smem:[#allocation92_spill]] %s13907_s2 }
   0x4   :  { %13992 = sst [smem:[#allocation93_spill]] %s13908_s3 }
   0x5 LB: > { %s7518_s30 = sadd.s32 4294967295, %s10035_s0   ;;  %p7522_p0 = scmp.ge.s32.totalorder %s10035_s0, 1  ;;  %s10035_s0 = sphi %s10138_s0, %s29_s0  }
   0x6   : > { %p537_p1 = scmp.lt.s32.totalorder %s10035_s0, 3 }
   0x8   : > { %p538_p2 = pnand %p7522_p0, %p537_p1 }
   0xa   : > { %541 = sbr.rel (%p538_p2) target bundleno = 1305 (0x519), region = 96 }
   0xf   : > { %s13993_s1 = sld [smem:[#allocation93_spill]]  ;;  %p593_p3 = scmp.lt.s32.totalorder %s7518_s30, 1  ;;  %v1893_v2 = vld [vmem:[%s13914_s9] sm:$0xff]  ;;  %vm740_vm0 = vcmask 130048   ;;  %vm603_vm1 = vcmask 64512   ;;  %v1365_v35 = vld [vmem:[%s13911_s6 + $0x8] sm:$0xff] }
  0x10   : > { %s13994_s27 = sld [smem:[#allocation90_spill]]  ;;  %v1364_v36 = vld [vmem:[%s13911_s6] sm:$0xff]  ;;  %8665 = vmatprep.subr.mxu1 %v1365_v35  ;;  %v10037_v37 = vmov 0.0   ;;  %v2646_v38 = vld [vmem:[%s13917_s12 + $0x8] sm:$0xff] }
  0x11   : > { %s14290_s30 = smov (!%p593_p3, %s7518_s30), 1  ;;  %608 = vst.msk [vmem:[#allocation2 + $0x20] sm:$0xff] %vm603_vm1, %v10037_v37  ;;  %604 = vst.msk [vmem:[#allocation2] sm:$0xff] %vm603_vm1, %v10037_v37  ;;  %8666 = vmatpush3.msra.mxu1 %v1365_v35  ;;  %v10391_v39 = vld [vmem:[%s13909_s4] ss:$0 sm:$0xff]  ;;  %s14027_s20 = sld [smem:[#allocation91_spill]] }
  0x12   : > { %s8147_s25 = sshll.u32 %s14290_s30, 8  ;;  %605 = vst.msk [vmem:[#allocation2 + $0x8] sm:$0xff] %vm603_vm1, %v10037_v37  ;;  %606 = vst.msk [vmem:[#allocation2 + $0x10] sm:$0xff] %vm603_vm1, %v10037_v37  ;;  %8667 = vmatprep.subr.mxu1 %v1364_v36  ;;  %v10398_v41 = vld [vmem:[%s13910_s5] ss:$0 sm:$0xff]  ;;  %s14040_s2 = sld [smem:[#allocation92_spill]] }
  0x13   : > { %607 = vst.msk [vmem:[#allocation2 + $0x18] sm:$0xff] %vm603_vm1, %v10037_v37  ;;  %609 = vst.msk [vmem:[#allocation2 + $0x28] sm:$0xff] %vm603_vm1, %v10037_v37  ;;  %8668 = vmatpush3.msra.mxu1 %v1364_v36  ;;  %s13700_s26 = scalar_lea.vmem %s13924_s19, %s8147_s25 }
  0x14   : > { %610 = vst.msk [vmem:[#allocation2 + $0x30] sm:$0xff] %vm603_vm1, %v10037_v37  ;;  %611 = vst.msk [vmem:[#allocation2 + $0x38] sm:$0xff] %vm603_vm1, %v10037_v37  ;;  %8767 = vmatprep.subr.mxu1 %v2646_v38 }
  0x15   : > { %v739_v0 = vld [vmem:[%s13993_s1 + $0x8] sm:$0xff]  ;;  %v738_v1 = vld [vmem:[%s13993_s1] sm:$0xff]  ;;  %612 = vst.msk [vmem:[#allocation2 + $0x40] sm:$0xff] %vm603_vm1, %v10037_v37  ;;  %613 = vst.msk [vmem:[#allocation2 + $0x48] sm:$0xff] %vm603_vm1, %v10037_v37 }
  0x16   : > { %8613 = vmatprep.subr.mxu0 %v739_v0  ;;  %s10163_s28 = scalar_lea.vmem %s13994_s27, %s8147_s25  ;;  %614 = vst.msk [vmem:[#allocation2 + $0x50] sm:$0xff] %vm603_vm1, %v10037_v37  ;;  %615 = vst.msk [vmem:[#allocation2 + $0x58] sm:$0xff] %vm603_vm1, %v10037_v37 }
  0x17   : > { %8614 = vmatpush3.msra.mxu0 %v739_v0  ;;  %v706_v3 = vld [vmem:[%s10163_s28] sm:$0xff]  ;;  %v10167_v4 = vld [vmem:[%s10163_s28 + $0x8] sm:$0xff]  ;;  %v10170_v5 = vld [vmem:[%s10163_s28 + $0x10] sm:$0xff]  ;;  %616 = vst.msk [vmem:[#allocation2 + $0x60] sm:$0xff] %vm603_vm1, %v10037_v37 }
  0x18   : > { %8615 = vmatprep.subr.mxu0 %v738_v1  ;;  %8617 = vmatprep.mubr.msk.f32.mxu0 %vm740_vm0, %v706_v3  ;;  %v10179_v6 = vld [vmem:[%s10163_s28 + $0x18] sm:$0xff]  ;;  %v10182_v7 = vld [vmem:[%s10163_s28 + $0x20] sm:$0xff]  ;;  %v10189_v8 = vld [vmem:[%s10163_s28 + $0x28] sm:$0xff]  ;;  %617 = vst.msk [vmem:[#allocation2 + $0x68] sm:$0xff] %vm603_vm1, %v10037_v37 }
  0x19   : > { %8616 = vmatpush3.msra.mxu0 %v738_v1  ;;  %8669 = vmatprep.mubr.msk.f32.mxu1 %vm740_vm0, %v706_v3  ;;  %v10192_v9 = vld [vmem:[%s10163_s28 + $0x30] sm:$0xff]  ;;  %v10199_v10 = vld [vmem:[%s10163_s28 + $0x38] sm:$0xff]  ;;  %v10202_v11 = vld [vmem:[%s10163_s28 + $0x40] sm:$0xff]  ;;  %618 = vst.msk [vmem:[#allocation2 + $0x70] sm:$0xff] %vm603_vm1, %v10037_v37 }
  0x1a   : > { %8717 = vmatprep.subr.mxu0 %v1893_v2  ;;  %8618 = vmatmul.mubr.msk.f32.vlgmr.msra.gmra.mxu0 %vm740_vm0, %v10167_v4  ;;  %v10209_v12 = vld [vmem:[%s10163_s28 + $0x48] sm:$0xff]  ;;  %v10212_v13 = vld [vmem:[%s10163_s28 + $0x50] sm:$0xff]  ;;  %v10219_v14 = vld [vmem:[%s10163_s28 + $0x58] sm:$0xff]  ;;  %619 = vst.msk [vmem:[#allocation2 + $0x78] sm:$0xff] %vm603_vm1, %v10037_v37 }
  0x1b   : > { %8620 = vmatprep.mubr.msk.f32.mxu0 %vm740_vm0, %v10170_v5  ;;  %8718 = vmatpush3.msra.mxu0 %v1893_v2  ;;  %v10222_v15 = vld [vmem:[%s10163_s28 + $0x60] sm:$0xff]  ;;  %v10229_v16 = vld [vmem:[%s10163_s28 + $0x68] sm:$0xff]  ;;  %v10232_v17 = vld [vmem:[%s10163_s28 + $0x70] sm:$0xff]  ;;  %620 = vst.msk [vmem:[#allocation2 + $0x80] sm:$0xff] %vm603_vm1, %v10037_v37 }
  0x1c   : > { %v10239_v18 = vld [vmem:[%s10163_s28 + $0x78] sm:$0xff]  ;;  %v10242_v19 = vld [vmem:[%s10163_s28 + $0x80] sm:$0xff]  ;;  %v10249_v20 = vld [vmem:[%s10163_s28 + $0x88] sm:$0xff]  ;;  %621 = vst.msk [vmem:[#allocation2 + $0x88] sm:$0xff] %vm603_vm1, %v10037_v37  ;;  %8670 = vmatmul.mubr.msk.f32.vlgmr.msra.gmra.mxu1 %vm740_vm0, %v10167_v4 }
  0x1d   : > { %v10252_v21 = vld [vmem:[%s10163_s28 + $0x90] sm:$0xff]  ;;  %v10259_v22 = vld [vmem:[%s10163_s28 + $0x98] sm:$0xff]  ;;  %v10262_v23 = vld [vmem:[%s10163_s28 + $0xa0] sm:$0xff]  ;;  %622 = vst.msk [vmem:[#allocation2 + $0x90] sm:$0xff] %vm603_vm1, %v10037_v37  ;;  %8672 = vmatprep.mubr.msk.f32.mxu1 %vm740_vm0, %v10170_v5  ;;  %8768 = vmatpush3.msra.mxu1 %v2646_v38 }
  0x1e   : > { %8621 = vmatmul.mubr.msk.f32.gmra.mxu0 %vm740_vm0, %v10179_v6  ;;  %v10269_v24 = vld [vmem:[%s10163_s28 + $0xa8] sm:$0xff]  ;;  %v10272_v25 = vld [vmem:[%s10163_s28 + $0xb0] sm:$0xff]  ;;  %v10279_v26 = vld [vmem:[%s10163_s28 + $0xb8] sm:$0xff]  ;;  %623 = vst.msk [vmem:[#allocation2 + $0x98] sm:$0xff] %vm603_vm1, %v10037_v37 }
  0x1f   : > { %8623 = vmatprep.mubr.msk.f32.mxu0 %vm740_vm0, %v10182_v7  ;;  %v10282_v27 = vld [vmem:[%s10163_s28 + $0xc0] sm:$0xff]  ;;  %v10289_v28 = vld [vmem:[%s10163_s28 + $0xc8] sm:$0xff]  ;;  %v10292_v29 = vld [vmem:[%s10163_s28 + $0xd0] sm:$0xff]  ;;  %624 = vst.msk [vmem:[#allocation2 + $0xa0] sm:$0xff] %vm603_vm1, %v10037_v37 }
  0x20   : > { %v10299_v30 = vld [vmem:[%s10163_s28 + $0xd8] sm:$0xff]  ;;  %v10302_v31 = vld [vmem:[%s10163_s28 + $0xe0] sm:$0xff]  ;;  %v10309_v32 = vld [vmem:[%s10163_s28 + $0xe8] sm:$0xff]  ;;  %625 = vst.msk [vmem:[#allocation2 + $0xa8] sm:$0xff] %vm603_vm1, %v10037_v37  ;;  %8673 = vmatmul.mubr.msk.f32.gmra.mxu1 %vm740_vm0, %v10179_v6 }
  0x21   : > { %v10312_v33 = vld [vmem:[%s10163_s28 + $0xf0] sm:$0xff]  ;;  %v10319_v34 = vld [vmem:[%s10163_s28 + $0xf8] sm:$0xff]  ;;  %626 = vst.msk [vmem:[#allocation2 + $0xb0] sm:$0xff] %vm603_vm1, %v10037_v37  ;;  %627 = vst.msk [vmem:[#allocation2 + $0xb8] sm:$0xff] %vm603_vm1, %v10037_v37  ;;  %8675 = vmatprep.mubr.msk.f32.mxu1 %vm740_vm0, %v10182_v7 }
  0x22   : > { %8624 = vmatmul.mubr.msk.f32.gmra.mxu0 %vm740_vm0, %v10189_v8  ;;  %628 = vst.msk [vmem:[#allocation2 + $0xc0] sm:$0xff] %vm603_vm1, %v10037_v37  ;;  %629 = vst.msk [vmem:[#allocation2 + $0xc8] sm:$0xff] %vm603_vm1, %v10037_v37 }
  0x23   : > { %8626 = vmatprep.mubr.msk.f32.mxu0 %vm740_vm0, %v10192_v9  ;;  %630 = vst.msk [vmem:[#allocation2 + $0xd0] sm:$0xff] %vm603_vm1, %v10037_v37  ;;  %631 = vst.msk [vmem:[#allocation2 + $0xd8] sm:$0xff] %vm603_vm1, %v10037_v37 }
  0x24   : > { %632 = vst.msk [vmem:[#allocation2 + $0xe0] sm:$0xff] %vm603_vm1, %v10037_v37  ;;  %633 = vst.msk [vmem:[#allocation2 + $0xe8] sm:$0xff] %vm603_vm1, %v10037_v37  ;;  %8676 = vmatmul.mubr.msk.f32.gmra.mxu1 %vm740_vm0, %v10189_v8 }
  0x25   : > { %634 = vst.msk [vmem:[#allocation2 + $0xf0] sm:$0xff] %vm603_vm1, %v10037_v37  ;;  %635 = vst.msk [vmem:[#allocation2 + $0xf8] sm:$0xff] %vm603_vm1, %v10037_v37  ;;  %8678 = vmatprep.mubr.msk.f32.mxu1 %vm740_vm0, %v10192_v9 }
  0x26   : > { %8627 = vmatmul.mubr.msk.f32.gmra.mxu0 %vm740_vm0, %v10199_v10  ;;  %636 = vst.msk [vmem:[#allocation2 + $0x100] sm:$0xff] %vm603_vm1, %v10037_v37  ;;  %637 = vst.msk [vmem:[#allocation2 + $0x108] sm:$0xff] %vm603_vm1, %v10037_v37 }
  0x27   : > { %8629 = vmatprep.mubr.msk.f32.mxu0 %vm740_vm0, %v10202_v11  ;;  %638 = vst.msk [vmem:[#allocation2 + $0x110] sm:$0xff] %vm603_vm1, %v10037_v37  ;;  %639 = vst.msk [vmem:[#allocation2 + $0x118] sm:$0xff] %vm603_vm1, %v10037_v37 }
  0x28   : > { %640 = vst.msk [vmem:[#allocation2 + $0x120] sm:$0xff] %vm603_vm1, %v10037_v37  ;;  %641 = vst.msk [vmem:[#allocation2 + $0x128] sm:$0xff] %vm603_vm1, %v10037_v37  ;;  %8679 = vmatmul.mubr.msk.f32.gmra.mxu1 %vm740_vm0, %v10199_v10 }
  0x29   : > { %8681 = vmatprep.mubr.msk.f32.mxu1 %vm740_vm0, %v10202_v11 }
  0x2a   : > { %8630 = vmatmul.mubr.msk.f32.gmra.mxu0 %vm740_vm0, %v10209_v12 }
  0x2b   : > { %8632 = vmatprep.mubr.msk.f32.mxu0 %vm740_vm0, %v10212_v13 }
  0x2c   : > { %8682 = vmatmul.mubr.msk.f32.gmra.mxu1 %vm740_vm0, %v10209_v12 }
  0x2d   : > { %8684 = vmatprep.mubr.msk.f32.mxu1 %vm740_vm0, %v10212_v13 }
  0x2e   : > { %8633 = vmatmul.mubr.msk.f32.gmra.mxu0 %vm740_vm0, %v10219_v14 }
  0x2f   : > { %8635 = vmatprep.mubr.msk.f32.mxu0 %vm740_vm0, %v10222_v15 }
  0x30   : > { %8685 = vmatmul.mubr.msk.f32.gmra.mxu1 %vm740_vm0, %v10219_v14 }
  0x31   : > { %8687 = vmatprep.mubr.msk.f32.mxu1 %vm740_vm0, %v10222_v15 }
  0x32   : > { %8636 = vmatmul.mubr.msk.f32.gmra.mxu0 %vm740_vm0, %v10229_v16 }
  0x33   : > { %8638 = vmatprep.mubr.msk.f32.mxu0 %vm740_vm0, %v10232_v17 }
  0x34   : > { %8688 = vmatmul.mubr.msk.f32.gmra.mxu1 %vm740_vm0, %v10229_v16 }
  0x35   : > { %8690 = vmatprep.mubr.msk.f32.mxu1 %vm740_vm0, %v10232_v17 }
  0x36   : > { %8639 = vmatmul.mubr.msk.f32.gmra.mxu0 %vm740_vm0, %v10239_v18 }
  0x37   : > { %8641 = vmatprep.mubr.msk.f32.mxu0 %vm740_vm0, %v10242_v19 }
  0x38   : > { %8691 = vmatmul.mubr.msk.f32.gmra.mxu1 %vm740_vm0, %v10239_v18 }
  0x39   : > { %8693 = vmatprep.mubr.msk.f32.mxu1 %vm740_vm0, %v10242_v19 }
  0x3a   : > { %8642 = vmatmul.mubr.msk.f32.gmra.mxu0 %vm740_vm0, %v10249_v20 }
  0x3b   : > { %8644 = vmatprep.mubr.msk.f32.mxu0 %vm740_vm0, %v10252_v21 }
  0x3c   : > { %8694 = vmatmul.mubr.msk.f32.gmra.mxu1 %vm740_vm0, %v10249_v20 }
  0x3d   : > { %8696 = vmatprep.mubr.msk.f32.mxu1 %vm740_vm0, %v10252_v21 }
  0x3e   : > { %8645 = vmatmul.mubr.msk.f32.gmra.mxu0 %vm740_vm0, %v10259_v22 }
  0x3f   : > { %8647 = vmatprep.mubr.msk.f32.mxu0 %vm740_vm0, %v10262_v23 }
  0x40   : > { %8697 = vmatmul.mubr.msk.f32.gmra.mxu1 %vm740_vm0, %v10259_v22 }
  0x41   : > { %8699 = vmatprep.mubr.msk.f32.mxu1 %vm740_vm0, %v10262_v23 }
  0x42   : > { %8648 = vmatmul.mubr.msk.f32.gmra.mxu0 %vm740_vm0, %v10269_v24 }
  0x43   : > { %8650 = vmatprep.mubr.msk.f32.mxu0 %vm740_vm0, %v10272_v25 }
  0x44   : > { %8700 = vmatmul.mubr.msk.f32.gmra.mxu1 %vm740_vm0, %v10269_v24 }
  0x45   : > { %8702 = vmatprep.mubr.msk.f32.mxu1 %vm740_vm0, %v10272_v25 }
  0x46   : > { %8651 = vmatmul.mubr.msk.f32.gmra.mxu0 %vm740_vm0, %v10279_v26 }
  0x47   : > { %8653 = vmatprep.mubr.msk.f32.mxu0 %vm740_vm0, %v10282_v27 }
  0x48   : > { %8703 = vmatmul.mubr.msk.f32.gmra.mxu1 %vm740_vm0, %v10279_v26 }
  0x49   : > { %8705 = vmatprep.mubr.msk.f32.mxu1 %vm740_vm0, %v10282_v27 }
  0x4a   : > { %8654 = vmatmul.mubr.msk.f32.gmra.mxu0 %vm740_vm0, %v10289_v28 }
  0x4b   : > { %8656 = vmatprep.mubr.msk.f32.mxu0 %vm740_vm0, %v10292_v29 }
  0x4c   : > { %8706 = vmatmul.mubr.msk.f32.gmra.mxu1 %vm740_vm0, %v10289_v28 }
  0x4d   : > { %8708 = vmatprep.mubr.msk.f32.mxu1 %vm740_vm0, %v10292_v29 }
  0x4e   : > { %8657 = vmatmul.mubr.msk.f32.gmra.mxu0 %vm740_vm0, %v10299_v30 }
  0x4f   : > { %8659 = vmatprep.mubr.msk.f32.mxu0 %vm740_vm0, %v10302_v31 }
  0x50   : > { %8709 = vmatmul.mubr.msk.f32.gmra.mxu1 %vm740_vm0, %v10299_v30 }
  0x51   : > { %8711 = vmatprep.mubr.msk.f32.mxu1 %vm740_vm0, %v10302_v31 }
  0x52   : > { %8660 = vmatmul.mubr.msk.f32.gmra.mxu0 %vm740_vm0, %v10309_v32 }
  0x53   : > { %8662 = vmatprep.mubr.msk.f32.mxu0 %vm740_vm0, %v10312_v33 }
  0x54   : > { %8712 = vmatmul.mubr.msk.f32.gmra.mxu1 %vm740_vm0, %v10309_v32 }
  0x55   : > { %8714 = vmatprep.mubr.msk.f32.mxu1 %vm740_vm0, %v10312_v33 }
  0x56   : > { %8663 = vmatmul.mubr.msk.f32.gmra.mxu0 %vm740_vm0, %v10319_v34 }
  0x58   : > { %8715 = vmatmul.mubr.msk.f32.gmra.mxu1 %vm740_vm0, %v10319_v34 }
  0xda   : > { %v8619_v40 = vpop.f32.mrf.mxu0 }
  0xdb   : > { %v1070_v42 = vmul.f32 %v8619_v40, %v10391_v39 }
  0xdc   : > { %v903_v43 = vpop.f32.mrf.mxu0 }
  0xdd   : > { %v10406_v44 = vadd.f32 %v10398_v41, %v1070_v42  ;;  %v1069_v45 = vmul.f32 %v10391_v39, %v903_v43 }
  0xde   : > { %v8622_v46 = vpop.f32.mrf.mxu0 }
  0xdf   : > { %v7562_v47 = vmul.f32 -1.442695, %v10406_v44  ;;  %v10411_v48 = vadd.f32 %v10398_v41, %v1069_v45  ;;  %v1072_v49 = vmul.f32 %v8622_v46, %v10391_v39 }
  0xe0   : > { %v913_v50 = vpop.f32.mrf.mxu0 }
  0xe1   : > { %9326 = vpow2.f32 %v7562_v47  ;;  %v7561_v51 = vmul.f32 -1.442695, %v10411_v48  ;;  %v10420_v52 = vadd.f32 %v10398_v41, %v1072_v49  ;;  %v1071_v53 = vmul.f32 %v10391_v39, %v913_v50 }
  0xe2   : > { %v8625_v54 = vpop.f32.mrf.mxu0 }
  0xe3   : > { %9328 = vpow2.f32 %v7561_v51  ;;  %v7564_v55 = vmul.f32 -1.442695, %v10420_v52  ;;  %v10425_v56 = vadd.f32 %v10398_v41, %v1071_v53  ;;  %v1074_v57 = vmul.f32 %v8625_v54, %v10391_v39 }
  0xe4   : > { %v923_v58 = vpop.f32.mrf.mxu0 }
  0xe5   : > { %9330 = vpow2.f32 %v7564_v55  ;;  %v7563_v59 = vmul.f32 -1.442695, %v10425_v56  ;;  %v10434_v60 = vadd.f32 %v10398_v41, %v1074_v57  ;;  %v1073_v61 = vmul.f32 %v10391_v39, %v923_v58 }
  0xe6   : > { %v8628_v62 = vpop.f32.mrf.mxu0 }
  0xe7   : > { %9332 = vpow2.f32 %v7563_v59  ;;  %v7566_v63 = vmul.f32 -1.442695, %v10434_v60  ;;  %v10439_v0 = vadd.f32 %v10398_v41, %v1073_v61  ;;  %v1076_v1 = vmul.f32 %v8628_v62, %v10391_v39 }
  0xe8   : > { %v933_v2 = vpop.f32.mrf.mxu0 }
  0xe9   : > { %9334 = vpow2.f32 %v7566_v63  ;;  %v7565_v3 = vmul.f32 -1.442695, %v10439_v0  ;;  %v10448_v4 = vadd.f32 %v10398_v41, %v1076_v1  ;;  %v1075_v5 = vmul.f32 %v10391_v39, %v933_v2 }
  0xea   : > { %v8631_v6 = vpop.f32.mrf.mxu0 }
  0xeb   : > { %9336 = vpow2.f32 %v7565_v3  ;;  %v7568_v7 = vmul.f32 -1.442695, %v10448_v4  ;;  %v10453_v8 = vadd.f32 %v10398_v41, %v1075_v5  ;;  %v1078_v9 = vmul.f32 %v8631_v6, %v10391_v39 }
  0xec   : > { %v943_v10 = vpop.f32.mrf.mxu0 }
  0xed   : > { %9338 = vpow2.f32 %v7568_v7  ;;  %v7567_v11 = vmul.f32 -1.442695, %v10453_v8  ;;  %v10462_v12 = vadd.f32 %v10398_v41, %v1078_v9  ;;  %v1077_v13 = vmul.f32 %v10391_v39, %v943_v10 }
  0xee   : > { %v9327_v14 = vpop.eup %9326  ;;  %v8634_v15 = vpop.f32.mrf.mxu0 }
  0xef   : > { %v1237_v16 = vadd.f32 1.0, %v9327_v14  ;;  %9340 = vpow2.f32 %v7567_v11  ;;  %v7570_v17 = vmul.f32 -1.442695, %v10462_v12  ;;  %v10467_v18 = vadd.f32 %v10398_v41, %v1077_v13 }
  0xf0   : > { %v9329_v19 = vpop.eup %9328  ;;  %v1080_v20 = vmul.f32 %v8634_v15, %v10391_v39  ;;  %v953_v21 = vpop.f32.mrf.mxu0 }
  0xf1   : > { %9342 = vrcp.f32 %v1237_v16  ;;  %v1236_v22 = vadd.f32 1.0, %v9329_v19  ;;  %v7569_v23 = vmul.f32 -1.442695, %v10467_v18  ;;  %v1079_v35 = vmul.f32 %v10391_v39, %v953_v21 }
  0xf2   : > { %v9331_v36 = vpop.eup %9330  ;;  %9344 = vpow2.f32 %v7570_v17  ;;  %v10477_v37 = vadd.f32 %v10398_v41, %v1080_v20  ;;  %v8637_v38 = vpop.f32.mrf.mxu0 }
  0xf3   : > { %9346 = vrcp.f32 %v1236_v22  ;;  %v1239_v24 = vadd.f32 1.0, %v9331_v36  ;;  %v10480_v40 = vadd.f32 %v10398_v41, %v1079_v35  ;;  %v1082_v42 = vmul.f32 %v8637_v38, %v10391_v39 }
  0xf4   : > { %v9333_v25 = vpop.eup %9332  ;;  %9348 = vpow2.f32 %v7569_v23  ;;  %v7572_v43 = vmul.f32 -1.442695, %v10477_v37  ;;  %v963_v45 = vpop.f32.mrf.mxu0 }
  0xf5   : > { %9350 = vrcp.f32 %v1239_v24  ;;  %v1238_v46 = vadd.f32 1.0, %v9333_v25  ;;  %v7571_v47 = vmul.f32 -1.442695, %v10480_v40  ;;  %v10490_v49 = vadd.f32 %v10398_v41, %v1082_v42 }
  0xf6   : > { %v9335_v50 = vpop.eup %9334  ;;  %9352 = vpow2.f32 %v7572_v43  ;;  %v1081_v51 = vmul.f32 %v10391_v39, %v963_v45  ;;  %v8640_v26 = vpop.f32.mrf.mxu0 }
  0xf7   : > { %9354 = vrcp.f32 %v1238_v46  ;;  %v1241_v53 = vadd.f32 1.0, %v9335_v50  ;;  %v7574_v54 = vmul.f32 -1.442695, %v10490_v49  ;;  %v1084_v55 = vmul.f32 %v8640_v26, %v10391_v39 }
  0xf8   : > { %v9337_v27 = vpop.eup %9336  ;;  %9356 = vpow2.f32 %v7571_v47  ;;  %v10498_v57 = vadd.f32 %v10398_v41, %v1081_v51  ;;  %v973_v58 = vpop.f32.mrf.mxu0 }
  0xf9   : > { %9358 = vrcp.f32 %v1241_v53  ;;  %v1240_v59 = vadd.f32 1.0, %v9337_v27  ;;  %v10503_v61 = vadd.f32 %v10398_v41, %v1084_v55  ;;  %v1083_v62 = vmul.f32 %v10391_v39, %v973_v58 }
  0xfa   : > { %v9339_v63 = vpop.eup %9338  ;;  %9360 = vpow2.f32 %v7574_v54  ;;  %v7573_v28 = vmul.f32 -1.442695, %v10498_v57  ;;  %v8643_v1 = vpop.f32.mrf.mxu0 }
  0xfb   : > { %9362 = vrcp.f32 %v1240_v59  ;;  %v1243_v2 = vadd.f32 1.0, %v9339_v63  ;;  %v7576_v3 = vmul.f32 -1.442695, %v10503_v61  ;;  %v10509_v5 = vadd.f32 %v10398_v41, %v1083_v62 }
  0xfc   : > { %v9341_v29 = vpop.eup %9340  ;;  %9364 = vpow2.f32 %v7573_v28  ;;  %v1086_v6 = vmul.f32 %v8643_v1, %v10391_v39  ;;  %v983_v7 = vpop.f32.mrf.mxu0 }
  0xfd   : > { %9366 = vrcp.f32 %v1243_v2  ;;  %v1242_v9 = vadd.f32 1.0, %v9341_v29  ;;  %v7575_v10 = vmul.f32 -1.442695, %v10509_v5  ;;  %v1085_v11 = vmul.f32 %v10391_v39, %v983_v7 }
  0xfe   : > { %v9343_v13 = vpop.eup %9342  ;;  %9368 = vpow2.f32 %v7576_v3  ;;  %v10519_v14 = vadd.f32 %v10398_v41, %v1086_v6  ;;  %v8646_v30 = vpop.f32.mrf.mxu0 }
  0xff   : > { %v9345_v15 = vpop.eup %9344  ;;  %9370 = vrcp.f32 %v1242_v9  ;;  %v10522_v16 = vadd.f32 %v10398_v41, %v1085_v11  ;;  %v1088_v17 = vmul.f32 %v8646_v30, %v10391_v39  ;;  %v10539_v24 = vmul.f32 %v9343_v13, %v10406_v44 }
 0x100   : > { %v9347_v31 = vpop.eup %9346  ;;  %v1245_v19 = vadd.f32 1.0, %v9345_v15  ;;  %9372 = vpow2.f32 %v7575_v10  ;;  %v7578_v20 = vmul.f32 -1.442695, %v10519_v14  ;;  %v993_v21 = vpop.f32.mrf.mxu0 }
 0x101   : > { %v9349_v22 = vpop.eup %9348  ;;  %v10531_v23 = vmul.f32 %v9347_v31, %v10411_v48  ;;  %v7577_v35 = vmul.f32 -1.442695, %v10522_v16  ;;  %v10535_v36 = vadd.f32 %v10398_v41, %v1088_v17  ;;  %v1087_v32 = vmul.f32 %v10391_v39, %v993_v21  ;;  %13996 = vst [vmem:[#allocation4_spill] sm:$0xff] %v10539_v24 }
 0x102   : > { %v9351_v38 = vpop.eup %9350  ;;  %9374 = vrcp.f32 %v1245_v19  ;;  %v1244_v42 = vadd.f32 1.0, %v9349_v22  ;;  %v8649_v25 = vpop.f32.mrf.mxu0 }
 0x103   : > { %13995 = vst [vmem:[#allocation3_spill] sm:$0xff] %v10531_v23  ;;  %v9353_v43 = vpop.eup %9352  ;;  %9376 = vpow2.f32 %v7578_v20  ;;  %v7580_v33 = vmul.f32 -1.442695, %v10535_v36  ;;  %v10543_v48 = vadd.f32 %v10398_v41, %v1087_v32  ;;  %8719 = vmatprep.mubr.msk.f32.mxu0 %vm603_vm1, %v10531_v23  ;;  %v1090_v46 = vmul.f32 %v8649_v25, %v10391_v39 }
 0x104   : > { %v9355_v45 = vpop.eup %9354  ;;  %9378 = vrcp.f32 %v1244_v42  ;;  %v1247_v44 = vadd.f32 1.0, %v9353_v43  ;;  %v1003_v47 = vpop.f32.mrf.mxu0  ;;  %8720 = vmatmul.mubr.msk.f32.vlgmr.msra.gmra.mxu0 %vm603_vm1, %v10539_v24  ;;  %v10558_v34 = vmul.f32 %v9351_v38, %v10420_v52 }
 0x105   : > { %v9357_v50 = vpop.eup %9356  ;;  %v10553_v51 = vmul.f32 %v9355_v45, %v10425_v56  ;;  %9380 = vpow2.f32 %v7577_v35  ;;  %v7579_v26 = vmul.f32 -1.442695, %v10543_v48  ;;  %v1089_v53 = vmul.f32 %v10391_v39, %v1003_v47 }
 0x106   : > { %v9359_v54 = vpop.eup %9358  ;;  %13998 = vst [vmem:[#allocation6_spill] sm:$0xff] %v10558_v34  ;;  %9382 = vrcp.f32 %v1247_v44  ;;  %v1246_v55 = vadd.f32 1.0, %v9357_v50  ;;  %v10561_v27 = vadd.f32 %v10398_v41, %v1090_v46  ;;  %v8652_v58 = vpop.f32.mrf.mxu0 }
 0x107   : > { %13997 = vst [vmem:[#allocation5_spill] sm:$0xff] %v10553_v51  ;;  %v9361_v59 = vpop.eup %9360  ;;  %9384 = vpow2.f32 %v7580_v33  ;;  %v10564_v56 = vadd.f32 %v10398_v41, %v1089_v53  ;;  %v1092_v62 = vmul.f32 %v8652_v58, %v10391_v39  ;;  %8722 = vmatprep.mubr.msk.f32.mxu0 %vm603_vm1, %v10553_v51  ;;  %v10580_v9 = vmul.f32 %v9359_v54, %v10434_v60 }
 0x108   : > { %v9363_v63 = vpop.eup %9362  ;;  %9386 = vrcp.f32 %v1246_v55  ;;  %v1249_v52 = vadd.f32 1.0, %v9361_v59  ;;  %v7582_v28 = vmul.f32 -1.442695, %v10561_v27  ;;  %v1013_v1 = vpop.f32.mrf.mxu0  ;;  %8723 = vmatmul.mubr.msk.f32.gmra.mxu0 %vm603_vm1, %v10558_v34 }
 0x109   : > { %v9365_v2 = vpop.eup %9364  ;;  %v10573_v3 = vmul.f32 %v9363_v63, %v10439_v0  ;;  %9388 = vpow2.f32 %v7579_v26  ;;  %v7581_v29 = vmul.f32 -1.442695, %v10564_v56  ;;  %v10577_v6 = vadd.f32 %v10398_v41, %v1092_v62  ;;  %14000 = vst [vmem:[#allocation8_spill] sm:$0xff] %v10580_v9 }
 0x10a   : > { %v9367_v7 = vpop.eup %9366  ;;  %9390 = vrcp.f32 %v1249_v52  ;;  %v1248_v10 = vadd.f32 1.0, %v9365_v2  ;;  %v1091_v11 = vmul.f32 %v10391_v39, %v1013_v1  ;;  %v8655_v13 = vpop.f32.mrf.mxu0 }
 0x10b   : > { %13999 = vst [vmem:[#allocation7_spill] sm:$0xff] %v10573_v3  ;;  %v9369_v30 = vpop.eup %9368  ;;  %9392 = vpow2.f32 %v7582_v28  ;;  %v7584_v0 = vmul.f32 -1.442695, %v10577_v6  ;;  %v1094_v15 = vmul.f32 %v8655_v13, %v10391_v39  ;;  %8725 = vmatprep.mubr.msk.f32.mxu0 %vm603_vm1, %v10573_v3  ;;  %v10600_v32 = vmul.f32 %v9367_v7, %v10448_v4 }
 0x10c   : > { %v9371_v17 = vpop.eup %9370  ;;  %9394 = vrcp.f32 %v1248_v10  ;;  %v1251_v31 = vadd.f32 1.0, %v9369_v30  ;;  %v10588_v60 = vadd.f32 %v10398_v41, %v1091_v11  ;;  %v1023_v19 = vpop.f32.mrf.mxu0  ;;  %8726 = vmatmul.mubr.msk.f32.gmra.mxu0 %vm603_vm1, %v10580_v9 }
 0x10d   : > { %v9373_v20 = vpop.eup %9372  ;;  %v10593_v21 = vmul.f32 %v9371_v17, %v10453_v8  ;;  %9396 = vpow2.f32 %v7581_v29  ;;  %v10596_v22 = vadd.f32 %v10398_v41, %v1094_v15  ;;  %v1093_v35 = vmul.f32 %v10391_v39, %v1023_v19  ;;  %14002 = vst [vmem:[#allocation10_spill] sm:$0xff] %v10600_v32 }
 0x10e   : > { %9398 = vrcp.f32 %v1251_v31  ;;  %v1250_v38 = vadd.f32 1.0, %v9373_v20  ;;  %v7583_v42 = vmul.f32 -1.442695, %v10588_v60  ;;  %v8658_v25 = vpop.f32.mrf.mxu0 }
 0x10f   : > { %14001 = vst [vmem:[#allocation9_spill] sm:$0xff] %v10593_v21  ;;  %v9375_v43 = vpop.eup %9374  ;;  %9400 = vpow2.f32 %v7584_v0  ;;  %v7586_v33 = vmul.f32 -1.442695, %v10596_v22  ;;  %v10605_v8 = vadd.f32 %v10398_v41, %v1093_v35  ;;  %v1096_v45 = vmul.f32 %v8658_v25, %v10391_v39  ;;  %8728 = vmatprep.mubr.msk.f32.mxu0 %vm603_vm1, %v10593_v21 }
 0x110   : > { %v9377_v44 = vpop.eup %9376  ;;  %9402 = vrcp.f32 %v1250_v38  ;;  %v1033_v4 = vpop.f32.mrf.mxu0  ;;  %8729 = vmatmul.mubr.msk.f32.gmra.mxu0 %vm603_vm1, %v10600_v32  ;;  %v10617_v54 = vmul.f32 %v9375_v43, %v10462_v12 }
 0x111   : > { %v9379_v46 = vpop.eup %9378  ;;  %v1253_v47 = vadd.f32 1.0, %v9377_v44  ;;  %9404 = vpow2.f32 %v7583_v42  ;;  %v7585_v50 = vmul.f32 -1.442695, %v10605_v8  ;;  %v10614_v26 = vadd.f32 %v10398_v41, %v1096_v45 }
 0x112   : > { %v9381_v53 = vpop.eup %9380  ;;  %14003 = vst [vmem:[#allocation11_spill] sm:$0xff] %v10617_v54  ;;  %v10620_v55 = vmul.f32 %v9379_v46, %v10467_v18  ;;  %9406 = vpow2.f32 %v7586_v33  ;;  %v1095_v58 = vmul.f32 %v10391_v39, %v1033_v4  ;;  %v8661_v59 = vpop.f32.mrf.mxu0 }
 0x113   : > { %v9383_v62 = vpop.eup %9382  ;;  %9408 = vrcp.f32 %v1253_v47  ;;  %v1252_v63 = vadd.f32 1.0, %v9381_v53  ;;  %v7588_v52 = vmul.f32 -1.442695, %v10614_v26  ;;  %v1098_v28 = vmul.f32 %v8661_v59, %v10391_v39 }
 0x114   : > { %14004 = vst [vmem:[#allocation12_spill] sm:$0xff] %v10620_v55  ;;  %v9385_v1 = vpop.eup %9384  ;;  %9410 = vpow2.f32 %v7585_v50  ;;  %v10626_v2 = vadd.f32 %v10398_v41, %v1095_v58  ;;  %8731 = vmatprep.mubr.msk.f32.mxu0 %vm603_vm1, %v10620_v55  ;;  %v1043_v12 = vpop.f32.mrf.mxu0  ;;  %v10637_v13 = vmul.f32 %v9383_v62, %v10477_v37 }
 0x115   : > { %v9387_v18 = vpop.eup %9386  ;;  %9412 = vrcp.f32 %v1252_v63  ;;  %v1255_v29 = vadd.f32 1.0, %v9385_v1  ;;  %v10631_v7 = vadd.f32 %v10398_v41, %v1098_v28  ;;  %v1097_v10 = vmul.f32 %v10391_v39, %v1043_v12  ;;  %8732 = vmatmul.mubr.msk.f32.gmra.mxu0 %vm603_vm1, %v10617_v54 }
 0x116   : > { %v9389_v11 = vpop.eup %9388  ;;  %14005 = vst [vmem:[#allocation13_spill] sm:$0xff] %v10637_v13  ;;  %v10640_v30 = vmul.f32 %v9387_v18, %v10480_v40  ;;  %9414 = vpow2.f32 %v7588_v52  ;;  %v7587_v0 = vmul.f32 -1.442695, %v10626_v2  ;;  %v8664_v15 = vpop.f32.mrf.mxu0 }
 0x117   : > { %v9391_v17 = vpop.eup %9390  ;;  %9416 = vrcp.f32 %v1255_v29  ;;  %v1254_v31 = vadd.f32 1.0, %v9389_v11  ;;  %v7590_v19 = vmul.f32 -1.442695, %v10631_v7  ;;  %v10645_v20 = vadd.f32 %v10398_v41, %v1097_v10 }
 0x118   : > { %14006 = vst [vmem:[#allocation14_spill] sm:$0xff] %v10640_v30  ;;  %v9393_v35 = vpop.eup %9392  ;;  %9418 = vpow2.f32 %v7587_v0  ;;  %v1100_v37 = vmul.f32 %v8664_v15, %v10391_v39  ;;  %8734 = vmatprep.mubr.msk.f32.mxu0 %vm603_vm1, %v10640_v30  ;;  %v1053_v40 = vpop.f32.mrf.mxu0  ;;  %v10661_v46 = vmul.f32 %v9391_v17, %v10490_v49 }
 0x119   : > { %v9395_v38 = vpop.eup %9394  ;;  %9420 = vrcp.f32 %v1254_v31  ;;  %v1257_v42 = vadd.f32 1.0, %v9393_v35  ;;  %v7589_v25 = vmul.f32 -1.442695, %v10645_v20  ;;  %v1099_v43 = vmul.f32 %v10391_v39, %v1053_v40  ;;  %8735 = vmatmul.mubr.msk.f32.gmra.mxu0 %vm603_vm1, %v10637_v13 }
 0x11a   : > { %v9397_v33 = vpop.eup %9396  ;;  %v10655_v45 = vmul.f32 %v9395_v38, %v10498_v57  ;;  %9422 = vpow2.f32 %v7590_v19  ;;  %v10658_v44 = vadd.f32 %v10398_v41, %v1100_v37  ;;  %14008 = vst [vmem:[#allocation16_spill] sm:$0xff] %v10661_v46 }
 0x11b   : > { %v9399_v4 = vpop.eup %9398  ;;  %9424 = vrcp.f32 %v1257_v42  ;;  %v1256_v47 = vadd.f32 1.0, %v9397_v33  ;;  %v10664_v50 = vadd.f32 %v10398_v41, %v1099_v43 }
 0x11c   : > { %14007 = vst [vmem:[#allocation15_spill] sm:$0xff] %v10655_v45  ;;  %v9401_v39 = vpop.eup %9400  ;;  %9426 = vpow2.f32 %v7589_v25  ;;  %v7592_v53 = vmul.f32 -1.442695, %v10658_v44  ;;  %8737 = vmatprep.mubr.msk.f32.mxu0 %vm603_vm1, %v10655_v45  ;;  %v10676_v63 = vmul.f32 %v9399_v4, %v10503_v61 }
 0x11d   : > { %v9403_v57 = vpop.eup %9402  ;;  %9428 = vrcp.f32 %v1256_v47  ;;  %v1259_v58 = vadd.f32 1.0, %v9401_v39  ;;  %v7591_v59 = vmul.f32 -1.442695, %v10664_v50  ;;  %8738 = vmatmul.mubr.msk.f32.gmra.mxu0 %vm603_vm1, %v10661_v46 }
 0x11e   : > { %v9405_v49 = vpop.eup %9404  ;;  %v10673_v62 = vmul.f32 %v9403_v57, %v10509_v5  ;;  %9430 = vpow2.f32 %v7592_v53  ;;  %14010 = vst [vmem:[#allocation18_spill] sm:$0xff] %v10676_v63 }
 0x11f   : > { %v9407_v41 = vpop.eup %9406  ;;  %9432 = vrcp.f32 %v1259_v58  ;;  %v1258_v52 = vadd.f32 1.0, %v9405_v49 }
 0x120   : > { %14009 = vst [vmem:[#allocation17_spill] sm:$0xff] %v10673_v62  ;;  %v9409_v28 = vpop.eup %9408  ;;  %v1261_v1 = vadd.f32 1.0, %v9407_v41  ;;  %9434 = vpow2.f32 %v7591_v59  ;;  %8740 = vmatprep.mubr.msk.f32.mxu0 %vm603_vm1, %v10673_v62 }
 0x121   : > { %v9411_v12 = vpop.eup %9410  ;;  %9436 = vrcp.f32 %v1258_v52  ;;  %8741 = vmatmul.mubr.msk.f32.gmra.mxu0 %vm603_vm1, %v10676_v63  ;;  %v10686_v11 = vmul.f32 %v9409_v28, %v10519_v14  ;;  %v10992_v63 = vld [vmem:[%s14027_s20 + $0x28] sm:$0xff] }
 0x122   : > { %v9413_v5 = vpop.eup %9412  ;;  %v1260_v18 = vadd.f32 1.0, %v9411_v12  ;;  %9438 = vrcp.f32 %v1261_v1 }
 0x123   : > { %v9415_v29 = vpop.eup %9414  ;;  %v10683_v10 = vmul.f32 %v9413_v5, %v10522_v16  ;;  %14012 = vst [vmem:[#allocation20_spill] sm:$0xff] %v10686_v11  ;;  %v643_v5 = vld [vmem:[%s14027_s20 + $0x8] sm:$0xff] }
 0x124   : > { %v9417_v61 = vpop.eup %9416  ;;  %9440 = vrcp.f32 %v1260_v18  ;;  %v1263_v0 = vadd.f32 1.0, %v9415_v29  ;;  %v2550_v18 = vld [vmem:[#allocation2 + $0xf] sm:$0xff] }
 0x125   : > { %14011 = vst [vmem:[#allocation19_spill] sm:$0xff] %v10683_v10  ;;  %v9419_v15 = vpop.eup %9418  ;;  %8743 = vmatprep.mubr.msk.f32.mxu0 %vm603_vm1, %v10683_v10  ;;  %v10696_v14 = vmul.f32 %v9417_v61, %v10535_v36  ;;  %v2614_v29 = vld [vmem:[#allocation2 + $0x8] sm:$0xff]  ;;  %v2582_v61 = vmul.f32 %v2550_v18, %v643_v5 }
 0x126   : > { %v9421_v17 = vpop.eup %9420  ;;  %v1262_v31 = vadd.f32 1.0, %v9419_v15  ;;  %8744 = vmatmul.mubr.msk.f32.gmra.mxu0 %vm603_vm1, %v10686_v11  ;;  %9442 = vrcp.f32 %v1263_v0  ;;  %8769 = vmatprep.mubr.msk.f32.mxu1 %vm603_vm1, %v2614_v29  ;;  %v2615_v0 = vld [vmem:[#allocation2 + $0x10] sm:$0xff] }
 0x127   : > { %v9423_v19 = vpop.eup %9422  ;;  %v10693_v16 = vmul.f32 %v9421_v17, %v10543_v48  ;;  %14014 = vst [vmem:[#allocation22_spill] sm:$0xff] %v10696_v14  ;;  %8770 = vmatmul.mubr.msk.f32.vlgmr.msra.gmra.mxu1 %vm603_vm1, %v2615_v0  ;;  %v3353_v15 = vld [vmem:[%s13917_s12 + $0x10] sm:$0xff]  ;;  %v3771_v17 = vld [vmem:[%s13917_s12 + $0x18] sm:$0xff] }
 0x128   : > { %v9425_v35 = vpop.eup %9424  ;;  %9444 = vrcp.f32 %v1262_v31  ;;  %v1265_v37 = vadd.f32 1.0, %v9423_v19  ;;  %8867 = vmatprep.subr.mxu1 %v3353_v15  ;;  %v4157_v31 = vld [vmem:[%s13917_s12 + $0x20] sm:$0xff] }
 0x129   : > { %14013 = vst [vmem:[#allocation21_spill] sm:$0xff] %v10693_v16  ;;  %v9427_v40 = vpop.eup %9426  ;;  %8746 = vmatprep.mubr.msk.f32.mxu0 %vm603_vm1, %v10693_v16  ;;  %v10706_v36 = vmul.f32 %v9425_v35, %v10561_v27  ;;  %8868 = vmatpush3.msra.mxu1 %v3353_v15  ;;  %v10787_v19 = vld [vmem:[%s13915_s10] ss:$0 sm:$0xff] }
 0x12a   : > { %v9429_v38 = vpop.eup %9428  ;;  %v1264_v42 = vadd.f32 1.0, %v9427_v40  ;;  %8747 = vmatmul.mubr.msk.f32.gmra.mxu0 %vm603_vm1, %v10696_v14  ;;  %9446 = vrcp.f32 %v1265_v37  ;;  %8967 = vmatprep.subr.mxu1 %v4157_v31  ;;  %v10792_v37 = vld [vmem:[%s13916_s11] ss:$0 sm:$0xff] }
 0x12b   : > { %v9431_v25 = vpop.eup %9430  ;;  %v10703_v48 = vmul.f32 %v9429_v38, %v10564_v56  ;;  %14016 = vst [vmem:[#allocation24_spill] sm:$0xff] %v10706_v36 }
 0x12c   : > { %v9433_v43 = vpop.eup %9432  ;;  %9448 = vrcp.f32 %v1264_v42  ;;  %v1267_v33 = vadd.f32 1.0, %v9431_v25 }
 0x12d   : > { %14015 = vst [vmem:[#allocation23_spill] sm:$0xff] %v10703_v48  ;;  %v9435_v4 = vpop.eup %9434  ;;  %8749 = vmatprep.mubr.msk.f32.mxu0 %vm603_vm1, %v10703_v48  ;;  %v10716_v57 = vmul.f32 %v9433_v43, %v10577_v6 }
 0x12e   : > { %v9437_v47 = vpop.eup %9436  ;;  %9450 = vrcp.f32 %v1267_v33  ;;  %v1266_v39 = vadd.f32 1.0, %v9435_v4  ;;  %8750 = vmatmul.mubr.msk.f32.gmra.mxu0 %vm603_vm1, %v10706_v36 }
 0x12f   : > { %v10713_v56 = vmul.f32 %v9437_v47, %v10588_v60  ;;  %v9439_v53 = vpop.eup %9438  ;;  %14018 = vst [vmem:[#allocation26_spill] sm:$0xff] %v10716_v57 }
 0x130   : > { %9452 = vrcp.f32 %v1266_v39  ;;  %v10726_v49 = vmul.f32 %v9439_v53, %v10596_v22 }
 0x131   : > { %14017 = vst [vmem:[#allocation25_spill] sm:$0xff] %v10713_v56  ;;  %v9441_v27 = vpop.eup %9440  ;;  %8752 = vmatprep.mubr.msk.f32.mxu0 %vm603_vm1, %v10713_v56 }
 0x132   : > { %v10721_v58 = vmul.f32 %v9441_v27, %v10605_v8  ;;  %8753 = vmatmul.mubr.msk.f32.gmra.mxu0 %vm603_vm1, %v10716_v57  ;;  %14020 = vst [vmem:[#allocation28_spill] sm:$0xff] %v10726_v49 }
 0x133   : > { %v9443_v59 = vpop.eup %9442 }
 0x134   : > { %14019 = vst [vmem:[#allocation27_spill] sm:$0xff] %v10721_v58  ;;  %8755 = vmatprep.mubr.msk.f32.mxu0 %vm603_vm1, %v10721_v58  ;;  %v10736_v8 = vmul.f32 %v9443_v59, %v10614_v26 }
 0x135   : > { %v9445_v6 = vpop.eup %9444 }
 0x136   : > { %v10731_v60 = vmul.f32 %v9445_v6, %v10626_v2  ;;  %8756 = vmatmul.mubr.msk.f32.gmra.mxu0 %vm603_vm1, %v10726_v49  ;;  %14022 = vst [vmem:[#allocation30_spill] sm:$0xff] %v10736_v8 }
 0x137   : > { %v9447_v41 = vpop.eup %9446 }
 0x138   : > { %14021 = vst [vmem:[#allocation29_spill] sm:$0xff] %v10731_v60  ;;  %8758 = vmatprep.mubr.msk.f32.mxu0 %vm603_vm1, %v10731_v60  ;;  %v10746_v2 = vmul.f32 %v9447_v41, %v10631_v7  ;;  %v642_v7 = vld [vmem:[%s14027_s20] sm:$0xff] }
 0x139   : > { %v9449_v52 = vpop.eup %9448 }
 0x13a   : > { %v10741_v22 = vmul.f32 %v9449_v52, %v10645_v20  ;;  %8759 = vmatmul.mubr.msk.f32.gmra.mxu0 %vm603_vm1, %v10736_v8  ;;  %14024 = vst [vmem:[#allocation32_spill] sm:$0xff] %v10746_v2  ;;  %v2549_v20 = vld [vmem:[#allocation2 + $0x7] sm:$0xff] }
 0x13b   : > { %v9451_v28 = vpop.eup %9450 }
 0x13c   : > { %14023 = vst [vmem:[#allocation31_spill] sm:$0xff] %v10741_v22  ;;  %8761 = vmatprep.mubr.msk.f32.mxu0 %vm603_vm1, %v10741_v22  ;;  %v10751_v26 = vmul.f32 %v9451_v28, %v10658_v44  ;;  %v2613_v44 = vld [vmem:[%s13917_s12] sm:$0xff] }
 0x13d   : > { %v9453_v1 = vpop.eup %9452  ;;  %8817 = vmatprep.subr.mxu0 %v2613_v44 }
 0x13e   : > { %14025 = vst [vmem:[#allocation33_spill] sm:$0xff] %v10751_v26  ;;  %v10754_v12 = vmul.f32 %v9453_v1, %v10664_v50  ;;  %8762 = vmatmul.mubr.msk.f32.gmra.mxu0 %vm603_vm1, %v10746_v2  ;;  %v2581_v50 = vmul.f32 %v2549_v20, %v642_v7 }
 0x13f   : > { %8818 = vmatpush3.msra.mxu0 %v2613_v44 }
 0x140   : > { %14026 = vst [vmem:[#allocation34_spill] sm:$0xff] %v10754_v12  ;;  %8764 = vmatprep.mubr.msk.f32.mxu0 %vm603_vm1, %v10754_v12  ;;  %8917 = vmatprep.subr.mxu0 %v3771_v17 }
 0x142   : > { %8765 = vmatmul.mubr.msk.f32.gmra.mxu0 %vm603_vm1, %v10751_v26 }
 0x143   : > { %8819 = vmatprep.mubr.msk.f32.mxu0 %vm603_vm1, %v2581_v50 }
 0x146   : > { %8820 = vmatmul.mubr.msk.f32.vlgmr.msra.gmra.mxu0 %vm603_vm1, %v2582_v61 }
 0x147   : > { %8918 = vmatpush3.msra.mxu0 %v3771_v17 }
 0x1c4   : > { %v8721_v35 = vpop.f32.mrf.mxu0 }
 0x1c5   : > { %v2223_v40 = vmul.f32 %v8721_v35, %v10787_v19 }
 0x1c6   : > { %v2056_v38 = vpop.f32.mrf.mxu0 }
 0x1c7   : > { %v10796_v42 = vadd.f32 %v10792_v37, %v2223_v40  ;;  %v2222_v25 = vmul.f32 %v10787_v19, %v2056_v38 }
 0x1c8   : > { %v8724_v43 = vpop.f32.mrf.mxu0 }
 0x1c9   : > { %v7694_v33 = vmul.f32 -1.442695, %v10796_v42  ;;  %v10801_v4 = vadd.f32 %v10792_v37, %v2222_v25  ;;  %v2225_v47 = vmul.f32 %v8724_v43, %v10787_v19 }
 0x1ca   : > { %v2066_v39 = vpop.f32.mrf.mxu0 }
 0x1cb   : > { %9454 = vpow2.f32 %v7694_v33  ;;  %v7693_v53 = vmul.f32 -1.442695, %v10801_v4  ;;  %v10806_v27 = vadd.f32 %v10792_v37, %v2225_v47  ;;  %v2224_v59 = vmul.f32 %v10787_v19, %v2066_v39 }
 0x1cc   : > { %v8727_v6 = vpop.f32.mrf.mxu0 }
 0x1cd   : > { %9456 = vpow2.f32 %v7693_v53  ;;  %v7696_v41 = vmul.f32 -1.442695, %v10806_v27  ;;  %v10811_v52 = vadd.f32 %v10792_v37, %v2224_v59  ;;  %v2227_v28 = vmul.f32 %v8727_v6, %v10787_v19  ;;  %v10839_v53 = vpop.f32.mrf.mxu1 }
 0x1ce   : > { %v2076_v1 = vpop.f32.mrf.mxu0  ;;  %14028 = vst [vmem:[#allocation35_spill] sm:$0xff] %v10839_v53 }
 0x1cf   : > { %9458 = vpow2.f32 %v7696_v41  ;;  %v7695_v7 = vmul.f32 -1.442695, %v10811_v52  ;;  %v10816_v20 = vadd.f32 %v10792_v37, %v2227_v28  ;;  %v2226_v44 = vmul.f32 %v10787_v19, %v2076_v1 }
 0x1d0   : > { %v8730_v50 = vpop.f32.mrf.mxu0 }
 0x1d1   : > { %9460 = vpow2.f32 %v7695_v7  ;;  %v7698_v5 = vmul.f32 -1.442695, %v10816_v20  ;;  %v10821_v18 = vadd.f32 %v10792_v37, %v2226_v44  ;;  %v2229_v29 = vmul.f32 %v8730_v50, %v10787_v19 }
 0x1d2   : > { %v2086_v61 = vpop.f32.mrf.mxu0 }
 0x1d3   : > { %9462 = vpow2.f32 %v7698_v5  ;;  %v7697_v0 = vmul.f32 -1.442695, %v10821_v18  ;;  %v10826_v15 = vadd.f32 %v10792_v37, %v2229_v29  ;;  %v2228_v17 = vmul.f32 %v10787_v19, %v2086_v61 }
 0x1d5   : > { %9464 = vpow2.f32 %v7697_v0  ;;  %v7700_v31 = vmul.f32 -1.442695, %v10826_v15  ;;  %v10831_v35 = vadd.f32 %v10792_v37, %v2228_v17  ;;  %v8733_v40 = vpop.f32.mrf.mxu0  ;;  %v10851_v17 = vpop.f32.mrf.mxu1 }
 0x1d6   : > { %v2231_v38 = vmul.f32 %v8733_v40, %v10787_v19  ;;  %14029 = vst [vmem:[#allocation36_spill] sm:$0xff] %v10851_v17 }
 0x1d7   : > { %9466 = vpow2.f32 %v7700_v31  ;;  %v7699_v25 = vmul.f32 -1.442695, %v10831_v35  ;;  %v2096_v43 = vpop.f32.mrf.mxu0 }
 0x1d8   : > { %v9455_v33 = vpop.eup %9454  ;;  %v10836_v47 = vadd.f32 %v10792_v37, %v2231_v38  ;;  %v2230_v39 = vmul.f32 %v10787_v19, %v2096_v43 }
 0x1d9   : > { %v2390_v59 = vadd.f32 1.0, %v9455_v33  ;;  %9468 = vpow2.f32 %v7699_v25  ;;  %v8736_v6 = vpop.f32.mrf.mxu0 }
 0x1da   : > { %v9457_v41 = vpop.eup %9456  ;;  %v7702_v28 = vmul.f32 -1.442695, %v10836_v47  ;;  %v10843_v1 = vadd.f32 %v10792_v37, %v2230_v39  ;;  %v2233_v7 = vmul.f32 %v8736_v6, %v10787_v19 }
 0x1db   : > { %9470 = vrcp.f32 %v2390_v59  ;;  %v2389_v44 = vadd.f32 1.0, %v9457_v41  ;;  %v2106_v50 = vpop.f32.mrf.mxu0 }
 0x1dc   : > { %v9459_v5 = vpop.eup %9458  ;;  %9472 = vpow2.f32 %v7702_v28  ;;  %v7701_v29 = vmul.f32 -1.442695, %v10843_v1  ;;  %v10848_v61 = vadd.f32 %v10792_v37, %v2233_v7  ;;  %v2232_v0 = vmul.f32 %v10787_v19, %v2106_v50 }
 0x1dd   : > { %9474 = vrcp.f32 %v2389_v44  ;;  %v2392_v31 = vadd.f32 1.0, %v9459_v5  ;;  %v8739_v40 = vpop.f32.mrf.mxu0  ;;  %v10863_v44 = vpop.f32.mrf.mxu1 }
 0x1de   : > { %v9461_v38 = vpop.eup %9460  ;;  %9476 = vpow2.f32 %v7701_v29  ;;  %v7704_v25 = vmul.f32 -1.442695, %v10848_v61  ;;  %v10855_v43 = vadd.f32 %v10792_v37, %v2232_v0  ;;  %v2235_v33 = vmul.f32 %v8739_v40, %v10787_v19  ;;  %14030 = vst [vmem:[#allocation37_spill] sm:$0xff] %v10863_v44 }
 0x1df   : > { %9478 = vrcp.f32 %v2392_v31  ;;  %v2391_v39 = vadd.f32 1.0, %v9461_v38  ;;  %v2116_v59 = vpop.f32.mrf.mxu0 }
 0x1e0   : > { %v9463_v6 = vpop.eup %9462  ;;  %9480 = vpow2.f32 %v7704_v25  ;;  %v7703_v41 = vmul.f32 -1.442695, %v10855_v43  ;;  %v10860_v28 = vadd.f32 %v10792_v37, %v2235_v33  ;;  %v2234_v7 = vmul.f32 %v10787_v19, %v2116_v59 }
 0x1e1   : > { %9482 = vrcp.f32 %v2391_v39  ;;  %v2394_v50 = vadd.f32 1.0, %v9463_v6  ;;  %v8742_v5 = vpop.f32.mrf.mxu0 }
 0x1e2   : > { %v9465_v29 = vpop.eup %9464  ;;  %9484 = vpow2.f32 %v7703_v41  ;;  %v7706_v0 = vmul.f32 -1.442695, %v10860_v28  ;;  %v10867_v31 = vadd.f32 %v10792_v37, %v2234_v7  ;;  %v2237_v40 = vmul.f32 %v8742_v5, %v10787_v19  ;;  %v10875_v41 = vpop.f32.mrf.mxu1 }
 0x1e3   : > { %9486 = vrcp.f32 %v2394_v50  ;;  %v2393_v38 = vadd.f32 1.0, %v9465_v29  ;;  %v2126_v25 = vpop.f32.mrf.mxu0  ;;  %14031 = vst [vmem:[#allocation38_spill] sm:$0xff] %v10875_v41 }
 0x1e4   : > { %v9467_v33 = vpop.eup %9466  ;;  %9488 = vpow2.f32 %v7706_v0  ;;  %v7705_v59 = vmul.f32 -1.442695, %v10867_v31  ;;  %v10872_v39 = vadd.f32 %v10792_v37, %v2237_v40  ;;  %v2236_v6 = vmul.f32 %v10787_v19, %v2126_v25  ;;  %v10883_v22 = vpop.f32.mrf.mxu1 }
 0x1e5   : > { %9490 = vrcp.f32 %v2393_v38  ;;  %v2396_v26 = vadd.f32 1.0, %v9467_v33  ;;  %14032 = vst [vmem:[#allocation39_spill] sm:$0xff] %v10883_v22 }
 0x1e6   : > { %v9469_v7 = vpop.eup %9468  ;;  %9492 = vpow2.f32 %v7705_v59  ;;  %v7708_v5 = vmul.f32 -1.442695, %v10872_v39  ;;  %v10879_v50 = vadd.f32 %v10792_v37, %v2236_v6  ;;  %v8745_v29 = vpop.f32.mrf.mxu0 }
 0x1e7   : > { %9494 = vrcp.f32 %v2396_v26  ;;  %v2395_v0 = vadd.f32 1.0, %v9469_v7  ;;  %v2239_v12 = vmul.f32 %v8745_v29, %v10787_v19 }
 0x1e8   : > { %v9471_v40 = vpop.eup %9470  ;;  %9496 = vpow2.f32 %v7708_v5  ;;  %v7707_v25 = vmul.f32 -1.442695, %v10879_v50  ;;  %v2136_v2 = vpop.f32.mrf.mxu0 }
 0x1e9   : > { %v9473_v38 = vpop.eup %9472  ;;  %v2486_v33 = vmul.f32 %v9471_v40, %v10796_v42  ;;  %9498 = vrcp.f32 %v2395_v0  ;;  %v10887_v59 = vadd.f32 %v10792_v37, %v2239_v12  ;;  %v2238_v6 = vmul.f32 %v10787_v19, %v2136_v2  ;;  %v10897_v40 = vpop.f32.mrf.mxu1 }
 0x1ea   : > { %v9475_v26 = vpop.eup %9474  ;;  %v2398_v7 = vadd.f32 1.0, %v9473_v38  ;;  %9500 = vpow2.f32 %v7707_v25  ;;  %v8748_v29 = vpop.f32.mrf.mxu0  ;;  %14033 = vst [vmem:[#allocation40_spill] sm:$0xff] %v10897_v40 }
 0x1eb   : > { %v9477_v8 = vpop.eup %9476  ;;  %2518 = vst.msk [vmem:[#allocation2 + $0x20] sm:$0xff] %vm603_vm1, %v2486_v33  ;;  %v2485_v5 = vmul.f32 %v9475_v26, %v10801_v4  ;;  %v7710_v60 = vmul.f32 -1.442695, %v10887_v59  ;;  %v10894_v49 = vadd.f32 %v10792_v37, %v2238_v6  ;;  %v2241_v42 = vmul.f32 %v8748_v29, %v10787_v19 }
 0x1ec   : > { %v9479_v12 = vpop.eup %9478  ;;  %9502 = vrcp.f32 %v2398_v7  ;;  %v2397_v0 = vadd.f32 1.0, %v9477_v8  ;;  %v2146_v2 = vpop.f32.mrf.mxu0 }
 0x1ed   : > { %v9481_v25 = vpop.eup %9480  ;;  %2517 = vst.msk [vmem:[#allocation2 + $0x18] sm:$0xff] %vm603_vm1, %v2485_v5  ;;  %v2488_v38 = vmul.f32 %v9479_v12, %v10806_v27  ;;  %9504 = vpow2.f32 %v7710_v60  ;;  %v7709_v4 = vmul.f32 -1.442695, %v10894_v49  ;;  %v10903_v33 = vadd.f32 %v10792_v37, %v2241_v42 }
 0x1ee   : > { %v9483_v6 = vpop.eup %9482  ;;  %9506 = vrcp.f32 %v2397_v0  ;;  %v2400_v26 = vadd.f32 1.0, %v9481_v25  ;;  %v2240_v7 = vmul.f32 %v10787_v19, %v2146_v2  ;;  %v8751_v8 = vpop.f32.mrf.mxu0 }
 0x1ef   : > { %v9485_v29 = vpop.eup %9484  ;;  %2520 = vst.msk [vmem:[#allocation2 + $0x30] sm:$0xff] %vm603_vm1, %v2488_v38  ;;  %v2487_v58 = vmul.f32 %v9483_v6, %v10811_v52  ;;  %9508 = vpow2.f32 %v7709_v4  ;;  %v7712_v27 = vmul.f32 -1.442695, %v10903_v33  ;;  %v2243_v60 = vmul.f32 %v8751_v8, %v10787_v19  ;;  %v10913_v25 = vpop.f32.mrf.mxu1 }
 0x1f0   : > { %v9487_v5 = vpop.eup %9486  ;;  %9510 = vrcp.f32 %v2400_v26  ;;  %v2399_v42 = vadd.f32 1.0, %v9485_v29  ;;  %v10911_v12 = vadd.f32 %v10792_v37, %v2240_v7  ;;  %v2156_v0 = vpop.f32.mrf.mxu0  ;;  %14034 = vst [vmem:[#allocation41_spill] sm:$0xff] %v10913_v25 }
 0x1f1   : > { %v9489_v2 = vpop.eup %9488  ;;  %2519 = vst.msk [vmem:[#allocation2 + $0x28] sm:$0xff] %vm603_vm1, %v2487_v58  ;;  %v2490_v38 = vmul.f32 %v9487_v5, %v10816_v20  ;;  %9512 = vpow2.f32 %v7712_v27  ;;  %v10918_v52 = vadd.f32 %v10792_v37, %v2243_v60  ;;  %v2242_v4 = vmul.f32 %v10787_v19, %v2156_v0  ;;  %v10932_v60 = vld [vmem:[%s14027_s20 + $0x10] sm:$0xff]  ;;  %v10937_v5 = vld [vmem:[%s13917_s12 + $0x28] sm:$0xff] }
 0x1f2   : > { %v9491_v6 = vpop.eup %9490  ;;  %9514 = vrcp.f32 %v2399_v42  ;;  %v2402_v26 = vadd.f32 1.0, %v9489_v2  ;;  %v7711_v7 = vmul.f32 -1.442695, %v10911_v12  ;;  %v8754_v8 = vpop.f32.mrf.mxu0  ;;  %9017 = vmatprep.subr.mxu0 %v10937_v5 }
 0x1f3   : > { %v9493_v29 = vpop.eup %9492  ;;  %2522 = vst.msk [vmem:[#allocation2 + $0x40] sm:$0xff] %vm603_vm1, %v2490_v38  ;;  %v2489_v57 = vmul.f32 %v9491_v6, %v10821_v18  ;;  %v7714_v58 = vmul.f32 -1.442695, %v10918_v52  ;;  %v10926_v20 = vadd.f32 %v10792_v37, %v2242_v4  ;;  %v2245_v27 = vmul.f32 %v8754_v8, %v10787_v19  ;;  %v10941_v4 = vpop.f32.mrf.mxu1 }
 0x1f4   : > { %v9495_v42 = vpop.eup %9494  ;;  %9516 = vrcp.f32 %v2402_v26  ;;  %v2401_v18 = vadd.f32 1.0, %v9493_v29  ;;  %v2166_v0 = vpop.f32.mrf.mxu0  ;;  %v2616_v2 = vld [vmem:[#allocation2 + $0x18] sm:$0xff]  ;;  %14035 = vst [vmem:[#allocation42_spill] sm:$0xff] %v10941_v4  ;;  %v2617_v26 = vld [vmem:[#allocation2 + $0x20] sm:$0xff] }
 0x1f5   : > { %v10939_v38 = vld [vmem:[#allocation2 + $0x17] sm:$0xff]  ;;  %v9497_v6 = vpop.eup %9496  ;;  %2521 = vst.msk [vmem:[#allocation2 + $0x38] sm:$0xff] %vm603_vm1, %v2489_v57  ;;  %v2492_v8 = vmul.f32 %v9495_v42, %v10826_v15  ;;  %9518 = vpow2.f32 %v7711_v7  ;;  %v7713_v36 = vmul.f32 -1.442695, %v10926_v20  ;;  %v10948_v56 = vadd.f32 %v10792_v37, %v2245_v27  ;;  %8772 = vmatprep.mubr.msk.f32.mxu1 %vm603_vm1, %v2616_v2  ;;  %v10956_v14 = vld [vmem:[#allocation2 + $0x1f] sm:$0xff] }
 0x1f6   : > { %v10954_v29 = vld [vmem:[%s14027_s20 + $0x18] sm:$0xff]  ;;  %v9499_v48 = vpop.eup %9498  ;;  %9520 = vrcp.f32 %v2401_v18  ;;  %v2404_v57 = vadd.f32 1.0, %v9497_v6  ;;  %v2244_v15 = vmul.f32 %v10787_v19, %v2166_v0  ;;  %v8757_v7 = vpop.f32.mrf.mxu0  ;;  %8773 = vmatmul.mubr.msk.f32.gmra.mxu1 %vm603_vm1, %v2617_v26  ;;  %v2583_v27 = vmul.f32 %v10939_v38, %v10932_v60  ;;  %v10969_v18 = vld [vmem:[%s14027_s20 + $0x20] sm:$0xff] }
 0x1f7   : > { %v9501_v42 = vpop.eup %9500  ;;  %2524 = vst.msk [vmem:[#allocation2 + $0x50] sm:$0xff] %vm603_vm1, %v2492_v8  ;;  %v2491_v2 = vmul.f32 %v9499_v48, %v10831_v35  ;;  %9522 = vpow2.f32 %v7714_v58  ;;  %v7716_v11 = vmul.f32 -1.442695, %v10948_v56  ;;  %v2247_v16 = vmul.f32 %v8757_v7, %v10787_v19  ;;  %v10979_v8 = vpop.f32.mrf.mxu1 }
 0x1f8   : > { %9524 = vrcp.f32 %v2404_v57  ;;  %v2403_v0 = vadd.f32 1.0, %v9501_v42  ;;  %v10972_v6 = vadd.f32 %v10792_v37, %v2244_v15  ;;  %v2176_v26 = vpop.f32.mrf.mxu0  ;;  %8822 = vmatprep.mubr.msk.f32.mxu0 %vm603_vm1, %v2583_v27  ;;  %v2584_v48 = vmul.f32 %v10956_v14, %v10954_v29  ;;  %v2618_v35 = vld [vmem:[#allocation2 + $0x28] sm:$0xff]  ;;  %14036 = vst [vmem:[#allocation43_spill] sm:$0xff] %v10979_v8  ;;  %v2619_v27 = vld [vmem:[#allocation2 + $0x30] sm:$0xff] }
 0x1f9   : > { %v10977_v58 = vld [vmem:[#allocation2 + $0x27] sm:$0xff]  ;;  %v9503_v7 = vpop.eup %9502  ;;  %2523 = vst.msk [vmem:[#allocation2 + $0x48] sm:$0xff] %vm603_vm1, %v2491_v2  ;;  %9526 = vpow2.f32 %v7713_v36  ;;  %v10982_v57 = vld [vmem:[#allocation2 + $0x2f] sm:$0xff]  ;;  %v10985_v15 = vadd.f32 %v10792_v37, %v2247_v16  ;;  %v2246_v42 = vmul.f32 %v10787_v19, %v2176_v26  ;;  %8775 = vmatprep.mubr.msk.f32.mxu1 %vm603_vm1, %v2618_v35  ;;  %v11017_v13 = vpop.f32.mrf.mxu1 }
 0x1fa   : > { %v9505_v10 = vpop.eup %9504  ;;  %v2494_v46 = vmul.f32 %v9503_v7, %v10836_v47  ;;  %9528 = vrcp.f32 %v2403_v0  ;;  %v7715_v36 = vmul.f32 -1.442695, %v10972_v6  ;;  %v8760_v2 = vpop.f32.mrf.mxu0  ;;  %8823 = vmatmul.mubr.msk.f32.gmra.mxu0 %vm603_vm1, %v2584_v48  ;;  %8776 = vmatmul.mubr.msk.f32.gmra.mxu1 %vm603_vm1, %v2619_v27  ;;  %v2585_v16 = vmul.f32 %v10977_v58, %v10969_v18  ;;  %v11007_v47 = vld [vmem:[%s14027_s20 + $0x30] sm:$0xff]  ;;  %14037 = vst [vmem:[#allocation44_spill] sm:$0xff] %v11017_v13 }
 0x1fb   : > { %v9507_v26 = vpop.eup %9506  ;;  %v2406_v35 = vadd.f32 1.0, %v9505_v10  ;;  %9530 = vpow2.f32 %v7716_v11  ;;  %v7718_v62 = vmul.f32 -1.442695, %v10985_v15  ;;  %v11002_v45 = vadd.f32 %v10792_v37, %v2246_v42 }
 0x1fc   : > { %v9509_v0 = vpop.eup %9508  ;;  %2526 = vst.msk [vmem:[#allocation2 + $0x60] sm:$0xff] %vm603_vm1, %v2494_v46  ;;  %v2493_v48 = vmul.f32 %v9507_v26, %v10843_v1  ;;  %9532 = vpow2.f32 %v7715_v36  ;;  %v2249_v7 = vmul.f32 %v8760_v2, %v10787_v19  ;;  %v2186_v10 = vpop.f32.mrf.mxu0  ;;  %8825 = vmatprep.mubr.msk.f32.mxu0 %vm603_vm1, %v2585_v16  ;;  %v2586_v11 = vmul.f32 %v10982_v57, %v10992_v63  ;;  %v2620_v42 = vld [vmem:[#allocation2 + $0x38] sm:$0xff]  ;;  %v2621_v36 = vld [vmem:[#allocation2 + $0x40] sm:$0xff] }
 0x1fd   : > { %v11015_v27 = vld [vmem:[#allocation2 + $0x37] sm:$0xff]  ;;  %v9511_v30 = vpop.eup %9510  ;;  %9534 = vrcp.f32 %v2406_v35  ;;  %v2405_v54 = vadd.f32 1.0, %v9509_v0  ;;  %v7717_v46 = vmul.f32 -1.442695, %v11002_v45  ;;  %v2248_v1 = vmul.f32 %v10787_v19, %v2186_v10  ;;  %8778 = vmatprep.mubr.msk.f32.mxu1 %vm603_vm1, %v2620_v42  ;;  %v11027_v16 = vld [vmem:[#allocation2 + $0x3f] sm:$0xff] }
 0x1fe   : > { %v11025_v2 = vld [vmem:[%s14027_s20 + $0x38] sm:$0xff]  ;;  %v9513_v26 = vpop.eup %9512  ;;  %2525 = vst.msk [vmem:[#allocation2 + $0x58] sm:$0xff] %vm603_vm1, %v2493_v48  ;;  %v2496_v35 = vmul.f32 %v9511_v30, %v10848_v61  ;;  %9536 = vpow2.f32 %v7718_v62  ;;  %v11032_v0 = vadd.f32 %v10792_v37, %v2249_v7  ;;  %v8763_v10 = vpop.f32.mrf.mxu0  ;;  %8826 = vmatmul.mubr.msk.f32.gmra.mxu0 %vm603_vm1, %v2586_v11  ;;  %8779 = vmatmul.mubr.msk.f32.gmra.mxu1 %vm603_vm1, %v2621_v36  ;;  %v11045_v62 = vld [vmem:[%s14027_s20 + $0x40] sm:$0xff]  ;;  %v11050_v61 = vld [vmem:[%s14027_s20 + $0x48] sm:$0xff] }
 0x1ff   : > { %v2587_v42 = vmul.f32 %v11015_v27, %v11007_v47  ;;  %v9515_v55 = vpop.eup %9514  ;;  %9538 = vrcp.f32 %v2405_v54  ;;  %v2408_v21 = vadd.f32 1.0, %v9513_v26  ;;  %v11039_v32 = vadd.f32 %v10792_v37, %v2248_v1 }
 0x200   : > { %v2251_v30 = vmul.f32 %v8763_v10, %v10787_v19  ;;  %2528 = vst.msk [vmem:[#allocation2 + $0x70] sm:$0xff] %vm603_vm1, %v2496_v35  ;;  %v2495_v54 = vmul.f32 %v9515_v55, %v10855_v43  ;;  %9540 = vpow2.f32 %v7717_v46  ;;  %v7720_v48 = vmul.f32 -1.442695, %v11032_v0  ;;  %v2196_v7 = vpop.f32.mrf.mxu0  ;;  %v2622_v1 = vld [vmem:[#allocation2 + $0x48] sm:$0xff]  ;;  %v11062_v10 = vpop.f32.mrf.mxu1  ;;  %v2623_v35 = vld [vmem:[#allocation2 + $0x50] sm:$0xff] }
 0x201   : > { %8828 = vmatprep.mubr.msk.f32.mxu0 %vm603_vm1, %v2587_v42  ;;  %v2588_v11 = vmul.f32 %v11027_v16, %v11025_v2  ;;  %v11058_v36 = vld [vmem:[#allocation2 + $0x47] sm:$0xff]  ;;  %v11060_v26 = vld [vmem:[#allocation2 + $0x4f] sm:$0xff]  ;;  %14038 = vst [vmem:[#allocation45_spill] sm:$0xff] %v11062_v10  ;;  %v9517_v9 = vpop.eup %9516  ;;  %9542 = vrcp.f32 %v2408_v21  ;;  %v7719_v55 = vmul.f32 -1.442695, %v11039_v32  ;;  %v2250_v46 = vmul.f32 %v10787_v19, %v2196_v7  ;;  %8781 = vmatprep.mubr.msk.f32.mxu1 %vm603_vm1, %v2622_v1 }
 0x202   : > { %v11066_v43 = vadd.f32 %v10792_v37, %v2251_v30  ;;  %v9519_v42 = vpop.eup %9518  ;;  %2527 = vst.msk [vmem:[#allocation2 + $0x68] sm:$0xff] %vm603_vm1, %v2495_v54  ;;  %v2498_v3 = vmul.f32 %v9517_v9, %v10860_v28  ;;  %9544 = vpow2.f32 %v7720_v48  ;;  %v8766_v34 = vpop.f32.mrf.mxu0  ;;  %8782 = vmatmul.mubr.msk.f32.gmra.mxu1 %vm603_vm1, %v2623_v35  ;;  %v2589_v21 = vmul.f32 %v11058_v36, %v11045_v62  ;;  %v11085_v9 = vld [vmem:[%s14027_s20 + $0x50] sm:$0xff] }
 0x203   : > { %8829 = vmatmul.mubr.msk.f32.gmra.mxu0 %vm603_vm1, %v2588_v11  ;;  %v2590_v30 = vmul.f32 %v11060_v26, %v11050_v61  ;;  %v9521_v7 = vpop.eup %9520  ;;  %v2407_v1 = vadd.f32 1.0, %v9519_v42  ;;  %9546 = vpow2.f32 %v7719_v55  ;;  %v11080_v54 = vadd.f32 %v10792_v37, %v2250_v46  ;;  %v11094_v55 = vld [vmem:[%s14027_s20 + $0x58] sm:$0xff]  ;;  %v11096_v46 = vpop.f32.mrf.mxu1 }
 0x204   : > { %v7722_v51 = vmul.f32 -1.442695, %v11066_v43  ;;  %v9523_v28 = vpop.eup %9522  ;;  %2530 = vst.msk [vmem:[#allocation2 + $0x80] sm:$0xff] %vm603_vm1, %v2498_v3  ;;  %v2497_v48 = vmul.f32 %v9521_v7, %v10867_v31  ;;  %v2253_v11 = vmul.f32 %v8766_v34, %v10787_v19  ;;  %v2206_v35 = vpop.f32.mrf.mxu0  ;;  %8831 = vmatprep.mubr.msk.f32.mxu0 %vm603_vm1, %v2589_v21  ;;  %14039 = vst [vmem:[#allocation46_spill] sm:$0xff] %v11096_v46 }
 0x205   : > { %v9525_v42 = vpop.eup %9524  ;;  %9548 = vrcp.f32 %v2407_v1  ;;  %v2410_v23 = vadd.f32 1.0, %v9523_v28  ;;  %v7721_v24 = vmul.f32 -1.442695, %v11080_v54  ;;  %v2252_v3 = vmul.f32 %v10787_v19, %v2206_v35  ;;  %v2624_v31 = vld [vmem:[#allocation2 + $0x58] sm:$0xff]  ;;  %v2625_v1 = vld [vmem:[#allocation2 + $0x60] sm:$0xff] }
 0x206   : > { %v11100_v7 = vld [vmem:[#allocation2 + $0x57] sm:$0xff]  ;;  %v11102_v34 = vld [vmem:[#allocation2 + $0x5f] sm:$0xff]  ;;  %v9527_v21 = vpop.eup %9526  ;;  %2529 = vst.msk [vmem:[#allocation2 + $0x78] sm:$0xff] %vm603_vm1, %v2497_v48  ;;  %v2500_v10 = vmul.f32 %v9525_v42, %v10872_v39  ;;  %9550 = vpow2.f32 %v7722_v51  ;;  %v11107_v46 = vadd.f32 %v10792_v37, %v2253_v11  ;;  %8784 = vmatprep.mubr.msk.f32.mxu1 %vm603_vm1, %v2624_v31  ;;  %v11138_v42 = vld [vmem:[%s14040_s2 + $0x8] sm:$0xff] }
 0x207   : > { %8832 = vmatmul.mubr.msk.f32.gmra.mxu0 %vm603_vm1, %v2590_v30  ;;  %v2591_v19 = vmul.f32 %v11100_v7, %v11085_v9  ;;  %v11113_v28 = vld [vmem:[#allocation2 + $0x31] sm:$0xff]  ;;  %v9529_v35 = vpop.eup %9528  ;;  %9552 = vrcp.f32 %v2410_v23  ;;  %v2409_v13 = vadd.f32 1.0, %v9527_v21  ;;  %v11116_v48 = vadd.f32 %v10792_v37, %v2252_v3  ;;  %8785 = vmatmul.mubr.msk.f32.gmra.mxu1 %vm603_vm1, %v2625_v1  ;;  %v11124_v39 = vld [vmem:[%s14027_s20 + $0x60] sm:$0xff]  ;;  %v11129_v30 = vld [vmem:[%s14027_s20 + $0x68] sm:$0xff]  ;;  %v11140_v3 = vpop.f32.mrf.mxu1 }
 0x208   : > { %v2592_v51 = vmul.f32 %v11102_v34, %v11094_v55  ;;  %v9531_v23 = vpop.eup %9530  ;;  %2532 = vst.msk [vmem:[#allocation2 + $0x90] sm:$0xff] %vm603_vm1, %v2500_v10  ;;  %v2499_v37 = vmul.f32 %v9529_v35, %v10879_v50  ;;  %9554 = vpow2.f32 %v7721_v24  ;;  %v7724_v11 = vmul.f32 -1.442695, %v11107_v46  ;;  %14041 = vst [vmem:[#allocation47_spill] sm:$0xff] %v11140_v3 }
 0x209   : > { %8834 = vmatprep.mubr.msk.f32.mxu0 %vm603_vm1, %v2591_v19  ;;  %v9533_v31 = vpop.eup %9532  ;;  %9556 = vrcp.f32 %v2409_v13  ;;  %v2412_v21 = vadd.f32 1.0, %v9531_v23  ;;  %v7723_v1 = vmul.f32 -1.442695, %v11116_v48  ;;  %v2626_v10 = vld [vmem:[#allocation2 + $0x68] sm:$0xff]  ;;  %v11149_v50 = vmul.f32 %v11113_v28, %v11138_v42  ;;  %v2627_v13 = vld [vmem:[#allocation2 + $0x70] sm:$0xff] }
 0x20a   : > { %v11143_v8 = vld [vmem:[#allocation2 + $0x67] sm:$0xff]  ;;  %v11145_v24 = vld [vmem:[#allocation2 + $0x6f] sm:$0xff]  ;;  %v9535_v19 = vpop.eup %9534  ;;  %2531 = vst.msk [vmem:[#allocation2 + $0x88] sm:$0xff] %vm603_vm1, %v2499_v37  ;;  %v2411_v35 = vadd.f32 1.0, %v9533_v31  ;;  %9558 = vpow2.f32 %v7724_v11  ;;  %8787 = vmatprep.mubr.msk.f32.mxu1 %vm603_vm1, %v2626_v10  ;;  %v11171_v10 = vpop.f32.mrf.mxu1 }
 0x20b   : > { %14042 = vst [vmem:[#allocation48_spill] sm:$0xff] %v11149_v50  ;;  %8835 = vmatmul.mubr.msk.f32.gmra.mxu0 %vm603_vm1, %v2592_v51  ;;  %v2593_v23 = vmul.f32 %v11143_v8, %v11124_v39  ;;  %v2594_v3 = vmul.f32 %v11145_v24, %v11129_v30  ;;  %v9537_v4 = vpop.eup %9536  ;;  %v2502_v25 = vmul.f32 %v9535_v19, %v10887_v59  ;;  %9560 = vrcp.f32 %v2412_v21  ;;  %v11163_v37 = vld [vmem:[%s14027_s20 + $0x70] sm:$0xff]  ;;  %v11168_v51 = vld [vmem:[%s14027_s20 + $0x78] sm:$0xff] }
 0x20c   : > { %8788 = vmatmul.mubr.msk.f32.gmra.mxu1 %vm603_vm1, %v2627_v13  ;;  %v9539_v11 = vpop.eup %9538  ;;  %9562 = vrcp.f32 %v2411_v35  ;;  %v2414_v31 = vadd.f32 1.0, %v9537_v4  ;;  %14043 = vst [vmem:[#allocation49_spill] sm:$0xff] %v11171_v10  ;;  %v2629_v4 = vld [vmem:[#allocation2 + $0x80] sm:$0xff] }
 0x20d   : > { %8837 = vmatprep.mubr.msk.f32.mxu0 %vm603_vm1, %v2593_v23  ;;  %v9541_v59 = vpop.eup %9540  ;;  %2534 = vst.msk [vmem:[#allocation2 + $0xa0] sm:$0xff] %vm603_vm1, %v2502_v25  ;;  %v2501_v21 = vmul.f32 %v9539_v11, %v10894_v49  ;;  %9564 = vpow2.f32 %v7723_v1  ;;  %v2628_v19 = vld [vmem:[#allocation2 + $0x78] sm:$0xff]  ;;  %v11196_v23 = vld [vmem:[%s14027_s20 + $0x88] sm:$0xff] }
 0x20e   : > { %v11175_v13 = vld [vmem:[#allocation2 + $0x77] sm:$0xff]  ;;  %v11177_v50 = vld [vmem:[#allocation2 + $0x7f] sm:$0xff]  ;;  %v9543_v40 = vpop.eup %9542  ;;  %9566 = vrcp.f32 %v2414_v31  ;;  %v2413_v22 = vadd.f32 1.0, %v9541_v59  ;;  %8790 = vmatprep.mubr.msk.f32.mxu1 %vm603_vm1, %v2628_v19  ;;  %v11199_v59 = vpop.f32.mrf.mxu1 }
 0x20f   : > { %8838 = vmatmul.mubr.msk.f32.gmra.mxu0 %vm603_vm1, %v2594_v3  ;;  %v2595_v35 = vmul.f32 %v11175_v13, %v11163_v37  ;;  %v2596_v49 = vmul.f32 %v11177_v50, %v11168_v51  ;;  %v9545_v25 = vpop.eup %9544  ;;  %2533 = vst.msk [vmem:[#allocation2 + $0x98] sm:$0xff] %vm603_vm1, %v2501_v21  ;;  %v2504_v1 = vmul.f32 %v9543_v40, %v10903_v33  ;;  %v11191_v3 = vld [vmem:[%s14027_s20 + $0x80] sm:$0xff]  ;;  %14044 = vst [vmem:[#allocation50_spill] sm:$0xff] %v11199_v59 }
 0x210   : > { %8791 = vmatmul.mubr.msk.f32.gmra.mxu1 %vm603_vm1, %v2629_v4  ;;  %v9547_v11 = vpop.eup %9546  ;;  %9568 = vrcp.f32 %v2413_v22  ;;  %v2416_v31 = vadd.f32 1.0, %v9545_v25  ;;  %v2631_v22 = vld [vmem:[#allocation2 + $0x90] sm:$0xff] }
 0x211   : > { %8840 = vmatprep.mubr.msk.f32.mxu0 %vm603_vm1, %v2595_v35  ;;  %2536 = vst.msk [vmem:[#allocation2 + $0xb0] sm:$0xff] %vm603_vm1, %v2504_v1  ;;  %v2415_v40 = vadd.f32 1.0, %v9547_v11  ;;  %v2630_v33 = vld [vmem:[#allocation2 + $0x88] sm:$0xff] }
 0x212   : > { %v11202_v21 = vld [vmem:[#allocation2 + $0x87] sm:$0xff]  ;;  %v11204_v19 = vld [vmem:[#allocation2 + $0x8f] sm:$0xff]  ;;  %v9549_v4 = vpop.eup %9548  ;;  %9570 = vrcp.f32 %v2416_v31  ;;  %8793 = vmatprep.mubr.msk.f32.mxu1 %vm603_vm1, %v2630_v33  ;;  %v11223_v31 = vld [vmem:[%s14027_s20 + $0x98] sm:$0xff]  ;;  %v11225_v33 = vpop.f32.mrf.mxu1 }
 0x213   : > { %8841 = vmatmul.mubr.msk.f32.gmra.mxu0 %vm603_vm1, %v2596_v49  ;;  %v2597_v35 = vmul.f32 %v11202_v21, %v11191_v3  ;;  %v2598_v25 = vmul.f32 %v11204_v19, %v11196_v23  ;;  %v9551_v1 = vpop.eup %9550  ;;  %v2503_v11 = vmul.f32 %v9549_v4, %v10911_v12  ;;  %9572 = vrcp.f32 %v2415_v40  ;;  %v11218_v49 = vld [vmem:[%s14027_s20 + $0x90] sm:$0xff]  ;;  %14045 = vst [vmem:[#allocation51_spill] sm:$0xff] %v11225_v33 }
 0x214   : > { %8794 = vmatmul.mubr.msk.f32.gmra.mxu1 %vm603_vm1, %v2631_v22  ;;  %v9553_v59 = vpop.eup %9552  ;;  %v2418_v10 = vadd.f32 1.0, %v9551_v1 }
 0x215   : > { %8843 = vmatprep.mubr.msk.f32.mxu0 %vm603_vm1, %v2597_v35  ;;  %v9555_v12 = vpop.eup %9554  ;;  %2535 = vst.msk [vmem:[#allocation2 + $0xa8] sm:$0xff] %vm603_vm1, %v2503_v11  ;;  %v2506_v40 = vmul.f32 %v9553_v59, %v10918_v52  ;;  %v2633_v11 = vld [vmem:[#allocation2 + $0xa0] sm:$0xff] }
 0x216   : > { %v9557_v4 = vpop.eup %9556  ;;  %9574 = vrcp.f32 %v2418_v10  ;;  %v2417_v22 = vadd.f32 1.0, %v9555_v12  ;;  %v2632_v35 = vld [vmem:[#allocation2 + $0x98] sm:$0xff]  ;;  %v11242_v12 = vpop.f32.mrf.mxu1 }
 0x217   : > { %8844 = vmatmul.mubr.msk.f32.gmra.mxu0 %vm603_vm1, %v2598_v25  ;;  %v11230_v1 = vld [vmem:[#allocation2 + $0x97] sm:$0xff]  ;;  %v11232_v41 = vld [vmem:[#allocation2 + $0x9f] sm:$0xff]  ;;  %v9559_v44 = vpop.eup %9558  ;;  %2538 = vst.msk [vmem:[#allocation2 + $0xc0] sm:$0xff] %vm603_vm1, %v2506_v40  ;;  %v2505_v33 = vmul.f32 %v9557_v4, %v10926_v20  ;;  %8796 = vmatprep.mubr.msk.f32.mxu1 %vm603_vm1, %v2632_v35  ;;  %14046 = vst [vmem:[#allocation52_spill] sm:$0xff] %v11242_v12 }
 0x218   : > { %v2599_v52 = vmul.f32 %v11230_v1, %v11218_v49  ;;  %v2600_v10 = vmul.f32 %v11232_v41, %v11223_v31  ;;  %v9561_v59 = vpop.eup %9560  ;;  %9576 = vrcp.f32 %v2417_v22  ;;  %v2420_v25 = vadd.f32 1.0, %v9559_v44  ;;  %8797 = vmatmul.mubr.msk.f32.gmra.mxu1 %vm603_vm1, %v2633_v11  ;;  %v11252_v44 = vld [vmem:[%s14027_s20 + $0xa0] sm:$0xff]  ;;  %v11257_v22 = vld [vmem:[%s14027_s20 + $0xa8] sm:$0xff] }
 0x219   : > { %v9563_v17 = vpop.eup %9562  ;;  %2537 = vst.msk [vmem:[#allocation2 + $0xb8] sm:$0xff] %vm603_vm1, %v2505_v33  ;;  %v2508_v20 = vmul.f32 %v9561_v59, %v10948_v56  ;;  %v2635_v59 = vld [vmem:[#allocation2 + $0xb0] sm:$0xff] }
 0x21a   : > { %8846 = vmatprep.mubr.msk.f32.mxu0 %vm603_vm1, %v2599_v52  ;;  %v9565_v40 = vpop.eup %9564  ;;  %v2507_v4 = vmul.f32 %v9563_v17, %v10972_v6  ;;  %9578 = vrcp.f32 %v2420_v25  ;;  %v11266_v52 = vpop.f32.mrf.mxu1 }
 0x21b   : > { %8847 = vmatmul.mubr.msk.f32.gmra.mxu0 %vm603_vm1, %v2600_v10  ;;  %v9567_v33 = vpop.eup %9566  ;;  %2540 = vst.msk [vmem:[#allocation2 + $0xd0] sm:$0xff] %vm603_vm1, %v2508_v20  ;;  %v2419_v56 = vadd.f32 1.0, %v9565_v40  ;;  %14047 = vst [vmem:[#allocation53_spill] sm:$0xff] %v11266_v52  ;;  %v11279_v40 = vld [vmem:[%s14027_s20 + $0xb0] sm:$0xff] }
 0x21c   : > { %2539 = vst.msk [vmem:[#allocation2 + $0xc8] sm:$0xff] %vm603_vm1, %v2507_v4  ;;  %v2510_v17 = vmul.f32 %v9567_v33, %v10985_v15  ;;  %v2634_v6 = vld [vmem:[#allocation2 + $0xa8] sm:$0xff]  ;;  %v11284_v4 = vld [vmem:[%s14027_s20 + $0xb8] sm:$0xff] }
 0x21d   : > { %v11262_v35 = vld [vmem:[#allocation2 + $0xa7] sm:$0xff]  ;;  %v11264_v11 = vld [vmem:[#allocation2 + $0xaf] sm:$0xff]  ;;  %v9569_v10 = vpop.eup %9568  ;;  %9580 = vrcp.f32 %v2419_v56  ;;  %8799 = vmatprep.mubr.msk.f32.mxu1 %vm603_vm1, %v2634_v6  ;;  %14048 = vst [vmem:[#allocation54_spill] sm:$0xff] %v11284_v4 }
 0x21e   : > { %v2601_v25 = vmul.f32 %v11262_v35, %v11252_v44  ;;  %v2602_v20 = vmul.f32 %v11264_v11, %v11257_v22  ;;  %2542 = vst.msk [vmem:[#allocation2 + $0xe0] sm:$0xff] %vm603_vm1, %v2510_v17  ;;  %v2509_v15 = vmul.f32 %v9569_v10, %v11002_v45  ;;  %8800 = vmatmul.mubr.msk.f32.gmra.mxu1 %vm603_vm1, %v2635_v59  ;;  %v11294_v59 = vpop.f32.mrf.mxu1  ;;  %v2637_v52 = vld [vmem:[#allocation2 + $0xc0] sm:$0xff] }
 0x21f   : > { %v9571_v33 = vpop.eup %9570  ;;  %14049 = vst [vmem:[#allocation55_spill] sm:$0xff] %v11294_v59 }
 0x220   : > { %8849 = vmatprep.mubr.msk.f32.mxu0 %vm603_vm1, %v2601_v25  ;;  %v9573_v56 = vpop.eup %9572  ;;  %2541 = vst.msk [vmem:[#allocation2 + $0xd8] sm:$0xff] %vm603_vm1, %v2509_v15  ;;  %v2512_v45 = vmul.f32 %v9571_v33, %v11032_v0  ;;  %v2636_v17 = vld [vmem:[#allocation2 + $0xb8] sm:$0xff]  ;;  %v11310_v15 = vld [vmem:[%s14027_s20 + $0xc8] sm:$0xff] }
 0x221   : > { %8850 = vmatmul.mubr.msk.f32.gmra.mxu0 %vm603_vm1, %v2602_v20  ;;  %v11290_v6 = vld [vmem:[#allocation2 + $0xb7] sm:$0xff]  ;;  %v11292_v10 = vld [vmem:[#allocation2 + $0xbf] sm:$0xff]  ;;  %v2511_v12 = vmul.f32 %v9573_v56, %v11039_v32  ;;  %8802 = vmatprep.mubr.msk.f32.mxu1 %vm603_vm1, %v2636_v17  ;;  %14051 = vst [vmem:[#allocation57_spill] sm:$0xff] %v11310_v15 }
 0x222   : > { %v2603_v25 = vmul.f32 %v11290_v6, %v11279_v40  ;;  %v2604_v0 = vmul.f32 %v11292_v10, %v11284_v4  ;;  %v11305_v20 = vld [vmem:[%s14027_s20 + $0xc0] sm:$0xff]  ;;  %2544 = vst.msk [vmem:[#allocation2 + $0xf0] sm:$0xff] %vm603_vm1, %v2512_v45  ;;  %8803 = vmatmul.mubr.msk.f32.gmra.mxu1 %vm603_vm1, %v2637_v52  ;;  %v2639_v53 = vld [vmem:[#allocation2 + $0xd0] sm:$0xff] }
 0x223   : > { %14050 = vst [vmem:[#allocation56_spill] sm:$0xff] %v11305_v20  ;;  %v9575_v32 = vpop.eup %9574  ;;  %2543 = vst.msk [vmem:[#allocation2 + $0xe8] sm:$0xff] %vm603_vm1, %v2511_v12  ;;  %v2638_v33 = vld [vmem:[#allocation2 + $0xc8] sm:$0xff]  ;;  %v11327_v12 = vpop.f32.mrf.mxu1  ;;  %v11332_v4 = vld [vmem:[%s14027_s20 + $0xd0] sm:$0xff] }
 0x224   : > { %8852 = vmatprep.mubr.msk.f32.mxu0 %vm603_vm1, %v2603_v25  ;;  %v11316_v56 = vld [vmem:[#allocation2 + $0xc7] sm:$0xff]  ;;  %v11318_v17 = vld [vmem:[#allocation2 + $0xcf] sm:$0xff]  ;;  %v2514_v59 = vmul.f32 %v9575_v32, %v11066_v43  ;;  %8805 = vmatprep.mubr.msk.f32.mxu1 %vm603_vm1, %v2638_v33  ;;  %14052 = vst [vmem:[#allocation58_spill] sm:$0xff] %v11327_v12  ;;  %14053 = vst [vmem:[#allocation59_spill] sm:$0xff] %v11332_v4 }
 0x225   : > { %8853 = vmatmul.mubr.msk.f32.gmra.mxu0 %vm603_vm1, %v2604_v0  ;;  %v2605_v45 = vmul.f32 %v11316_v56, %v11305_v20  ;;  %v2606_v52 = vmul.f32 %v11318_v17, %v11310_v15  ;;  %v9577_v25 = vpop.eup %9576  ;;  %v11337_v43 = vld [vmem:[%s14027_s20 + $0xd8] sm:$0xff] }
 0x226   : > { %14054 = vst [vmem:[#allocation60_spill] sm:$0xff] %v11337_v43  ;;  %2546 = vst.msk [vmem:[#allocation2 + $0x100] sm:$0xff] %vm603_vm1, %v2514_v59  ;;  %v2513_v0 = vmul.f32 %v9577_v25, %v11080_v54  ;;  %8806 = vmatmul.mubr.msk.f32.gmra.mxu1 %vm603_vm1, %v2639_v53  ;;  %v11358_v59 = vld [vmem:[%s14027_s20 + $0xe0] sm:$0xff] }
 0x227   : > { %8855 = vmatprep.mubr.msk.f32.mxu0 %vm603_vm1, %v2605_v45  ;;  %v9579_v32 = vpop.eup %9578  ;;  %v2640_v33 = vld [vmem:[#allocation2 + $0xd8] sm:$0xff]  ;;  %14055 = vst [vmem:[#allocation61_spill] sm:$0xff] %v11358_v59  ;;  %v11360_v45 = vpop.f32.mrf.mxu1  ;;  %v2641_v25 = vld [vmem:[#allocation2 + $0xe0] sm:$0xff] }
 0x228   : > { %v11343_v12 = vld [vmem:[#allocation2 + $0xd7] sm:$0xff]  ;;  %v11345_v15 = vld [vmem:[#allocation2 + $0xdf] sm:$0xff]  ;;  %2545 = vst.msk [vmem:[#allocation2 + $0xf8] sm:$0xff] %vm603_vm1, %v2513_v0  ;;  %v2516_v20 = vmul.f32 %v9579_v32, %v11107_v46  ;;  %8808 = vmatprep.mubr.msk.f32.mxu1 %vm603_vm1, %v2640_v33  ;;  %14056 = vst [vmem:[#allocation62_spill] sm:$0xff] %v11360_v45 }
 0x229   : > { %8856 = vmatmul.mubr.msk.f32.gmra.mxu0 %vm603_vm1, %v2606_v52  ;;  %v2607_v54 = vmul.f32 %v11343_v12, %v11332_v4  ;;  %v2608_v53 = vmul.f32 %v11345_v15, %v11337_v43  ;;  %v11365_v46 = vld [vmem:[%s14027_s20 + $0xe8] sm:$0xff]  ;;  %v11381_v4 = vpop.f32.mrf.mxu1 }
 0x22a   : > { %14057 = vst [vmem:[#allocation63_spill] sm:$0xff] %v11365_v46  ;;  %v9581_v52 = vpop.eup %9580  ;;  %2548 = vst.msk [vmem:[#allocation2 + $0x110] sm:$0xff] %vm603_vm1, %v2516_v20  ;;  %8809 = vmatmul.mubr.msk.f32.gmra.mxu1 %vm603_vm1, %v2641_v25  ;;  %v2642_v0 = vld [vmem:[#allocation2 + $0xe8] sm:$0xff] }
 0x22b   : > { %8858 = vmatprep.mubr.msk.f32.mxu0 %vm603_vm1, %v2607_v54  ;;  %v11370_v32 = vld [vmem:[#allocation2 + $0xe7] sm:$0xff]  ;;  %v11372_v33 = vld [vmem:[#allocation2 + $0xef] sm:$0xff]  ;;  %v2515_v45 = vmul.f32 %v9581_v52, %v11116_v48  ;;  %8811 = vmatprep.mubr.msk.f32.mxu1 %vm603_vm1, %v2642_v0  ;;  %14060 = vst [vmem:[#allocation66_spill] sm:$0xff] %v11381_v4 }
 0x22c   : > { %14058 = vst [vmem:[#allocation64_spill] sm:$0xff] %v11370_v32  ;;  %14059 = vst [vmem:[#allocation65_spill] sm:$0xff] %v11372_v33  ;;  %v2609_v43 = vmul.f32 %v11370_v32, %v11358_v59  ;;  %v2610_v20 = vmul.f32 %v11372_v33, %v11365_v46  ;;  %v3289_v25 = vld [vmem:[#allocation2 + $0x9] sm:$0xff]  ;;  %v11399_v52 = vld [vmem:[%s14040_s2] sm:$0xff]  ;;  %v11412_v59 = vpop.f32.mrf.mxu1 }
 0x22d   : > { %8859 = vmatmul.mubr.msk.f32.gmra.mxu0 %vm603_vm1, %v2608_v53  ;;  %2547 = vst.msk [vmem:[#allocation2 + $0x108] sm:$0xff] %vm603_vm1, %v2515_v45  ;;  %v2643_v54 = vld [vmem:[#allocation2 + $0xf0] sm:$0xff]  ;;  %v11393_v53 = vld [vmem:[%s14027_s20 + $0xf8] sm:$0xff]  ;;  %14062 = vst [vmem:[#allocation68_spill] sm:$0xff] %v11399_v52  ;;  %v3321_v4 = vmul.f32 %v3289_v25, %v11399_v52 }
 0x22e   : > { %8861 = vmatprep.mubr.msk.f32.mxu0 %vm603_vm1, %v2609_v43  ;;  %v11388_v48 = vld [vmem:[%s14027_s20 + $0xf0] sm:$0xff]  ;;  %14061 = vst [vmem:[#allocation67_spill] sm:$0xff] %v11393_v53  ;;  %8812 = vmatmul.mubr.msk.f32.gmra.mxu1 %vm603_vm1, %v2643_v54  ;;  %14063 = vst [vmem:[#allocation69_spill] sm:$0xff] %v11412_v59  ;;  %v2645_v33 = vld [vmem:[#allocation2 + $0x100] sm:$0xff] }
 0x22f   : > { %v2644_v45 = vld [vmem:[#allocation2 + $0xf8] sm:$0xff]  ;;  %v11436_v52 = vld [vmem:[#allocation2 + $0x21] sm:$0xff] }
 0x230   : > { %v11401_v0 = vld [vmem:[#allocation2 + $0xf7] sm:$0xff]  ;;  %v11403_v43 = vld [vmem:[#allocation2 + $0xff] sm:$0xff]  ;;  %8814 = vmatprep.mubr.msk.f32.mxu1 %vm603_vm1, %v2644_v45 }
 0x231   : > { %8862 = vmatmul.mubr.msk.f32.gmra.mxu0 %vm603_vm1, %v2610_v20  ;;  %v2611_v46 = vmul.f32 %v11401_v0, %v11388_v48  ;;  %v2612_v54 = vmul.f32 %v11403_v43, %v11393_v53  ;;  %v3290_v32 = vld [vmem:[#allocation2 + $0x11] sm:$0xff]  ;;  %v11421_v25 = vld [vmem:[#allocation2 + $0x19] sm:$0xff] }
 0x232   : > { %8815 = vmatmul.mubr.msk.f32.gmra.mxu1 %vm603_vm1, %v2645_v33  ;;  %v11419_v20 = vld [vmem:[%s14040_s2 + $0x10] sm:$0xff]  ;;  %v11427_v45 = vld [vmem:[%s14027_s20] sm:$0xff]  ;;  %v11433_v33 = vpop.f32.mrf.mxu1  ;;  %v11443_v53 = vld [vmem:[%s14040_s2 + $0x18] sm:$0xff] }
 0x233   : > { %8864 = vmatprep.mubr.msk.f32.mxu0 %vm603_vm1, %v2611_v46  ;;  %14064 = vst [vmem:[#allocation70_spill] sm:$0xff] %v11419_v20  ;;  %8869 = vmatprep.mubr.msk.f32.mxu1 %vm603_vm1, %v3321_v4  ;;  %14065 = vst [vmem:[#allocation71_spill] sm:$0xff] %v11427_v45  ;;  %v3739_v59 = vmul.f32 %v11427_v45, %v10939_v38  ;;  %v3322_v46 = vmul.f32 %v3290_v32, %v11138_v42  ;;  %v11448_v38 = vld [vmem:[%s13917_s12 + $0x30] sm:$0xff]  ;;  %v9968_v45 = vld [vmem:[%s13917_s12 + $0x20] sm:$0xff] }
 0x234   : > { %14066 = vst [vmem:[#allocation72_spill] sm:$0xff] %v11433_v33  ;;  %v3323_v4 = vmul.f32 %v11421_v25, %v11419_v20  ;;  %v11463_v33 = vld [vmem:[#allocation2 + $0x29] sm:$0xff]  ;;  %v11480_v20 = vpop.f32.mrf.mxu1 }
 0x235   : > { %8865 = vmatmul.mubr.msk.f32.gmra.mxu0 %vm603_vm1, %v2612_v54  ;;  %v11461_v54 = vld [vmem:[%s14040_s2 + $0x20] sm:$0xff]  ;;  %14068 = vst [vmem:[#allocation74_spill] sm:$0xff] %v11480_v20  ;;  %v3757_v20 = vmul.f32 %v11262_v35, %v11218_v49  ;;  %v3758_v49 = vmul.f32 %v11264_v11, %v11223_v31  ;;  %v11722_v35 = vld [vmem:[%s14040_s2 + $0xb0] sm:$0xff]  ;;  %v11738_v11 = vld [vmem:[%s14040_s2 + $0xb8] sm:$0xff] }
 0x236   : > { %8919 = vmatprep.mubr.msk.f32.mxu0 %vm603_vm1, %v3739_v59  ;;  %8870 = vmatmul.mubr.msk.f32.vlgmr.msra.gmra.mxu1 %vm603_vm1, %v3322_v46  ;;  %v11454_v59 = vld [vmem:[%s14027_s20 + $0x8] sm:$0xff]  ;;  %v3741_v46 = vmul.f32 %v10977_v58, %v10932_v60  ;;  %v3742_v58 = vmul.f32 %v10982_v57, %v10954_v29  ;;  %v11508_v29 = vpop.f32.mrf.mxu1  ;;  %14078 = vst [vmem:[#allocation84_spill] sm:$0xff] %v11738_v11 }
 0x237   : > { %14067 = vst [vmem:[#allocation73_spill] sm:$0xff] %v11454_v59  ;;  %v3740_v32 = vmul.f32 %v11454_v59, %v10956_v14  ;;  %8968 = vmatpush3.msra.mxu1 %v9968_v45  ;;  %8872 = vmatprep.mubr.msk.f32.mxu1 %vm603_vm1, %v3323_v4  ;;  %v11474_v14 = vld [vmem:[%s13917_s12 + $0x38] sm:$0xff]  ;;  %v3324_v59 = vmul.f32 %v11436_v52, %v11443_v53  ;;  %v11488_v60 = vld [vmem:[%s14040_s2 + $0x28] sm:$0xff]  ;;  %v11497_v4 = vld [vmem:[%s14040_s2 + $0x30] sm:$0xff] }
 0x238   : > { %9067 = vmatprep.subr.mxu1 %v11448_v38  ;;  %v3325_v45 = vmul.f32 %v11463_v33, %v11461_v54  ;;  %14069 = vst [vmem:[#allocation75_spill] sm:$0xff] %v11508_v29  ;;  %v11536_v29 = vpop.f32.mrf.mxu1 }
 0x239   : > { %8920 = vmatmul.mubr.msk.f32.vlgmr.msra.gmra.mxu0 %vm603_vm1, %v3740_v32  ;;  %v11499_v32 = vld [vmem:[#allocation2 + $0x39] sm:$0xff]  ;;  %14070 = vst [vmem:[#allocation76_spill] sm:$0xff] %v11536_v29 }
 0x23a   : > { %8922 = vmatprep.mubr.msk.f32.mxu0 %vm603_vm1, %v3741_v46  ;;  %9018 = vmatpush3.msra.mxu0 %v10937_v5  ;;  %v3743_v46 = vmul.f32 %v11015_v27, %v10969_v18  ;;  %v3326_v5 = vmul.f32 %v11113_v28, %v11488_v60  ;;  %v3327_v57 = vmul.f32 %v11499_v32, %v11497_v4  ;;  %v11526_v27 = vld [vmem:[%s14040_s2 + $0x40] sm:$0xff]  ;;  %v11564_v29 = vpop.f32.mrf.mxu1 }
 0x23b   : > { %8873 = vmatmul.mubr.msk.f32.gmra.mxu1 %vm603_vm1, %v3324_v59  ;;  %9117 = vmatprep.subr.mxu0 %v11474_v14  ;;  %v11516_v59 = vld [vmem:[%s14040_s2 + $0x38] sm:$0xff]  ;;  %v3744_v18 = vmul.f32 %v11027_v16, %v10992_v63  ;;  %v11544_v16 = vld [vmem:[%s14040_s2 + $0x48] sm:$0xff]  ;;  %14071 = vst [vmem:[#allocation77_spill] sm:$0xff] %v11564_v29 }
 0x23c   : > { %8875 = vmatprep.mubr.msk.f32.mxu1 %vm603_vm1, %v3325_v45  ;;  %v11518_v45 = vld [vmem:[#allocation2 + $0x41] sm:$0xff]  ;;  %v11592_v29 = vpop.f32.mrf.mxu1 }
 0x23d   : > { %8923 = vmatmul.mubr.msk.f32.gmra.mxu0 %vm603_vm1, %v3742_v58  ;;  %v11528_v58 = vld [vmem:[#allocation2 + $0x49] sm:$0xff]  ;;  %14072 = vst [vmem:[#allocation78_spill] sm:$0xff] %v11592_v29 }
 0x23e   : > { %8925 = vmatprep.mubr.msk.f32.mxu0 %vm603_vm1, %v3743_v46  ;;  %v3745_v46 = vmul.f32 %v11058_v36, %v11007_v47  ;;  %v3329_v63 = vmul.f32 %v11528_v58, %v11526_v27  ;;  %v3746_v47 = vmul.f32 %v11060_v26, %v11025_v2  ;;  %v11554_v36 = vld [vmem:[%s14040_s2 + $0x50] sm:$0xff]  ;;  %v11572_v26 = vld [vmem:[%s14040_s2 + $0x58] sm:$0xff]  ;;  %v11620_v29 = vpop.f32.mrf.mxu1 }
 0x23f   : > { %8876 = vmatmul.mubr.msk.f32.gmra.mxu1 %vm603_vm1, %v3326_v5  ;;  %v3328_v5 = vmul.f32 %v11518_v45, %v11516_v59  ;;  %14073 = vst [vmem:[#allocation79_spill] sm:$0xff] %v11620_v29 }
 0x240   : > { %8878 = vmatprep.mubr.msk.f32.mxu1 %vm603_vm1, %v3327_v57  ;;  %v11546_v57 = vld [vmem:[#allocation2 + $0x51] sm:$0xff]  ;;  %v11648_v29 = vpop.f32.mrf.mxu1 }
 0x241   : > { %8926 = vmatmul.mubr.msk.f32.gmra.mxu0 %vm603_vm1, %v3744_v18  ;;  %v11556_v18 = vld [vmem:[#allocation2 + $0x59] sm:$0xff]  ;;  %14074 = vst [vmem:[#allocation80_spill] sm:$0xff] %v11648_v29 }
 0x242   : > { %8928 = vmatprep.mubr.msk.f32.mxu0 %vm603_vm1, %v3745_v46  ;;  %v3747_v46 = vmul.f32 %v11100_v7, %v11045_v62  ;;  %v3331_v2 = vmul.f32 %v11556_v18, %v11554_v36  ;;  %v3748_v62 = vmul.f32 %v11102_v34, %v11050_v61  ;;  %v11582_v7 = vld [vmem:[%s14040_s2 + $0x60] sm:$0xff]  ;;  %v11600_v34 = vld [vmem:[%s14040_s2 + $0x68] sm:$0xff]  ;;  %v11676_v29 = vpop.f32.mrf.mxu1 }
 0x243   : > { %8879 = vmatmul.mubr.msk.f32.gmra.mxu1 %vm603_vm1, %v3328_v5  ;;  %v3330_v5 = vmul.f32 %v11546_v57, %v11544_v16  ;;  %14076 = vst [vmem:[#allocation82_spill] sm:$0xff] %v11676_v29  ;;  %v8821_v29 = vpop.f32.mrf.mxu0 }
 0x244   : > { %8881 = vmatprep.mubr.msk.f32.mxu1 %vm603_vm1, %v3329_v63  ;;  %v11574_v63 = vld [vmem:[#allocation2 + $0x61] sm:$0xff] }
 0x245   : > { %8929 = vmatmul.mubr.msk.f32.gmra.mxu0 %vm603_vm1, %v3746_v47  ;;  %v11584_v47 = vld [vmem:[#allocation2 + $0x69] sm:$0xff] }
 0x246   : > { %8931 = vmatprep.mubr.msk.f32.mxu0 %vm603_vm1, %v3747_v46  ;;  %v3749_v46 = vmul.f32 %v11143_v8, %v11085_v9  ;;  %v3333_v61 = vmul.f32 %v11584_v47, %v11582_v7  ;;  %v3750_v8 = vmul.f32 %v11145_v24, %v11094_v55  ;;  %v11610_v9 = vld [vmem:[%s14040_s2 + $0x70] sm:$0xff]  ;;  %v11628_v24 = vld [vmem:[%s14040_s2 + $0x78] sm:$0xff] }
 0x247   : > { %8882 = vmatmul.mubr.msk.f32.gmra.mxu1 %vm603_vm1, %v3330_v5  ;;  %v3332_v5 = vmul.f32 %v11574_v63, %v11572_v26 }
 0x248   : > { %8884 = vmatprep.mubr.msk.f32.mxu1 %vm603_vm1, %v3331_v2  ;;  %v11602_v2 = vld [vmem:[#allocation2 + $0x71] sm:$0xff] }
 0x249   : > { %8932 = vmatmul.mubr.msk.f32.gmra.mxu0 %vm603_vm1, %v3748_v62  ;;  %v11612_v62 = vld [vmem:[#allocation2 + $0x79] sm:$0xff] }
 0x24a   : > { %8934 = vmatprep.mubr.msk.f32.mxu0 %vm603_vm1, %v3749_v46  ;;  %v3751_v46 = vmul.f32 %v11175_v13, %v11124_v39  ;;  %v3335_v55 = vmul.f32 %v11612_v62, %v11610_v9  ;;  %v3752_v39 = vmul.f32 %v11177_v50, %v11129_v30  ;;  %v11638_v13 = vld [vmem:[%s14040_s2 + $0x80] sm:$0xff]  ;;  %v11656_v50 = vld [vmem:[%s14040_s2 + $0x88] sm:$0xff] }
 0x24b   : > { %8885 = vmatmul.mubr.msk.f32.gmra.mxu1 %vm603_vm1, %v3332_v5  ;;  %v3334_v5 = vmul.f32 %v11602_v2, %v11600_v34 }
 0x24c   : > { %8887 = vmatprep.mubr.msk.f32.mxu1 %vm603_vm1, %v3333_v61  ;;  %v11630_v61 = vld [vmem:[#allocation2 + $0x81] sm:$0xff] }
 0x24d   : > { %8935 = vmatmul.mubr.msk.f32.gmra.mxu0 %vm603_vm1, %v3750_v8  ;;  %v11640_v8 = vld [vmem:[#allocation2 + $0x89] sm:$0xff] }
 0x24e   : > { %8937 = vmatprep.mubr.msk.f32.mxu0 %vm603_vm1, %v3751_v46  ;;  %v3753_v46 = vmul.f32 %v11202_v21, %v11163_v37  ;;  %v3337_v30 = vmul.f32 %v11640_v8, %v11638_v13  ;;  %v3754_v37 = vmul.f32 %v11204_v19, %v11168_v51  ;;  %v11666_v21 = vld [vmem:[%s14040_s2 + $0x90] sm:$0xff]  ;;  %v11684_v19 = vld [vmem:[%s14040_s2 + $0x98] sm:$0xff] }
 0x24f   : > { %8888 = vmatmul.mubr.msk.f32.gmra.mxu1 %vm603_vm1, %v3334_v5  ;;  %v3336_v5 = vmul.f32 %v11630_v61, %v11628_v24  ;;  %14075 = vst [vmem:[#allocation81_spill] sm:$0xff] %v11666_v21 }
 0x250   : > { %8890 = vmatprep.mubr.msk.f32.mxu1 %vm603_vm1, %v3335_v55  ;;  %v11658_v55 = vld [vmem:[#allocation2 + $0x91] sm:$0xff] }
 0x251   : > { %8938 = vmatmul.mubr.msk.f32.gmra.mxu0 %vm603_vm1, %v3752_v39  ;;  %v11668_v39 = vld [vmem:[#allocation2 + $0x99] sm:$0xff] }
 0x252   : > { %8940 = vmatprep.mubr.msk.f32.mxu0 %vm603_vm1, %v3753_v46  ;;  %v3755_v46 = vmul.f32 %v11230_v1, %v11191_v3  ;;  %v3339_v51 = vmul.f32 %v11668_v39, %v11666_v21  ;;  %v3756_v3 = vmul.f32 %v11232_v41, %v11196_v23  ;;  %v11694_v1 = vld [vmem:[%s14040_s2 + $0xa0] sm:$0xff] }
 0x253   : > { %8891 = vmatmul.mubr.msk.f32.gmra.mxu1 %vm603_vm1, %v3336_v5  ;;  %v3338_v5 = vmul.f32 %v11658_v55, %v11656_v50 }
 0x254   : > { %8893 = vmatprep.mubr.msk.f32.mxu1 %vm603_vm1, %v3337_v30  ;;  %v11686_v30 = vld [vmem:[#allocation2 + $0xa1] sm:$0xff] }
 0x255   : > { %8941 = vmatmul.mubr.msk.f32.gmra.mxu0 %vm603_vm1, %v3754_v37  ;;  %v11696_v37 = vld [vmem:[#allocation2 + $0xa9] sm:$0xff]  ;;  %v3340_v41 = vmul.f32 %v11686_v30, %v11684_v19 }
 0x256   : > { %8943 = vmatprep.mubr.msk.f32.mxu0 %vm603_vm1, %v3755_v46  ;;  %v8771_v46 = vpop.f32.mrf.mxu1  ;;  %v3341_v23 = vmul.f32 %v11696_v37, %v11694_v1 }
 0x257   : > { %8894 = vmatmul.mubr.msk.f32.gmra.mxu1 %vm603_vm1, %v3338_v5  ;;  %v11701_v21 = vadd.f32 %v8821_v29, %v8771_v46  ;;  %v11712_v5 = vld [vmem:[%s14040_s2 + $0xa8] sm:$0xff]  ;;  %v3759_v29 = vmul.f32 %v11290_v6, %v11252_v44  ;;  %v3760_v44 = vmul.f32 %v11292_v10, %v11257_v22  ;;  %v11748_v6 = vld [vmem:[%s14040_s2 + $0xc0] sm:$0xff] }
 0x258   : > { %8896 = vmatprep.mubr.msk.f32.mxu1 %vm603_vm1, %v3339_v51  ;;  %v11714_v51 = vld [vmem:[#allocation2 + $0xb1] sm:$0xff]  ;;  %v11740_v46 = vld [vmem:[#allocation2 + $0xc1] sm:$0xff]  ;;  %14079 = vst [vmem:[#allocation85_spill] sm:$0xff] %v11748_v6 }
 0x259   : > { %14077 = vst [vmem:[#allocation83_spill] sm:$0xff] %v11701_v21  ;;  %8944 = vmatmul.mubr.msk.f32.gmra.mxu0 %vm603_vm1, %v3756_v3  ;;  %v3342_v3 = vmul.f32 %v11714_v51, %v11712_v5  ;;  %v11764_v10 = vld [vmem:[%s14040_s2 + $0xc8] sm:$0xff] }
 0x25a   : > { %8946 = vmatprep.mubr.msk.f32.mxu0 %vm603_vm1, %v3757_v20  ;;  %v11724_v20 = vld [vmem:[#allocation2 + $0xb9] sm:$0xff]  ;;  %14080 = vst [vmem:[#allocation86_spill] sm:$0xff] %v11764_v10  ;;  %v11792_v21 = vld [vmem:[#allocation2 + $0xe1] sm:$0xff] }
 0x25b   : > { %8897 = vmatmul.mubr.msk.f32.gmra.mxu1 %vm603_vm1, %v3340_v41  ;;  %v3343_v31 = vmul.f32 %v11724_v20, %v11722_v35  ;;  %v11750_v41 = vld [vmem:[#allocation2 + $0xc9] sm:$0xff]  ;;  %14087 = vst [vmem:[#allocation89_spill] sm:$0xff] %v11792_v21 }
 0x25c   : > { %8899 = vmatprep.mubr.msk.f32.mxu1 %vm603_vm1, %v3341_v23  ;;  %v3761_v23 = vmul.f32 %v11316_v56, %v11279_v40  ;;  %v3345_v22 = vmul.f32 %v11750_v41, %v11748_v6  ;;  %v14082_v40 = vld [vmem:[#allocation54_spill] sm:$0xff] }
 0x25d   : > { %8947 = vmatmul.mubr.msk.f32.gmra.mxu0 %vm603_vm1, %v3758_v49  ;;  %v3344_v49 = vmul.f32 %v11740_v46, %v11738_v11  ;;  %v3762_v56 = vmul.f32 %v11318_v17, %v14082_v40  ;;  %v11790_v40 = vld [vmem:[%s14040_s2 + $0xd8] sm:$0xff] }
 0x25e   : > { %8949 = vmatprep.mubr.msk.f32.mxu0 %vm603_vm1, %v3759_v29  ;;  %v11766_v29 = vld [vmem:[#allocation2 + $0xd1] sm:$0xff] }
 0x25f   : > { %8900 = vmatmul.mubr.msk.f32.gmra.mxu1 %vm603_vm1, %v3342_v3  ;;  %14081 = vst [vmem:[#allocation87_spill] sm:$0xff] %v11766_v29  ;;  %v11774_v3 = vld [vmem:[%s14040_s2 + $0xd0] sm:$0xff] }
 0x260   : > { %8902 = vmatprep.mubr.msk.f32.mxu1 %vm603_vm1, %v3343_v31  ;;  %14083 = vst [vmem:[#allocation54_spill] sm:$0xff] %v11774_v3  ;;  %v11776_v31 = vld [vmem:[#allocation2 + $0xd9] sm:$0xff] }
 0x261   : > { %8950 = vmatmul.mubr.msk.f32.gmra.mxu0 %vm603_vm1, %v3760_v44  ;;  %14084 = vst [vmem:[#allocation88_spill] sm:$0xff] %v11776_v31  ;;  %v14085_v44 = vld [vmem:[#allocation56_spill] sm:$0xff]  ;;  %v3347_v17 = vmul.f32 %v11776_v31, %v11774_v3 }
 0x262   : > { %8952 = vmatprep.mubr.msk.f32.mxu0 %vm603_vm1, %v3761_v23  ;;  %v3763_v23 = vmul.f32 %v11343_v12, %v14085_v44  ;;  %14086 = vst [vmem:[#allocation56_spill] sm:$0xff] %v11790_v40  ;;  %v14088_v12 = vld [vmem:[#allocation57_spill] sm:$0xff]  ;;  %v11802_v44 = vld [vmem:[#allocation2 + $0xe9] sm:$0xff]  ;;  %v14091_v3 = vld [vmem:[#allocation64_spill] sm:$0xff] }
 0x263   : > { %8903 = vmatmul.mubr.msk.f32.gmra.mxu1 %vm603_vm1, %v3344_v49  ;;  %v3346_v49 = vmul.f32 %v11766_v29, %v11764_v10  ;;  %14089 = vst [vmem:[#allocation57_spill] sm:$0xff] %v11802_v44  ;;  %v11818_v31 = vld [vmem:[#allocation2 + $0xf1] sm:$0xff] }
 0x264   : > { %8905 = vmatprep.mubr.msk.f32.mxu1 %vm603_vm1, %v3345_v22  ;;  %v3764_v22 = vmul.f32 %v11345_v15, %v14088_v12  ;;  %v11816_v12 = vld [vmem:[%s14040_s2 + $0xe8] sm:$0xff] }
 0x265   : > { %8953 = vmatmul.mubr.msk.f32.gmra.mxu0 %vm603_vm1, %v3762_v56  ;;  %v11800_v56 = vld [vmem:[%s14040_s2 + $0xe0] sm:$0xff]  ;;  %v3350_v29 = vmul.f32 %v11818_v31, %v11816_v12 }
 0x266   : > { %8955 = vmatprep.mubr.msk.f32.mxu0 %vm603_vm1, %v3763_v23  ;;  %v14090_v23 = vld [vmem:[#allocation59_spill] sm:$0xff]  ;;  %v3349_v15 = vmul.f32 %v11802_v44, %v11800_v56 }
 0x267   : > { %8906 = vmatmul.mubr.msk.f32.gmra.mxu1 %vm603_vm1, %v3346_v49  ;;  %v3765_v10 = vmul.f32 %v14091_v3, %v14090_v23  ;;  %v3348_v49 = vmul.f32 %v11792_v21, %v11790_v40  ;;  %v11823_v3 = vld [vmem:[%s14040_s2 + $0xf0] sm:$0xff]  ;;  %v11828_v23 = vld [vmem:[#allocation2 + $0xf9] sm:$0xff] }
 0x268   : > { %8908 = vmatprep.mubr.msk.f32.mxu1 %vm603_vm1, %v3347_v17  ;;  %v14092_v17 = vld [vmem:[#allocation60_spill] sm:$0xff]  ;;  %v11830_v40 = vld [vmem:[#allocation2 + $0x109] sm:$0xff]  ;;  %v14095_v21 = vld [vmem:[#allocation61_spill] sm:$0xff] }
 0x269   : > { %8956 = vmatmul.mubr.msk.f32.gmra.mxu0 %vm603_vm1, %v3764_v22  ;;  %v14093_v22 = vld [vmem:[#allocation65_spill] sm:$0xff]  ;;  %14094 = vst [vmem:[#allocation59_spill] sm:$0xff] %v11830_v40  ;;  %v11832_v44 = vld [vmem:[#allocation2 + $0x111] sm:$0xff]  ;;  %v3767_v6 = vmul.f32 %v11401_v0, %v14095_v21  ;;  %v11847_v11 = vmul.f32 %v11830_v40, %v11800_v56 }
 0x26a   : > { %8958 = vmatprep.mubr.msk.f32.mxu0 %vm603_vm1, %v3765_v10  ;;  %v3766_v10 = vmul.f32 %v14093_v22, %v14092_v17  ;;  %v3351_v17 = vmul.f32 %v11828_v23, %v11823_v3  ;;  %v11843_v22 = vld [vmem:[#allocation2 + $0x101] sm:$0xff]  ;;  %v11851_v0 = vmul.f32 %v11832_v44, %v11816_v12  ;;  %v14098_v21 = vld [vmem:[#allocation63_spill] sm:$0xff] }
 0x26b   : > { %8909 = vmatmul.mubr.msk.f32.gmra.mxu1 %vm603_vm1, %v3348_v49  ;;  %v3737_v49 = vld [vmem:[#allocation2 + $0x107] sm:$0xff]  ;;  %14096 = vst [vmem:[#allocation64_spill] sm:$0xff] %v11847_v11  ;;  %v3738_v40 = vld [vmem:[#allocation2 + $0x10f] sm:$0xff] }
 0x26c   : > { %8911 = vmatprep.mubr.msk.f32.mxu1 %vm603_vm1, %v3349_v15  ;;  %14097 = vst [vmem:[#allocation60_spill] sm:$0xff] %v11851_v0  ;;  %v3768_v15 = vmul.f32 %v11403_v43, %v14098_v21  ;;  %v4125_v43 = vld [vmem:[#allocation2 + $0x18] sm:$0xff]  ;;  %v4126_v21 = vld [vmem:[#allocation2 + $0x20] sm:$0xff] }
 0x26d   : > { %8959 = vmatmul.mubr.msk.f32.gmra.mxu0 %vm603_vm1, %v3766_v10  ;;  %v11861_v10 = vld [vmem:[%s14040_s2 + $0xf8] sm:$0xff]  ;;  %v4949_v11 = vld [vmem:[#allocation2 + $0xc7] sm:$0xff] }
 0x26e   : > { %8961 = vmatprep.mubr.msk.f32.mxu0 %vm603_vm1, %v3767_v6  ;;  %v3769_v6 = vmul.f32 %v3737_v49, %v11388_v48  ;;  %v3352_v0 = vmul.f32 %v11843_v22, %v11861_v10  ;;  %v14100_v48 = vld [vmem:[#allocation68_spill] sm:$0xff] }
 0x26f   : > { %8912 = vmatmul.mubr.msk.f32.gmra.mxu1 %vm603_vm1, %v3350_v29  ;;  %v14099_v29 = vld [vmem:[#allocation67_spill] sm:$0xff]  ;;  %v4543_v49 = vmul.f32 %v11421_v25, %v14100_v48  ;;  %v14101_v25 = vld [vmem:[#allocation70_spill] sm:$0xff] }
 0x270   : > { %8914 = vmatprep.mubr.msk.f32.mxu1 %vm603_vm1, %v3351_v17  ;;  %v3770_v17 = vmul.f32 %v3738_v40, %v14099_v29  ;;  %v11882_v40 = vld [vmem:[#allocation2 + $0x28] sm:$0xff] }
 0x271   : > { %8962 = vmatmul.mubr.msk.f32.gmra.mxu0 %vm603_vm1, %v3768_v15  ;;  %v11877_v15 = vld [vmem:[%s13917_s12 + $0x40] sm:$0xff]  ;;  %v11917_v29 = vld [vmem:[#allocation2 + $0x48] sm:$0xff] }
 0x272   : > { %8964 = vmatprep.mubr.msk.f32.mxu0 %vm603_vm1, %v3769_v6  ;;  %v4545_v6 = vmul.f32 %v11463_v33, %v14101_v25  ;;  %v4546_v33 = vmul.f32 %v11113_v28, %v11443_v53  ;;  %v4548_v28 = vmul.f32 %v11518_v45, %v11488_v60  ;;  %v4549_v53 = vmul.f32 %v11528_v58, %v11497_v4  ;;  %v11941_v45 = vld [vmem:[#allocation2 + $0x60] sm:$0xff]  ;;  %v11945_v58 = vld [vmem:[#allocation2 + $0x68] sm:$0xff] }
 0x273   : > { %8915 = vmatmul.mubr.msk.f32.gmra.mxu1 %vm603_vm1, %v3352_v0  ;;  %v4544_v0 = vmul.f32 %v11436_v52, %v11138_v42  ;;  %v11897_v42 = vld [vmem:[#allocation2 + $0x30] sm:$0xff]  ;;  %v11902_v52 = vld [vmem:[#allocation2 + $0x38] sm:$0xff]  ;;  %v4550_v60 = vmul.f32 %v11546_v57, %v11516_v59  ;;  %v4551_v4 = vmul.f32 %v11556_v18, %v11526_v27  ;;  %v4552_v59 = vmul.f32 %v11574_v63, %v11544_v16  ;;  %v11969_v63 = vld [vmem:[#allocation2 + $0x80] sm:$0xff] }
 0x274   : > { %8969 = vmatprep.mubr.msk.f32.mxu1 %vm603_vm1, %v4125_v43  ;;  %v11892_v43 = vld [vmem:[%s13921_s16] sm:$0xff]  ;;  %v4553_v27 = vmul.f32 %v11584_v47, %v11554_v36  ;;  %v11955_v57 = vld [vmem:[#allocation2 + $0x70] sm:$0xff]  ;;  %v11959_v18 = vld [vmem:[#allocation2 + $0x78] sm:$0xff]  ;;  %v4554_v16 = vmul.f32 %v11602_v2, %v11572_v26  ;;  %v4555_v36 = vmul.f32 %v11612_v62, %v11582_v7  ;;  %v4556_v26 = vmul.f32 %v11630_v61, %v11600_v34 }
 0x275   : > { %8965 = vmatmul.mubr.msk.f32.gmra.mxu0 %vm603_vm1, %v3770_v17  ;;  %v11973_v47 = vld [vmem:[#allocation2 + $0x88] sm:$0xff]  ;;  %v4557_v7 = vmul.f32 %v11640_v8, %v11610_v9  ;;  %v11983_v2 = vld [vmem:[#allocation2 + $0x90] sm:$0xff]  ;;  %v11987_v62 = vld [vmem:[#allocation2 + $0x98] sm:$0xff]  ;;  %v4558_v34 = vmul.f32 %v11658_v55, %v11628_v24  ;;  %v4559_v9 = vmul.f32 %v11668_v39, %v11638_v13  ;;  %v4560_v24 = vmul.f32 %v11686_v30, %v11656_v50 }
 0x276   : > { %9019 = vmatprep.mubr.msk.f32.mxu0 %vm603_vm1, %v4543_v49  ;;  %v11997_v61 = vld [vmem:[#allocation2 + $0xa0] sm:$0xff]  ;;  %v12001_v8 = vld [vmem:[#allocation2 + $0xa8] sm:$0xff]  ;;  %v12011_v39 = vld [vmem:[#allocation2 + $0xb0] sm:$0xff]  ;;  %v4562_v50 = vmul.f32 %v11714_v51, %v11684_v19  ;;  %v4563_v30 = vmul.f32 %v11724_v20, %v11694_v1  ;;  %v4564_v19 = vmul.f32 %v11740_v46, %v11712_v5  ;;  %v4565_v1 = vmul.f32 %v11750_v41, %v11722_v35 }
 0x277   : > { %8970 = vmatmul.mubr.msk.f32.vlgmr.msra.gmra.mxu1 %vm603_vm1, %v4126_v21  ;;  %v14102_v55 = vld [vmem:[#allocation81_spill] sm:$0xff]  ;;  %v12015_v17 = vld [vmem:[#allocation2 + $0xb8] sm:$0xff]  ;;  %v12029_v48 = vld [vmem:[#allocation2 + $0xc8] sm:$0xff] }
 0x278   : > { %9068 = vmatpush3.msra.mxu1 %v11448_v38  ;;  %8972 = vmatprep.mubr.msk.f32.mxu1 %vm603_vm1, %v11882_v40  ;;  %v4547_v38 = vmul.f32 %v11499_v32, %v11461_v54  ;;  %v11927_v54 = vld [vmem:[#allocation2 + $0x50] sm:$0xff]  ;;  %v11931_v32 = vld [vmem:[#allocation2 + $0x58] sm:$0xff]  ;;  %v4561_v13 = vmul.f32 %v11696_v37, %v14102_v55  ;;  %v12025_v37 = vld [vmem:[#allocation2 + $0xc0] sm:$0xff] }
 0x279   : > { %9020 = vmatmul.mubr.msk.f32.vlgmr.msra.gmra.mxu0 %vm603_vm1, %v4544_v0  ;;  %9167 = vmatprep.subr.mxu1 %v11877_v15  ;;  %v12039_v51 = vld [vmem:[#allocation2 + $0xd0] sm:$0xff]  ;;  %v12043_v20 = vld [vmem:[#allocation2 + $0xd8] sm:$0xff]  ;;  %v14105_v46 = vld [vmem:[#allocation85_spill] sm:$0xff] }
 0x27a   : > { %9022 = vmatprep.mubr.msk.f32.mxu0 %vm603_vm1, %v4545_v6  ;;  %9118 = vmatpush3.msra.mxu0 %v11474_v14  ;;  %v11913_v14 = vld [vmem:[#allocation2 + $0x40] sm:$0xff]  ;;  %v14103_v49 = vld [vmem:[#allocation84_spill] sm:$0xff]  ;;  %v14104_v21 = vld [vmem:[#allocation87_spill] sm:$0xff] }
 0x27b   : > { %8973 = vmatmul.mubr.msk.f32.gmra.mxu1 %vm603_vm1, %v11897_v42  ;;  %9217 = vmatprep.subr.mxu0 %v11892_v43  ;;  %v4566_v5 = vmul.f32 %v14104_v21, %v14103_v49  ;;  %v14106_v0 = vld [vmem:[#allocation88_spill] sm:$0xff]  ;;  %v12053_v41 = vld [vmem:[#allocation2 + $0xe0] sm:$0xff]  ;;  %v12057_v25 = vld [vmem:[#allocation2 + $0xe8] sm:$0xff] }
 0x27c   : > { %8975 = vmatprep.mubr.msk.f32.mxu1 %vm603_vm1, %v11902_v52  ;;  %v4567_v35 = vmul.f32 %v14106_v0, %v14105_v46  ;;  %v14107_v6 = vld [vmem:[#allocation86_spill] sm:$0xff]  ;;  %v4932_v49 = vld [vmem:[#allocation2 + $0x3f] sm:$0xff] }
 0x27d   : > { %9023 = vmatmul.mubr.msk.f32.gmra.mxu0 %vm603_vm1, %v4546_v33  ;;  %v14108_v33 = vld [vmem:[#allocation89_spill] sm:$0xff] }
 0x27e   : > { %9025 = vmatprep.mubr.msk.f32.mxu0 %vm603_vm1, %v4547_v38  ;;  %v4568_v38 = vmul.f32 %v14108_v33, %v14107_v6  ;;  %v4933_v21 = vld [vmem:[#allocation2 + $0x47] sm:$0xff] }
 0x27f   : > { %8976 = vmatmul.mubr.msk.f32.gmra.mxu1 %vm603_vm1, %v11913_v14 }
 0x280   : > { %8978 = vmatprep.mubr.msk.f32.mxu1 %vm603_vm1, %v11917_v29 }
 0x281   : > { %9026 = vmatmul.mubr.msk.f32.gmra.mxu0 %vm603_vm1, %v4548_v28  ;;  %v14109_v28 = vld [vmem:[#allocation54_spill] sm:$0xff] }
 0x282   : > { %9028 = vmatprep.mubr.msk.f32.mxu0 %vm603_vm1, %v4549_v53  ;;  %v14110_v53 = vld [vmem:[#allocation57_spill] sm:$0xff] }
 0x283   : > { %8979 = vmatmul.mubr.msk.f32.gmra.mxu1 %vm603_vm1, %v11927_v54 }
 0x284   : > { %8981 = vmatprep.mubr.msk.f32.mxu1 %vm603_vm1, %v11931_v32 }
 0x285   : > { %9029 = vmatmul.mubr.msk.f32.gmra.mxu0 %vm603_vm1, %v4550_v60  ;;  %v4569_v60 = vmul.f32 %v14110_v53, %v14109_v28 }
 0x286   : > { %9031 = vmatprep.mubr.msk.f32.mxu0 %vm603_vm1, %v4551_v4  ;;  %v12067_v4 = vld [vmem:[#allocation2 + $0xf0] sm:$0xff] }
 0x287   : > { %8982 = vmatmul.mubr.msk.f32.gmra.mxu1 %vm603_vm1, %v11941_v45 }
 0x288   : > { %8984 = vmatprep.mubr.msk.f32.mxu1 %vm603_vm1, %v11945_v58 }
 0x289   : > { %9032 = vmatmul.mubr.msk.f32.gmra.mxu0 %vm603_vm1, %v4552_v59  ;;  %v12071_v59 = vld [vmem:[#allocation2 + $0xf8] sm:$0xff] }
 0x28a   : > { %9034 = vmatprep.mubr.msk.f32.mxu0 %vm603_vm1, %v4553_v27  ;;  %v14111_v27 = vld [vmem:[#allocation56_spill] sm:$0xff] }
 0x28b   : > { %8985 = vmatmul.mubr.msk.f32.gmra.mxu1 %vm603_vm1, %v11955_v57 }
 0x28c   : > { %8987 = vmatprep.mubr.msk.f32.mxu1 %vm603_vm1, %v11959_v18 }
 0x28d   : > { %9035 = vmatmul.mubr.msk.f32.gmra.mxu0 %vm603_vm1, %v4554_v16  ;;  %v4570_v16 = vmul.f32 %v11818_v31, %v14111_v27  ;;  %v4572_v31 = vmul.f32 %v11843_v22, %v11816_v12  ;;  %v4574_v12 = vmul.f32 %v11832_v44, %v11861_v10  ;;  %v4931_v22 = vld [vmem:[#allocation2 + $0x37] sm:$0xff]  ;;  %v12115_v44 = vld [vmem:[%s13912_s7] ss:$0 sm:$0xff] }
 0x28e   : > { %9037 = vmatprep.mubr.msk.f32.mxu0 %vm603_vm1, %v4555_v36  ;;  %v4571_v36 = vmul.f32 %v11828_v23, %v11800_v56  ;;  %v14112_v56 = vld [vmem:[#allocation59_spill] sm:$0xff] }
 0x28f   : > { %8988 = vmatmul.mubr.msk.f32.gmra.mxu1 %vm603_vm1, %v11969_v63  ;;  %v4573_v23 = vmul.f32 %v14112_v56, %v11823_v3 }
 0x290   : > { %8990 = vmatprep.mubr.msk.f32.mxu1 %vm603_vm1, %v11973_v47 }
 0x291   : > { %9038 = vmatmul.mubr.msk.f32.gmra.mxu0 %vm603_vm1, %v4556_v26  ;;  %v12081_v26 = vld [vmem:[#allocation2 + $0x100] sm:$0xff] }
 0x292   : > { %9040 = vmatprep.mubr.msk.f32.mxu0 %vm603_vm1, %v4557_v7  ;;  %v12085_v7 = vld [vmem:[#allocation2 + $0x108] sm:$0xff] }
 0x293   : > { %8991 = vmatmul.mubr.msk.f32.gmra.mxu1 %vm603_vm1, %v11983_v2 }
 0x294   : > { %8993 = vmatprep.mubr.msk.f32.mxu1 %vm603_vm1, %v11987_v62 }
 0x295   : > { %9041 = vmatmul.mubr.msk.f32.gmra.mxu0 %vm603_vm1, %v4558_v34  ;;  %v4929_v34 = vld [vmem:[#allocation2 + $0x27] sm:$0xff] }
 0x296   : > { %9043 = vmatprep.mubr.msk.f32.mxu0 %vm603_vm1, %v4559_v9  ;;  %v12095_v9 = vld [vmem:[#allocation2 + $0x110] sm:$0xff] }
 0x297   : > { %8994 = vmatmul.mubr.msk.f32.gmra.mxu1 %vm603_vm1, %v11997_v61 }
 0x298   : > { %8996 = vmatprep.mubr.msk.f32.mxu1 %vm603_vm1, %v12001_v8 }
 0x299   : > { %9044 = vmatmul.mubr.msk.f32.gmra.mxu0 %vm603_vm1, %v4560_v24  ;;  %v14113_v24 = vld [vmem:[#allocation71_spill] sm:$0xff] }
 0x29a   : > { %9046 = vmatprep.mubr.msk.f32.mxu0 %vm603_vm1, %v4561_v13  ;;  %v4961_v55 = vmul.f32 %v14113_v24, %v4929_v34  ;;  %v9969_v13 = vld [vmem:[#allocation2 + $0x2f] sm:$0xff]  ;;  %v14116_v34 = vld [vmem:[#allocation36_spill] sm:$0xff] }
 0x29b   : > { %8997 = vmatmul.mubr.msk.f32.gmra.mxu1 %vm603_vm1, %v12011_v39  ;;  %v1598_v56 = vmul.f32 %v12115_v44, %v14116_v34  ;;  %v14121_v34 = vld [vmem:[#allocation41_spill] sm:$0xff] }
 0x29c   : > { %8999 = vmatprep.mubr.msk.f32.mxu1 %vm603_vm1, %v12015_v17 }
 0x29d   : > { %9047 = vmatmul.mubr.msk.f32.gmra.mxu0 %vm603_vm1, %v4562_v50  ;;  %v14114_v50 = vld [vmem:[#allocation73_spill] sm:$0xff] }
 0x29e   : > { %9049 = vmatprep.mubr.msk.f32.mxu0 %vm603_vm1, %v4563_v30  ;;  %v4962_v3 = vmul.f32 %v9969_v13, %v14114_v50  ;;  %v12105_v30 = vpop.f32.mrf.mxu1 }
 0x29f   : > { %9000 = vmatmul.mubr.msk.f32.gmra.mxu1 %vm603_vm1, %v12025_v37 }
 0x2a0   : > { %9002 = vmatprep.mubr.msk.f32.mxu1 %vm603_vm1, %v12029_v48 }
 0x2a1   : > { %9050 = vmatmul.mubr.msk.f32.gmra.mxu0 %vm603_vm1, %v4564_v19  ;;  %v9970_v19 = vld [vmem:[%s14027_s20 + $0x10] sm:$0xff] }
 0x2a2   : > { %9052 = vmatprep.mubr.msk.f32.mxu0 %vm603_vm1, %v4565_v1  ;;  %v4963_v1 = vmul.f32 %v9970_v19, %v4931_v22 }
 0x2a3   : > { %9003 = vmatmul.mubr.msk.f32.gmra.mxu1 %vm603_vm1, %v12039_v51 }
 0x2a4   : > { %9005 = vmatprep.mubr.msk.f32.mxu1 %vm603_vm1, %v12043_v20 }
 0x2a5   : > { %9053 = vmatmul.mubr.msk.f32.gmra.mxu0 %vm603_vm1, %v4566_v5  ;;  %v9971_v5 = vld [vmem:[%s14027_s20 + $0x18] sm:$0xff] }
 0x2a6   : > { %9055 = vmatprep.mubr.msk.f32.mxu0 %vm603_vm1, %v4567_v35  ;;  %v4964_v46 = vmul.f32 %v9971_v5, %v4932_v49  ;;  %v14115_v35 = vld [vmem:[#allocation35_spill] sm:$0xff] }
 0x2a7   : > { %9006 = vmatmul.mubr.msk.f32.gmra.mxu1 %vm603_vm1, %v12053_v41  ;;  %v1599_v6 = vmul.f32 %v14115_v35, %v12115_v44 }
 0x2a8   : > { %9008 = vmatprep.mubr.msk.f32.mxu1 %vm603_vm1, %v12057_v25 }
 0x2a9   : > { %9056 = vmatmul.mubr.msk.f32.gmra.mxu0 %vm603_vm1, %v4568_v38  ;;  %v4934_v38 = vld [vmem:[#allocation2 + $0x4f] sm:$0xff] }
 0x2aa   : > { %9058 = vmatprep.mubr.msk.f32.mxu0 %vm603_vm1, %v4569_v60  ;;  %v4935_v60 = vld [vmem:[#allocation2 + $0x57] sm:$0xff] }
 0x2ab   : > { %9009 = vmatmul.mubr.msk.f32.gmra.mxu1 %vm603_vm1, %v12067_v4 }
 0x2ac   : > { %9011 = vmatprep.mubr.msk.f32.mxu1 %vm603_vm1, %v12071_v59 }
 0x2ad   : > { %9059 = vmatmul.mubr.msk.f32.gmra.mxu0 %vm603_vm1, %v4570_v16 }
 0x2ae   : > { %9061 = vmatprep.mubr.msk.f32.mxu0 %vm603_vm1, %v4571_v36 }
 0x2af   : > { %9012 = vmatmul.mubr.msk.f32.gmra.mxu1 %vm603_vm1, %v12081_v26 }
 0x2b0   : > { %9014 = vmatprep.mubr.msk.f32.mxu1 %vm603_vm1, %v12085_v7 }
 0x2b1   : > { %9062 = vmatmul.mubr.msk.f32.gmra.mxu0 %vm603_vm1, %v4572_v31 }
 0x2b2   : > { %9064 = vmatprep.mubr.msk.f32.mxu0 %vm603_vm1, %v4573_v23 }
 0x2b3   : > { %9015 = vmatmul.mubr.msk.f32.gmra.mxu1 %vm603_vm1, %v12095_v9 }
 0x2b4   : > { %9069 = vmatprep.mubr.msk.f32.mxu1 %vm603_vm1, %v4961_v55  ;;  %v4936_v55 = vld [vmem:[#allocation2 + $0x5f] sm:$0xff] }
 0x2b5   : > { %9065 = vmatmul.mubr.msk.f32.gmra.mxu0 %vm603_vm1, %v4574_v12  ;;  %v14117_v12 = vld [vmem:[#allocation37_spill] sm:$0xff] }
 0x2b6   : > { %9119 = vmatprep.mubr.msk.f32.mxu0 %vm603_vm1, %v11882_v40  ;;  %v8774_v10 = vpop.f32.mrf.mxu1  ;;  %v12120_v40 = vpop.f32.mrf.mxu0  ;;  %v1601_v22 = vmul.f32 %v14117_v12, %v12115_v44 }
 0x2b7   : > { %9070 = vmatmul.mubr.msk.f32.vlgmr.msra.gmra.mxu1 %vm603_vm1, %v4962_v3  ;;  %v4937_v3 = vld [vmem:[#allocation2 + $0x67] sm:$0xff] }
 0x2b8   : > { %9168 = vmatpush3.msra.mxu1 %v11877_v15  ;;  %9072 = vmatprep.mubr.msk.f32.mxu1 %vm603_vm1, %v4963_v1  ;;  %v2819_v0 = vpop.f32.mrf.mxu1  ;;  %v9972_v15 = vld [vmem:[%s14027_s20 + $0x20] sm:$0xff] }
 0x2b9   : > { %9120 = vmatmul.mubr.msk.f32.vlgmr.msra.gmra.mxu0 %vm603_vm1, %v11897_v42  ;;  %v4965_v33 = vmul.f32 %v9972_v15, %v4933_v21  ;;  %v12138_v42 = vld [vmem:[%s13913_s8] ss:$0 sm:$0xff]  ;;  %v4938_v15 = vld [vmem:[#allocation2 + $0x6f] sm:$0xff] }
 0x2ba   : > { %9122 = vmatprep.mubr.msk.f32.mxu0 %vm603_vm1, %v11902_v52  ;;  %9218 = vmatpush3.msra.mxu0 %v11892_v43  ;;  %v8824_v28 = vpop.f32.mrf.mxu0  ;;  %v8777_v53 = vpop.f32.mrf.mxu1  ;;  %v9973_v43 = vld [vmem:[%s14027_s20 + $0x28] sm:$0xff]  ;;  %v12150_v31 = vadd.f32 %v12138_v42, %v1599_v6 }
 0x2bb   : > { %9073 = vmatmul.mubr.msk.f32.gmra.mxu1 %vm603_vm1, %v4964_v46  ;;  %v12142_v52 = vadd.f32 %v8824_v28, %v8774_v10  ;;  %v4966_v16 = vmul.f32 %v9973_v43, %v4934_v38  ;;  %v9975_v10 = vld [vmem:[%s14027_s20 + $0x38] sm:$0xff]  ;;  %v14119_v38 = vld [vmem:[#allocation39_spill] sm:$0xff] }
 0x2bc   : > { %9075 = vmatprep.mubr.msk.f32.mxu1 %vm603_vm1, %v4965_v33  ;;  %v3140_v27 = vpop.f32.mrf.mxu0  ;;  %v2829_v36 = vpop.f32.mrf.mxu1  ;;  %v4968_v21 = vmul.f32 %v9975_v10, %v4936_v55  ;;  %v7628_v46 = vmul.f32 -1.442695, %v12150_v31  ;;  %v12186_v33 = vadd.f32 %v12138_v42, %v1601_v22  ;;  %v1603_v28 = vmul.f32 %v14119_v38, %v12115_v44 }
 0x2bd   : > { %9123 = vmatmul.mubr.msk.f32.gmra.mxu0 %vm603_vm1, %v11913_v14  ;;  %v12156_v23 = vadd.f32 %v3140_v27, %v2819_v0  ;;  %v9974_v14 = vld [vmem:[%s14027_s20 + $0x30] sm:$0xff]  ;;  %v12176_v0 = vadd.f32 %v12138_v42, %v1598_v56  ;;  %v1605_v56 = vmul.f32 %v14121_v34, %v12115_v44 }
 0x2be   : > { %9125 = vmatprep.mubr.msk.f32.mxu0 %vm603_vm1, %v11917_v29  ;;  %v4967_v24 = vmul.f32 %v9974_v14, %v4935_v60  ;;  %v8827_v13 = vpop.f32.mrf.mxu0  ;;  %v8780_v50 = vpop.f32.mrf.mxu1  ;;  %v14118_v29 = vld [vmem:[#allocation38_spill] sm:$0xff]  ;;  %v4939_v27 = vld [vmem:[#allocation2 + $0x77] sm:$0xff]  ;;  %9582 = vpow2.f32 %v7628_v46 }
 0x2bf   : > { %9076 = vmatmul.mubr.msk.f32.gmra.mxu1 %vm603_vm1, %v4966_v16  ;;  %v12165_v19 = vadd.f32 %v8827_v13, %v8777_v53  ;;  %v1600_v1 = vmul.f32 %v12115_v44, %v14118_v29  ;;  %v7627_v22 = vmul.f32 -1.442695, %v12176_v0  ;;  %v7630_v29 = vmul.f32 -1.442695, %v12186_v33 }
 0x2c0   : > { %9078 = vmatprep.mubr.msk.f32.mxu1 %vm603_vm1, %v4967_v24  ;;  %v3150_v49 = vpop.f32.mrf.mxu0  ;;  %v2839_v5 = vpop.f32.mrf.mxu1  ;;  %v9977_v24 = vld [vmem:[%s14027_s20 + $0x48] sm:$0xff] }
 0x2c1   : > { %9126 = vmatmul.mubr.msk.f32.gmra.mxu0 %vm603_vm1, %v11927_v54  ;;  %v12180_v35 = vadd.f32 %v3150_v49, %v2829_v36  ;;  %v9976_v54 = vld [vmem:[%s14027_s20 + $0x40] sm:$0xff]  ;;  %v12197_v36 = vadd.f32 %v12138_v42, %v1600_v1  ;;  %v4970_v55 = vmul.f32 %v9977_v24, %v4938_v15  ;;  %v12216_v1 = vadd.f32 %v12138_v42, %v1603_v28  ;;  %v14122_v49 = vld [vmem:[#allocation42_spill] sm:$0xff] }
 0x2c2   : > { %9128 = vmatprep.mubr.msk.f32.mxu0 %vm603_vm1, %v11931_v32  ;;  %v4969_v6 = vmul.f32 %v9976_v54, %v4937_v3  ;;  %v8783_v60 = vpop.f32.mrf.mxu1  ;;  %v14120_v32 = vld [vmem:[#allocation40_spill] sm:$0xff]  ;;  %v1604_v10 = vmul.f32 %v12115_v44, %v14122_v49  ;;  %9584 = vpow2.f32 %v7627_v22  ;;  %v14125_v49 = vld [vmem:[#allocation45_spill] sm:$0xff] }
 0x2c3   : > { %9079 = vmatmul.mubr.msk.f32.gmra.mxu1 %vm603_vm1, %v4968_v21  ;;  %v8830_v53 = vpop.f32.mrf.mxu0  ;;  %v1602_v43 = vmul.f32 %v12115_v44, %v14120_v32  ;;  %v4940_v3 = vld [vmem:[#allocation2 + $0x7f] sm:$0xff]  ;;  %v14123_v21 = vld [vmem:[#allocation43_spill] sm:$0xff]  ;;  %9586 = vpow2.f32 %v7630_v29  ;;  %v1609_v29 = vmul.f32 %v14125_v49, %v12115_v44 }
 0x2c4   : > { %9081 = vmatprep.mubr.msk.f32.mxu1 %vm603_vm1, %v4969_v6  ;;  %v12194_v16 = vadd.f32 %v8830_v53, %v8780_v50  ;;  %v2849_v12 = vpop.f32.mrf.mxu1  ;;  %v9978_v50 = vld [vmem:[%s14027_s20 + $0x50] sm:$0xff]  ;;  %v1607_v46 = vmul.f32 %v14123_v21, %v12115_v44  ;;  %v14124_v6 = vld [vmem:[#allocation44_spill] sm:$0xff]  ;;  %v7629_v53 = vmul.f32 -1.442695, %v12197_v36 }
 0x2c5   : > { %9129 = vmatmul.mubr.msk.f32.gmra.mxu0 %vm603_vm1, %v11941_v45  ;;  %v3160_v14 = vpop.f32.mrf.mxu0  ;;  %v4971_v45 = vmul.f32 %v9978_v50, %v4939_v27  ;;  %v12224_v54 = vadd.f32 %v12138_v42, %v1602_v43  ;;  %v1606_v15 = vmul.f32 %v12115_v44, %v14124_v6  ;;  %v12233_v27 = vadd.f32 %v12138_v42, %v1605_v56  ;;  %v9979_v43 = vld [vmem:[%s14027_s20 + $0x58] sm:$0xff]  ;;  %v9980_v56 = vld [vmem:[%s14027_s20 + $0x60] sm:$0xff] }
 0x2c6   : > { %9131 = vmatprep.mubr.msk.f32.mxu0 %vm603_vm1, %v11945_v58  ;;  %v12209_v13 = vadd.f32 %v3160_v14, %v2839_v5  ;;  %v4941_v5 = vld [vmem:[#allocation2 + $0x87] sm:$0xff]  ;;  %v4972_v34 = vmul.f32 %v9979_v43, %v4940_v3  ;;  %v12249_v50 = vadd.f32 %v12138_v42, %v1604_v10  ;;  %v12252_v22 = vadd.f32 %v12138_v42, %v1607_v46 }
 0x2c7   : > { %9082 = vmatmul.mubr.msk.f32.gmra.mxu1 %vm603_vm1, %v4970_v55  ;;  %v8833_v58 = vpop.f32.mrf.mxu0  ;;  %v8786_v28 = vpop.f32.mrf.mxu1  ;;  %v4973_v14 = vmul.f32 %v9980_v56, %v4941_v5  ;;  %v4942_v55 = vld [vmem:[#allocation2 + $0x8f] sm:$0xff]  ;;  %v12257_v3 = vadd.f32 %v12138_v42, %v1606_v15  ;;  %9588 = vpow2.f32 %v7629_v53  ;;  %v7634_v46 = vmul.f32 -1.442695, %v12233_v27  ;;  %v4944_v56 = vld [vmem:[#allocation2 + $0x9f] sm:$0xff] }
 0x2c8   : > { %9084 = vmatprep.mubr.msk.f32.mxu1 %vm603_vm1, %v4971_v45  ;;  %v12229_v38 = vadd.f32 %v8833_v58, %v8783_v60  ;;  %v7631_v45 = vmul.f32 -1.442695, %v12224_v54  ;;  %v14126_v58 = vld [vmem:[#allocation46_spill] sm:$0xff]  ;;  %v9982_v53 = vld [vmem:[%s14027_s20 + $0x70] sm:$0xff] }
 0x2c9   : > { %9132 = vmatmul.mubr.msk.f32.gmra.mxu0 %vm603_vm1, %v11955_v57  ;;  %v3170_v32 = vpop.f32.mrf.mxu0  ;;  %v2859_v24 = vpop.f32.mrf.mxu1  ;;  %v7632_v57 = vmul.f32 -1.442695, %v12216_v1  ;;  %v1608_v5 = vmul.f32 %v12115_v44, %v14126_v58  ;;  %v9981_v15 = vld [vmem:[%s14027_s20 + $0x68] sm:$0xff]  ;;  %v14127_v58 = vld [vmem:[#allocation47_spill] sm:$0xff] }
 0x2ca   : > { %9134 = vmatprep.mubr.msk.f32.mxu0 %vm603_vm1, %v11959_v18  ;;  %v12242_v60 = vadd.f32 %v3170_v32, %v2849_v12  ;;  %v4943_v12 = vld [vmem:[#allocation2 + $0x97] sm:$0xff]  ;;  %v4974_v32 = vmul.f32 %v9981_v15, %v4942_v55 }
 0x2cb   : > { %9085 = vmatmul.mubr.msk.f32.gmra.mxu1 %vm603_vm1, %v4972_v34  ;;  %v8836_v18 = vpop.f32.mrf.mxu0  ;;  %v4975_v43 = vmul.f32 %v9982_v53, %v4943_v12  ;;  %9590 = vpow2.f32 %v7632_v57  ;;  %v12290_v57 = vadd.f32 %v12138_v42, %v1608_v5  ;;  %v4946_v53 = vld [vmem:[#allocation2 + $0xaf] sm:$0xff] }
 0x2cc   : > { %9087 = vmatprep.mubr.msk.f32.mxu1 %vm603_vm1, %v4973_v14  ;;  %v12262_v21 = vadd.f32 %v8836_v18, %v8786_v28  ;;  %v8789_v10 = vpop.f32.mrf.mxu1  ;;  %v7636_v14 = vmul.f32 -1.442695, %v12252_v22  ;;  %v4945_v18 = vld [vmem:[#allocation2 + $0xa7] sm:$0xff]  ;;  %9592 = vpow2.f32 %v7631_v45 }
 0x2cd   : > { %9135 = vmatmul.mubr.msk.f32.gmra.mxu0 %vm603_vm1, %v11969_v63  ;;  %v3180_v6 = vpop.f32.mrf.mxu0  ;;  %v7633_v63 = vmul.f32 -1.442695, %v12249_v50  ;;  %9594 = vpow2.f32 %v7634_v46  ;;  %v9984_v46 = vld [vmem:[%s14027_s20 + $0x80] sm:$0xff] }
 0x2ce   : > { %9137 = vmatprep.mubr.msk.f32.mxu0 %vm603_vm1, %v11973_v47  ;;  %v12274_v28 = vadd.f32 %v3180_v6, %v2859_v24  ;;  %v2869_v34 = vpop.f32.mrf.mxu1  ;;  %v7635_v47 = vmul.f32 -1.442695, %v12257_v3  ;;  %v12284_v24 = vadd.f32 %v12138_v42, %v1609_v29  ;;  %v1611_v6 = vmul.f32 %v14127_v58, %v12115_v44  ;;  %v9983_v29 = vld [vmem:[%s14027_s20 + $0x78] sm:$0xff]  ;;  %v14128_v58 = vld [vmem:[#allocation49_spill] sm:$0xff] }
 0x2cf   : > { %9088 = vmatmul.mubr.msk.f32.gmra.mxu1 %vm603_vm1, %v4974_v32  ;;  %v8839_v55 = vpop.f32.mrf.mxu0  ;;  %v4976_v15 = vmul.f32 %v9983_v29, %v4944_v56  ;;  %v4977_v5 = vmul.f32 %v9984_v46, %v4945_v18  ;;  %9596 = vpow2.f32 %v7633_v63  ;;  %v7637_v18 = vmul.f32 -1.442695, %v12290_v57  ;;  %v9985_v29 = vld [vmem:[%s14027_s20 + $0x88] sm:$0xff] }
 0x2d0   : > { %9090 = vmatprep.mubr.msk.f32.mxu1 %vm603_vm1, %v4975_v43  ;;  %v12287_v12 = vadd.f32 %v8839_v55, %v8789_v10  ;;  %v8792_v49 = vpop.f32.mrf.mxu1  ;;  %v9583_v43 = vpop.eup %9582  ;;  %v4947_v55 = vld [vmem:[#allocation2 + $0xb7] sm:$0xff]  ;;  %9598 = vpow2.f32 %v7636_v14  ;;  %v7638_v56 = vmul.f32 -1.442695, %v12284_v24  ;;  %v12315_v63 = vadd.f32 %v12138_v42, %v1611_v6 }
 0x2d1   : > { %9138 = vmatmul.mubr.msk.f32.gmra.mxu0 %vm603_vm1, %v11983_v2  ;;  %v3190_v45 = vpop.f32.mrf.mxu0  ;;  %9600 = vpow2.f32 %v7635_v47  ;;  %v9986_v47 = vld [vmem:[%s14027_s20 + $0x90] sm:$0xff] }
 0x2d2   : > { %9140 = vmatprep.mubr.msk.f32.mxu0 %vm603_vm1, %v11987_v62  ;;  %v12301_v10 = vadd.f32 %v3190_v45, %v2869_v34  ;;  %v2879_v32 = vpop.f32.mrf.mxu1  ;;  %v1610_v62 = vmul.f32 %v12115_v44, %v14128_v58  ;;  %v4979_v6 = vmul.f32 %v9986_v47, %v4947_v55  ;;  %9602 = vpow2.f32 %v7638_v56 }
 0x2d3   : > { %9091 = vmatmul.mubr.msk.f32.gmra.mxu1 %vm603_vm1, %v4976_v15  ;;  %v8842_v2 = vpop.f32.mrf.mxu0  ;;  %v4978_v15 = vmul.f32 %v9985_v29, %v4946_v53  ;;  %9604 = vpow2.f32 %v7637_v18 }
 0x2d4   : > { %9093 = vmatprep.mubr.msk.f32.mxu1 %vm603_vm1, %v4977_v5  ;;  %v12311_v34 = vadd.f32 %v8842_v2, %v8792_v49  ;;  %v8795_v45 = vpop.f32.mrf.mxu1  ;;  %v4948_v5 = vld [vmem:[#allocation2 + $0xbf] sm:$0xff]  ;;  %v9585_v2 = vpop.eup %9584  ;;  %v12331_v53 = vadd.f32 %v12138_v42, %v1610_v62 }
 0x2d5   : > { %9141 = vmatmul.mubr.msk.f32.gmra.mxu0 %vm603_vm1, %v11997_v61  ;;  %v3200_v14 = vpop.f32.mrf.mxu0  ;;  %v1766_v61 = vadd.f32 1.0, %v9583_v43  ;;  %v1765_v62 = vadd.f32 1.0, %v9585_v2 }
 0x2d6   : > { %14129 = vst [vmem:[#allocation65_spill] sm:$0xff] %v12311_v34  ;;  %9143 = vmatprep.mubr.msk.f32.mxu0 %vm603_vm1, %v12001_v8  ;;  %v12324_v49 = vadd.f32 %v3200_v14, %v2879_v32  ;;  %v2889_v46 = vpop.f32.mrf.mxu1  ;;  %v9587_v34 = vpop.eup %9586  ;;  %v7640_v32 = vmul.f32 -1.442695, %v12315_v63  ;;  %v9987_v14 = vld [vmem:[%s14027_s20 + $0x98] sm:$0xff] }
 0x2d7   : > { %9094 = vmatmul.mubr.msk.f32.gmra.mxu1 %vm603_vm1, %v4978_v15  ;;  %v8845_v58 = vpop.f32.mrf.mxu0  ;;  %v4980_v56 = vmul.f32 %v9987_v14, %v4948_v5  ;;  %v9589_v29 = vpop.eup %9588  ;;  %v14132_v15 = vld [vmem:[#allocation50_spill] sm:$0xff]  ;;  %9606 = vrcp.f32 %v1766_v61  ;;  %v4951_v14 = vld [vmem:[#allocation2 + $0xd7] sm:$0xff] }
 0x2d8   : > { %14130 = vst [vmem:[#allocation61_spill] sm:$0xff] %v12324_v49  ;;  %9096 = vmatprep.mubr.msk.f32.mxu1 %vm603_vm1, %v4979_v6  ;;  %v12334_v8 = vadd.f32 %v8845_v58, %v8795_v45  ;;  %v8798_v43 = vpop.f32.mrf.mxu1  ;;  %v1613_v47 = vmul.f32 %v14132_v15, %v12115_v44  ;;  %v4950_v6 = vld [vmem:[#allocation2 + $0xcf] sm:$0xff]  ;;  %v1768_v58 = vadd.f32 1.0, %v9587_v34  ;;  %v7639_v15 = vmul.f32 -1.442695, %v12331_v53 }
 0x2d9   : > { %9144 = vmatmul.mubr.msk.f32.gmra.mxu0 %vm603_vm1, %v12011_v39  ;;  %v3210_v55 = vpop.f32.mrf.mxu0  ;;  %v9988_v39 = vld [vmem:[%s14027_s20 + $0xa0] sm:$0xff]  ;;  %9608 = vpow2.f32 %v7640_v32  ;;  %v9989_v34 = vld [vmem:[%s14027_s20 + $0xa8] sm:$0xff] }
 0x2da   : > { %14131 = vst [vmem:[#allocation63_spill] sm:$0xff] %v12334_v8  ;;  %9146 = vmatprep.mubr.msk.f32.mxu0 %vm603_vm1, %v12015_v17  ;;  %v12346_v45 = vadd.f32 %v3210_v55, %v2889_v46  ;;  %v4981_v18 = vmul.f32 %v9988_v39, %v4949_v11  ;;  %v2899_v5 = vpop.f32.mrf.mxu1  ;;  %v9591_v8 = vpop.eup %9590  ;;  %v1767_v55 = vadd.f32 1.0, %v9589_v29  ;;  %v4982_v61 = vmul.f32 %v9989_v34, %v4950_v6  ;;  %v4952_v29 = vld [vmem:[#allocation2 + $0xdf] sm:$0xff] }
 0x2db   : > { %9097 = vmatmul.mubr.msk.f32.gmra.mxu1 %vm603_vm1, %v4980_v56  ;;  %v8848_v2 = vpop.f32.mrf.mxu0  ;;  %v9593_v46 = vpop.eup %9592  ;;  %9610 = vrcp.f32 %v1765_v62  ;;  %v12362_v39 = vadd.f32 %v12138_v42, %v1613_v47  ;;  %v4953_v47 = vld [vmem:[#allocation2 + $0xe7] sm:$0xff] }
 0x2dc   : > { %14133 = vst [vmem:[#allocation67_spill] sm:$0xff] %v12346_v45  ;;  %9099 = vmatprep.mubr.msk.f32.mxu1 %vm603_vm1, %v4981_v18  ;;  %v12354_v17 = vadd.f32 %v8848_v2, %v8798_v43  ;;  %v9595_v56 = vpop.eup %9594  ;;  %9612 = vrcp.f32 %v1768_v58  ;;  %v1770_v18 = vadd.f32 1.0, %v9591_v8  ;;  %v14136_v2 = vld [vmem:[#allocation51_spill] sm:$0xff]  ;;  %v9991_v8 = vld [vmem:[%s14027_s20 + $0xb8] sm:$0xff] }
 0x2dd   : > { %9147 = vmatmul.mubr.msk.f32.gmra.mxu0 %vm603_vm1, %v12025_v37  ;;  %v3220_v11 = vpop.f32.mrf.mxu0  ;;  %v9990_v37 = vld [vmem:[%s14027_s20 + $0xb0] sm:$0xff]  ;;  %v1612_v6 = vmul.f32 %v12115_v44, %v14136_v2  ;;  %v9597_v34 = vpop.eup %9596  ;;  %9614 = vpow2.f32 %v7639_v15  ;;  %v4984_v58 = vmul.f32 %v9991_v8, %v4952_v29  ;;  %v14139_v8 = vld [vmem:[#allocation52_spill] sm:$0xff] }
 0x2de   : > { %14134 = vst [vmem:[#allocation68_spill] sm:$0xff] %v12354_v17  ;;  %9149 = vmatprep.mubr.msk.f32.mxu0 %vm603_vm1, %v12029_v48  ;;  %v12366_v43 = vadd.f32 %v3220_v11, %v2899_v5  ;;  %v4983_v32 = vmul.f32 %v9990_v37, %v4951_v14  ;;  %v8801_v62 = vpop.f32.mrf.mxu1  ;;  %v1769_v17 = vadd.f32 1.0, %v9593_v46  ;;  %v9599_v48 = vpop.eup %9598  ;;  %9616 = vrcp.f32 %v1767_v55  ;;  %v14137_v46 = vld [vmem:[#allocation53_spill] sm:$0xff] }
 0x2df   : > { %9100 = vmatmul.mubr.msk.f32.gmra.mxu1 %vm603_vm1, %v4982_v61  ;;  %v1772_v5 = vadd.f32 1.0, %v9595_v56  ;;  %v9601_v61 = vpop.eup %9600  ;;  %v7642_v37 = vmul.f32 -1.442695, %v12362_v39  ;;  %v1614_v15 = vmul.f32 %v12115_v44, %v14137_v46  ;;  %v4954_v56 = vld [vmem:[#allocation2 + $0xef] sm:$0xff]  ;;  %9618 = vrcp.f32 %v1770_v18 }
 0x2e0   : > { %14135 = vst [vmem:[#allocation70_spill] sm:$0xff] %v12366_v43  ;;  %9102 = vmatprep.mubr.msk.f32.mxu1 %vm603_vm1, %v4983_v32  ;;  %v2909_v11 = vpop.f32.mrf.mxu1  ;;  %v1771_v2 = vadd.f32 1.0, %v9597_v34  ;;  %v12391_v29 = vadd.f32 %v12138_v42, %v1612_v6  ;;  %v1615_v43 = vmul.f32 %v14139_v8, %v12115_v44  ;;  %9620 = vrcp.f32 %v1769_v17 }
 0x2e1   : > { %v8851_v14 = vpop.f32.mrf.mxu0  ;;  %9150 = vmatmul.mubr.msk.f32.gmra.mxu0 %vm603_vm1, %v12039_v51  ;;  %v9992_v51 = vld [vmem:[%s14027_s20 + $0xc0] sm:$0xff]  ;;  %9622 = vrcp.f32 %v1772_v5  ;;  %v1773_v18 = vadd.f32 1.0, %v9601_v61  ;;  %v12405_v17 = vadd.f32 %v12138_v42, %v1614_v15  ;;  %v9994_v5 = vld [vmem:[%s14027_s20 + $0xd0] sm:$0xff] }
 0x2e2   : > { %v12383_v32 = vadd.f32 %v8851_v14, %v8801_v62  ;;  %9152 = vmatprep.mubr.msk.f32.mxu0 %vm603_vm1, %v12043_v20  ;;  %v4985_v55 = vmul.f32 %v9992_v51, %v4953_v47  ;;  %v8804_v46 = vpop.f32.mrf.mxu1  ;;  %v4955_v14 = vld [vmem:[#allocation2 + $0xf7] sm:$0xff]  ;;  %v1774_v20 = vadd.f32 1.0, %v9599_v48  ;;  %v9603_v47 = vpop.eup %9602  ;;  %v9993_v51 = vld [vmem:[%s14027_s20 + $0xc8] sm:$0xff]  ;;  %9624 = vpow2.f32 %v7642_v37 }
 0x2e3   : > { %v3230_v62 = vpop.f32.mrf.mxu0  ;;  %9103 = vmatmul.mubr.msk.f32.gmra.mxu1 %vm603_vm1, %v4984_v58  ;;  %v4986_v58 = vmul.f32 %v9993_v51, %v4954_v56  ;;  %v9605_v8 = vpop.eup %9604  ;;  %9626 = vrcp.f32 %v1771_v2  ;;  %v7641_v61 = vmul.f32 -1.442695, %v12391_v29  ;;  %v14143_v37 = vld [vmem:[#allocation58_spill] sm:$0xff] }
 0x2e4   : > { %14138 = vst [vmem:[#allocation81_spill] sm:$0xff] %v12383_v32  ;;  %v12396_v32 = vadd.f32 %v3230_v62, %v2909_v11  ;;  %9105 = vmatprep.mubr.msk.f32.mxu1 %vm603_vm1, %v4985_v55  ;;  %v2919_v34 = vpop.f32.mrf.mxu1  ;;  %v4956_v11 = vld [vmem:[#allocation2 + $0xff] sm:$0xff]  ;;  %v12416_v55 = vadd.f32 %v12138_v42, %v1615_v43  ;;  %v1616_v15 = vmul.f32 %v12115_v44, %v14143_v37  ;;  %v9607_v62 = vpop.eup %9606  ;;  %9628 = vrcp.f32 %v1774_v20 }
 0x2e5   : > { %v8854_v6 = vpop.f32.mrf.mxu0  ;;  %9153 = vmatmul.mubr.msk.f32.gmra.mxu0 %vm603_vm1, %v12053_v41  ;;  %v4987_v41 = vmul.f32 %v9994_v5, %v4955_v14  ;;  %v14144_v14 = vld [vmem:[#allocation55_spill] sm:$0xff]  ;;  %9630 = vrcp.f32 %v1773_v18  ;;  %v1775_v43 = vadd.f32 1.0, %v9605_v8  ;;  %v7643_v37 = vmul.f32 -1.442695, %v12405_v17 }
 0x2e6   : > { %14140 = vst [vmem:[#allocation84_spill] sm:$0xff] %v12396_v32  ;;  %v12407_v48 = vadd.f32 %v8854_v6, %v8804_v46  ;;  %9155 = vmatprep.mubr.msk.f32.mxu0 %vm603_vm1, %v12057_v25  ;;  %14142 = vst [vmem:[#allocation85_spill] sm:$0xff] %v12416_v55  ;;  %v8807_v56 = vpop.f32.mrf.mxu1  ;;  %v4957_v25 = vld [vmem:[#allocation2 + $0x107] sm:$0xff]  ;;  %v1776_v6 = vadd.f32 1.0, %v9603_v47  ;;  %v1617_v51 = vmul.f32 %v14144_v14, %v12115_v44  ;;  %v9609_v47 = vpop.eup %9608  ;;  %v4958_v8 = vld [vmem:[#allocation2 + $0x10f] sm:$0xff]  ;;  %9632 = vpow2.f32 %v7641_v61 }
 0x2e7   : > { %v3240_v46 = vpop.f32.mrf.mxu0  ;;  %9106 = vmatmul.mubr.msk.f32.gmra.mxu1 %vm603_vm1, %v4986_v58  ;;  %v9995_v58 = vld [vmem:[%s14027_s20 + $0xd8] sm:$0xff]  ;;  %v14146_v14 = vld [vmem:[#allocation66_spill] sm:$0xff] }
 0x2e8   : > { %14141 = vst [vmem:[#allocation87_spill] sm:$0xff] %v12407_v48  ;;  %v12423_v2 = vadd.f32 %v3240_v46, %v2919_v34  ;;  %9108 = vmatprep.mubr.msk.f32.mxu1 %vm603_vm1, %v4987_v41  ;;  %v2929_v5 = vpop.f32.mrf.mxu1  ;;  %v4988_v20 = vmul.f32 %v9995_v58, %v4956_v11  ;;  %v1618_v34 = vmul.f32 %v12115_v44, %v14146_v14  ;;  %v9611_v41 = vpop.eup %9610  ;;  %9634 = vrcp.f32 %v1776_v6  ;;  %v4960_v61 = vld [vmem:[#allocation2 + $0x11f] sm:$0xff]  ;;  %v9997_v6 = vld [vmem:[%s14027_s20 + $0xe8] sm:$0xff] }
 0x2e9   : > { %v8857_v48 = vpop.f32.mrf.mxu0  ;;  %9156 = vmatmul.mubr.msk.f32.gmra.mxu0 %vm603_vm1, %v12067_v4  ;;  %v9996_v4 = vld [vmem:[%s14027_s20 + $0xe0] sm:$0xff]  ;;  %v12442_v11 = vmul.f32 %v9607_v62, %v12150_v31  ;;  %v12445_v58 = vadd.f32 %v12138_v42, %v1616_v15  ;;  %9636 = vrcp.f32 %v1775_v43  ;;  %v1778_v62 = vadd.f32 1.0, %v9609_v47  ;;  %v9998_v47 = vld [vmem:[%s14027_s20 + $0xf0] sm:$0xff] }
 0x2ea   : > { %14145 = vst [vmem:[#allocation88_spill] sm:$0xff] %v12423_v2  ;;  %v12434_v46 = vadd.f32 %v8857_v48, %v8807_v56  ;;  %9158 = vmatprep.mubr.msk.f32.mxu0 %vm603_vm1, %v12071_v59  ;;  %v4989_v18 = vmul.f32 %v9996_v4, %v4957_v25  ;;  %v14149_v48 = vld [vmem:[#allocation62_spill] sm:$0xff]  ;;  %v8810_v14 = vpop.f32.mrf.mxu1  ;;  %v4959_v59 = vld [vmem:[#allocation2 + $0x117] sm:$0xff]  ;;  %v9613_v2 = vpop.eup %9612  ;;  %v7644_v25 = vmul.f32 -1.442695, %v12416_v55  ;;  %v12452_v4 = vadd.f32 %v12138_v42, %v1617_v51 }
 0x2eb   : > { %14148 = vst [vmem:[#allocation89_spill] sm:$0xff] %v12445_v58  ;;  %v1619_v56 = vmul.f32 %v14149_v48, %v12115_v44  ;;  %9109 = vmatmul.mubr.msk.f32.gmra.mxu1 %vm603_vm1, %v4988_v20  ;;  %v9615_v15 = vpop.eup %9614  ;;  %v14151_v48 = vld [vmem:[#allocation69_spill] sm:$0xff]  ;;  %v4990_v51 = vmul.f32 %v9997_v6, %v4958_v8  ;;  %9638 = vpow2.f32 %v7643_v37  ;;  %v14153_v8 = vld [vmem:[#allocation72_spill] sm:$0xff] }
 0x2ec   : > { %14147 = vst [vmem:[#allocation86_spill] sm:$0xff] %v12434_v46  ;;  %v3250_v46 = vpop.f32.mrf.mxu0  ;;  %9111 = vmatprep.mubr.msk.f32.mxu1 %vm603_vm1, %v4989_v18  ;;  %v1621_v32 = vmul.f32 %v14151_v48, %v12115_v44  ;;  %v2939_v20 = vpop.f32.mrf.mxu1  ;;  %v7645_v18 = vmul.f32 -1.442695, %v12445_v58  ;;  %v1620_v37 = vmul.f32 %v12115_v44, %v14153_v8  ;;  %9640 = vpow2.f32 %v7644_v25 }
 0x2ed   : > { %v12454_v31 = vadd.f32 %v3250_v46, %v2929_v5  ;;  %9159 = vmatmul.mubr.msk.f32.gmra.mxu0 %vm603_vm1, %v12081_v26  ;;  %v9617_v5 = vpop.eup %9616  ;;  %v12465_v46 = vadd.f32 %v12138_v42, %v1618_v34  ;;  %v4991_v26 = vmul.f32 %v9998_v47, %v4959_v59  ;;  %v12476_v48 = vadd.f32 %v12138_v42, %v1619_v56  ;;  %v14154_v56 = vld [vmem:[#allocation74_spill] sm:$0xff] }
 0x2ee   : > { %v8860_v45 = vpop.f32.mrf.mxu0  ;;  %9161 = vmatprep.mubr.msk.f32.mxu0 %vm603_vm1, %v12085_v7  ;;  %v8813_v34 = vpop.f32.mrf.mxu1  ;;  %v9999_v7 = vld [vmem:[%s14027_s20 + $0xf8] sm:$0xff]  ;;  %v1861_v47 = vmul.f32 %v9611_v41, %v12176_v0  ;;  %v1623_v58 = vmul.f32 %v14154_v56, %v12115_v44  ;;  %9642 = vrcp.f32 %v1778_v62  ;;  %v12514_v62 = vadd.f32 %v12138_v42, %v1620_v37 }
 0x2ef   : > { %14150 = vst [vmem:[#allocation54_spill] sm:$0xff] %v12454_v31  ;;  %v12467_v43 = vadd.f32 %v8860_v45, %v8810_v14  ;;  %9112 = vmatmul.mubr.msk.f32.gmra.mxu1 %vm603_vm1, %v4990_v51  ;;  %v4992_v45 = vmul.f32 %v9999_v7, %v4960_v61  ;;  %v5377_v14 = vld [vmem:[#allocation2 + $0x118] sm:$0xff]  ;;  %v9619_v59 = vpop.eup %9618  ;;  %v1777_v31 = vadd.f32 1.0, %v9615_v15  ;;  %v7646_v51 = vmul.f32 -1.442695, %v12452_v4  ;;  %v14157_v7 = vld [vmem:[#allocation75_spill] sm:$0xff] }
 0x2f0   : > { %v3260_v6 = vpop.f32.mrf.mxu0  ;;  %9114 = vmatprep.mubr.msk.f32.mxu1 %vm603_vm1, %v4991_v26  ;;  %v12490_v8 = vpop.eup %9620  ;;  %v12494_v61 = vadd.f32 %v12138_v42, %v1621_v32  ;;  %v1622_v49 = vmul.f32 %v12115_v44, %v14157_v7  ;;  %v10000_v32 = vld [vmem:[%s14040_s2] sm:$0xff]  ;;  %v12510_v7 = vmul.f32 %v9613_v2, %v12186_v33  ;;  %9644 = vpow2.f32 %v7645_v18  ;;  %14159 = vst [vmem:[#allocation73_spill] sm:$0xff] %v12514_v62 }
 0x2f1   : > { %14152 = vst [vmem:[#allocation57_spill] sm:$0xff] %v12467_v43  ;;  %v5733_v43 = vld [vmem:[#allocation2 + $0x29] sm:$0xff]  ;;  %v12487_v55 = vadd.f32 %v3260_v6, %v2939_v20  ;;  %v2949_v0 = vpop.f32.mrf.mxu1  ;;  %9162 = vmatmul.mubr.msk.f32.gmra.mxu0 %vm603_vm1, %v12095_v9  ;;  %v12500_v15 = vpop.eup %9622  ;;  %v7647_v20 = vmul.f32 -1.442695, %v12465_v46  ;;  %v5378_v6 = vld [vmem:[#allocation2 + $0x120] sm:$0xff]  ;;  %9646 = vrcp.f32 %v1777_v31 }
 0x2f2   : > { %14156 = vst [vmem:[#allocation59_spill] sm:$0xff] %v12494_v61  ;;  %v8863_v41 = vpop.f32.mrf.mxu0  ;;  %9164 = vmatprep.mubr.msk.f32.mxu0 %vm603_vm1, %v5377_v14  ;;  %v5765_v25 = vmul.f32 %v10000_v32, %v5733_v43  ;;  %v9625_v56 = vpop.eup %9624  ;;  %v7648_v9 = vmul.f32 -1.442695, %v12476_v48  ;;  %v5735_v14 = vld [vmem:[#allocation2 + $0x39] sm:$0xff]  ;;  %v1863_v43 = vmul.f32 %v9617_v5, %v12197_v36  ;;  %v12521_v32 = vadd.f32 %v12138_v42, %v1623_v58 }
 0x2f3   : > { %14155 = vst [vmem:[#allocation56_spill] sm:$0xff] %v12487_v55  ;;  %v12503_v26 = vadd.f32 %v8863_v41, %v8813_v34  ;;  %v8816_v34 = vpop.f32.mrf.mxu1  ;;  %9115 = vmatmul.mubr.msk.f32.gmra.mxu1 %vm603_vm1, %v4992_v45  ;;  %9648 = vpow2.f32 %v7646_v51  ;;  %v7650_v18 = vmul.f32 -1.442695, %v12494_v61  ;;  %v12530_v37 = vadd.f32 %v12138_v42, %v1622_v49  ;;  %v14161_v45 = vld [vmem:[#allocation76_spill] sm:$0xff]  ;;  %v10001_v49 = vld [vmem:[%s14040_s2 + $0x10] sm:$0xff] }
 0x2f4   : > { %v3270_v41 = vpop.f32.mrf.mxu0  ;;  %9169 = vmatprep.mubr.msk.f32.mxu1 %vm603_vm1, %v5765_v25  ;;  %v1625_v55 = vmul.f32 %v14161_v45, %v12115_v44  ;;  %v1780_v5 = vadd.f32 1.0, %v9625_v56  ;;  %9650 = vpow2.f32 %v7647_v20  ;;  %v5767_v51 = vmul.f32 %v10001_v49, %v5735_v14  ;;  %v5736_v25 = vld [vmem:[#allocation2 + $0x41] sm:$0xff] }
 0x2f5   : > { %14158 = vst [vmem:[#allocation71_spill] sm:$0xff] %v12503_v26  ;;  %v12517_v26 = vpop.eup %9626  ;;  %v12523_v33 = vadd.f32 %v3270_v41, %v2949_v0  ;;  %v2959_v36 = vpop.f32.mrf.mxu1  ;;  %9165 = vmatmul.mubr.msk.f32.gmra.mxu0 %vm603_vm1, %v5378_v6  ;;  %v12544_v41 = vmul.f32 %v9619_v59, %v12216_v1  ;;  %9652 = vpow2.f32 %v7648_v9  ;;  %v7649_v6 = vmul.f32 -1.442695, %v12514_v62  ;;  %v14163_v45 = vld [vmem:[#allocation77_spill] sm:$0xff]  ;;  %v14166_v59 = vld [vmem:[#allocation83_spill] sm:$0xff] }
 0x2f6   : > { %v12526_v2 = vpop.eup %9628  ;;  %v8866_v31 = vpop.f32.mrf.mxu0  ;;  %9219 = vmatprep.mubr.msk.f32.mxu0 %vm603_vm1, %v1861_v47  ;;  %v1624_v56 = vmul.f32 %v12115_v44, %v14163_v45  ;;  %v5737_v47 = vld [vmem:[#allocation2 + $0x49] sm:$0xff]  ;;  %v3131_v14 = vadd.f32 %v12120_v40, %v12105_v30  ;;  %9654 = vpow2.f32 %v7650_v18  ;;  %v7651_v45 = vmul.f32 -1.442695, %v12530_v37  ;;  %v10002_v30 = vld [vmem:[%s14040_s2 + $0x18] sm:$0xff] }
 0x2f7   : > { %14160 = vst [vmem:[#allocation35_spill] sm:$0xff] %v12523_v33  ;;  %v12535_v58 = vpop.eup %9630  ;;  %v12537_v0 = vadd.f32 %v8866_v31, %v8816_v34  ;;  %v8871_v34 = vpop.f32.mrf.mxu1  ;;  %v14164_v31 = vld [vmem:[#allocation48_spill] sm:$0xff]  ;;  %v7652_v33 = vmul.f32 -1.442695, %v12521_v32  ;;  %v5768_v40 = vmul.f32 %v10002_v30, %v5736_v25  ;;  %9656 = vrcp.f32 %v1780_v5  ;;  %v14167_v5 = vld [vmem:[#allocation79_spill] sm:$0xff] }
 0x2f8   : > { %v3280_v20 = vpop.f32.mrf.mxu0  ;;  %9170 = vmatmul.mubr.msk.f32.vlgmr.msra.gmra.mxu1 %vm603_vm1, %v14164_v31  ;;  %v3676_v9 = vadd.f32 %v8871_v34, %v14166_v59  ;;  %v12562_v31 = vadd.f32 %v12138_v42, %v1625_v55  ;;  %v10003_v55 = vld [vmem:[%s14040_s2 + $0x20] sm:$0xff]  ;;  %v5738_v34 = vld [vmem:[#allocation2 + $0x51] sm:$0xff]  ;;  %v1865_v59 = vmul.f32 %v12490_v8, %v12224_v54  ;;  %9658 = vpow2.f32 %v7649_v6 }
 0x2f9   : > { %14162 = vst [vmem:[#allocation36_spill] sm:$0xff] %v12537_v0  ;;  %v9633_v0 = vpop.eup %9632  ;;  %v12554_v1 = vadd.f32 %v3280_v20, %v2959_v36  ;;  %9172 = vmatprep.mubr.msk.f32.mxu1 %vm603_vm1, %v5767_v51  ;;  %v3516_v61 = vpop.f32.mrf.mxu1  ;;  %9220 = vmatmul.mubr.msk.f32.vlgmr.msra.gmra.mxu0 %vm603_vm1, %v12442_v11  ;;  %v5769_v20 = vmul.f32 %v10003_v55, %v5737_v47  ;;  %9660 = vpow2.f32 %v7652_v33 }
 0x2fa   : > { %v12558_v49 = vpop.eup %9634  ;;  %v8921_v62 = vpop.f32.mrf.mxu0  ;;  %v3675_v51 = vadd.f32 %v3516_v61, %v3131_v14  ;;  %9222 = vmatprep.mubr.msk.f32.mxu0 %vm603_vm1, %v1863_v43  ;;  %v12580_v25 = vadd.f32 %v12138_v42, %v1624_v56  ;;  %v5739_v43 = vld [vmem:[#allocation2 + $0x59] sm:$0xff]  ;;  %v1626_v14 = vmul.f32 %v12115_v44, %v14167_v5  ;;  %v12591_v54 = vmul.f32 %v12500_v15, %v12233_v27  ;;  %v10005_v27 = vld [vmem:[%s14040_s2 + $0x30] sm:$0xff]  ;;  %v14169_v5 = vld [vmem:[#allocation82_spill] sm:$0xff] }
 0x2fb   : > { %14165 = vst [vmem:[#allocation37_spill] sm:$0xff] %v12554_v1  ;;  %v12569_v36 = vpop.eup %9636  ;;  %v12571_v18 = vadd.f32 %v8921_v62, %v3676_v9  ;;  %v1779_v1 = vadd.f32 1.0, %v9633_v0  ;;  %v8874_v61 = vpop.f32.mrf.mxu1  ;;  %9662 = vpow2.f32 %v7651_v45  ;;  %v7654_v8 = vmul.f32 -1.442695, %v12562_v31  ;;  %v5740_v45 = vld [vmem:[#allocation2 + $0x61] sm:$0xff] }
 0x2fc   : > { %v9639_v11 = vpop.eup %9638  ;;  %v3934_v62 = vpop.f32.mrf.mxu0  ;;  %9173 = vmatmul.mubr.msk.f32.gmra.mxu1 %vm603_vm1, %v5768_v40  ;;  %v3678_v47 = vadd.f32 %v8874_v61, %v12142_v52  ;;  %v10004_v52 = vld [vmem:[%s14040_s2 + $0x28] sm:$0xff]  ;;  %v5771_v15 = vmul.f32 %v10005_v27, %v5739_v43  ;;  %v1867_v55 = vmul.f32 %v12517_v26, %v12249_v50  ;;  %v12615_v43 = vadd.f32 %v12138_v42, %v1626_v14 }
 0x2fd   : > { %v12586_v9 = vadd.f32 %v3934_v62, %v3675_v51  ;;  %9175 = vmatprep.mubr.msk.f32.mxu1 %vm603_vm1, %v5769_v20  ;;  %v3526_v0 = vpop.f32.mrf.mxu1  ;;  %9223 = vmatmul.mubr.msk.f32.gmra.mxu0 %vm603_vm1, %v12510_v7  ;;  %v5770_v33 = vmul.f32 %v10004_v52, %v5738_v34  ;;  %v9641_v56 = vpop.eup %9640  ;;  %v1781_v30 = vadd.f32 1.0, %v9639_v11  ;;  %9664 = vrcp.f32 %v1779_v1 }
 0x2fe   : > { %v8924_v6 = vpop.f32.mrf.mxu0  ;;  %v3677_v40 = vadd.f32 %v3526_v0, %v12156_v23  ;;  %9225 = vmatprep.mubr.msk.f32.mxu0 %vm603_vm1, %v1865_v59  ;;  %v12606_v7 = vpop.eup %9642  ;;  %v7653_v20 = vmul.f32 -1.442695, %v12580_v25  ;;  %v14168_v23 = vld [vmem:[#allocation78_spill] sm:$0xff]  ;;  %v1869_v0 = vmul.f32 %v12535_v58, %v12257_v3  ;;  %9666 = vpow2.f32 %v7654_v8  ;;  %v10007_v3 = vld [vmem:[%s14040_s2 + $0x40] sm:$0xff]  ;;  %v5742_v8 = vld [vmem:[#allocation2 + $0x71] sm:$0xff] }
 0x2ff   : > { %v12600_v51 = vadd.f32 %v8924_v6, %v3678_v47  ;;  %v1627_v34 = vmul.f32 %v14168_v23, %v12115_v44  ;;  %v8877_v11 = vpop.f32.mrf.mxu1  ;;  %v5741_v59 = vld [vmem:[#allocation2 + $0x69] sm:$0xff]  ;;  %v9645_v62 = vpop.eup %9644  ;;  %v1628_v47 = vmul.f32 %v12115_v44, %v14169_v5  ;;  %v1782_v6 = vadd.f32 1.0, %v9641_v56 }
 0x300   : > { %v3944_v61 = vpop.f32.mrf.mxu0  ;;  %9176 = vmatmul.mubr.msk.f32.gmra.mxu1 %vm603_vm1, %v5770_v33  ;;  %v3680_v50 = vadd.f32 %v8877_v11, %v12165_v19  ;;  %v12623_v1 = vpop.eup %9646  ;;  %v10006_v19 = vld [vmem:[%s14040_s2 + $0x38] sm:$0xff]  ;;  %9668 = vrcp.f32 %v1781_v30  ;;  %v5773_v58 = vmul.f32 %v10007_v3, %v5741_v59  ;;  %v1783_v56 = vadd.f32 1.0, %v9645_v62 }
 0x301   : > { %v12620_v26 = vadd.f32 %v3944_v61, %v3677_v40  ;;  %9178 = vmatprep.mubr.msk.f32.mxu1 %vm603_vm1, %v5771_v15  ;;  %v3536_v52 = vpop.f32.mrf.mxu1  ;;  %9226 = vmatmul.mubr.msk.f32.gmra.mxu0 %vm603_vm1, %v12544_v41  ;;  %v5772_v14 = vmul.f32 %v10006_v19, %v5740_v45  ;;  %v9649_v40 = vpop.eup %9648  ;;  %9670 = vpow2.f32 %v7653_v20  ;;  %v12640_v23 = vadd.f32 %v12138_v42, %v1627_v34  ;;  %v14170_v30 = vld [vmem:[#allocation80_spill] sm:$0xff] }
 0x302   : > { %v8927_v33 = vpop.f32.mrf.mxu0  ;;  %v3679_v27 = vadd.f32 %v3536_v52, %v12180_v35  ;;  %9228 = vmatprep.mubr.msk.f32.mxu0 %vm603_vm1, %v1867_v55  ;;  %v9651_v41 = vpop.eup %9650  ;;  %v1629_v45 = vmul.f32 %v14170_v30, %v12115_v44  ;;  %v5743_v55 = vld [vmem:[#allocation2 + $0x79] sm:$0xff]  ;;  %v7655_v5 = vmul.f32 -1.442695, %v12615_v43  ;;  %v12647_v59 = vadd.f32 %v12138_v42, %v1628_v47  ;;  %v10008_v47 = vld [vmem:[%s14040_s2 + $0x48] sm:$0xff] }
 0x303   : > { %v12633_v15 = vadd.f32 %v8927_v33, %v3680_v50  ;;  %v8880_v35 = vpop.f32.mrf.mxu1  ;;  %v9653_v61 = vpop.eup %9652  ;;  %v1870_v44 = vmul.f32 %v12526_v2, %v12252_v22  ;;  %9672 = vrcp.f32 %v1782_v6  ;;  %v1784_v34 = vadd.f32 1.0, %v9649_v40  ;;  %v10009_v22 = vld [vmem:[%s14040_s2 + $0x50] sm:$0xff]  ;;  %v5744_v6 = vld [vmem:[#allocation2 + $0x81] sm:$0xff] }
 0x304   : > { %v3954_v11 = vpop.f32.mrf.mxu0  ;;  %9179 = vmatmul.mubr.msk.f32.gmra.mxu1 %vm603_vm1, %v5772_v14  ;;  %v3682_v62 = vadd.f32 %v8880_v35, %v12194_v16  ;;  %v5774_v33 = vmul.f32 %v10008_v47, %v5742_v8  ;;  %v9655_v16 = vpop.eup %9654  ;;  %v1785_v19 = vadd.f32 1.0, %v9651_v41  ;;  %v5775_v2 = vmul.f32 %v10009_v22, %v5743_v55 }
 0x305   : > { %v12650_v20 = vadd.f32 %v3954_v11, %v3679_v27  ;;  %9181 = vmatprep.mubr.msk.f32.mxu1 %vm603_vm1, %v5773_v58  ;;  %v3546_v50 = vpop.f32.mrf.mxu1  ;;  %9229 = vmatmul.mubr.msk.f32.gmra.mxu0 %vm603_vm1, %v12591_v54  ;;  %v12667_v54 = vpop.eup %9656  ;;  %v1871_v40 = vmul.f32 %v12569_v36, %v12290_v57  ;;  %9674 = vrcp.f32 %v1783_v56  ;;  %v7656_v3 = vmul.f32 -1.442695, %v12640_v23 }
 0x306   : > { %v8930_v52 = vpop.f32.mrf.mxu0  ;;  %v3681_v14 = vadd.f32 %v3546_v50, %v12209_v13  ;;  %9231 = vmatprep.mubr.msk.f32.mxu0 %vm603_vm1, %v1869_v0  ;;  %v12673_v13 = vadd.f32 %v12138_v42, %v1629_v45  ;;  %v5745_v0 = vld [vmem:[#allocation2 + $0x89] sm:$0xff]  ;;  %v9659_v41 = vpop.eup %9658  ;;  %9676 = vpow2.f32 %v7655_v5  ;;  %v7657_v30 = vmul.f32 -1.442695, %v12647_v59  ;;  %v10010_v45 = vld [vmem:[%s14040_s2 + $0x58] sm:$0xff] }
 0x307   : > { %v12661_v27 = vadd.f32 %v8930_v52, %v3682_v62  ;;  %v8883_v58 = vpop.f32.mrf.mxu1  ;;  %v12681_v57 = vpop.eup %9660  ;;  %9678 = vrcp.f32 %v1784_v34  ;;  %v1786_v42 = vadd.f32 1.0, %v9653_v61  ;;  %v5776_v55 = vmul.f32 %v10010_v45, %v5744_v6  ;;  %v10011_v61 = vld [vmem:[%s14040_s2 + $0x60] sm:$0xff]  ;;  %v5746_v50 = vld [vmem:[#allocation2 + $0x91] sm:$0xff] }
 0x308   : > { %v3964_v8 = vpop.f32.mrf.mxu0  ;;  %9182 = vmatmul.mubr.msk.f32.gmra.mxu1 %vm603_vm1, %v5774_v33  ;;  %v3684_v35 = vadd.f32 %v8883_v58, %v12229_v38  ;;  %v9663_v5 = vpop.eup %9662  ;;  %9680 = vrcp.f32 %v1785_v19  ;;  %v5777_v34 = vmul.f32 %v10011_v61, %v5745_v0  ;;  %v1873_v52 = vmul.f32 %v12623_v1, %v12331_v53  ;;  %v5747_v19 = vld [vmem:[#allocation2 + $0x99] sm:$0xff] }
 0x309   : > { %v12678_v11 = vadd.f32 %v3964_v8, %v3681_v14  ;;  %9184 = vmatprep.mubr.msk.f32.mxu1 %vm603_vm1, %v5775_v2  ;;  %v3556_v36 = vpop.f32.mrf.mxu1  ;;  %9232 = vmatmul.mubr.msk.f32.gmra.mxu0 %vm603_vm1, %v1870_v44  ;;  %v1872_v44 = vmul.f32 %v12558_v49, %v12284_v24  ;;  %9682 = vpow2.f32 %v7656_v3  ;;  %v7658_v47 = vmul.f32 -1.442695, %v12673_v13  ;;  %v10012_v49 = vld [vmem:[%s14040_s2 + $0x68] sm:$0xff]  ;;  %v10013_v8 = vld [vmem:[%s14040_s2 + $0x70] sm:$0xff] }
 0x30a   : > { %v8933_v56 = vpop.f32.mrf.mxu0  ;;  %v3683_v38 = vadd.f32 %v3556_v36, %v12242_v60  ;;  %9234 = vmatprep.mubr.msk.f32.mxu0 %vm603_vm1, %v1871_v40  ;;  %v9665_v14 = vpop.eup %9664  ;;  %v1787_v22 = vadd.f32 1.0, %v9659_v41  ;;  %9684 = vpow2.f32 %v7657_v30  ;;  %v5778_v1 = vmul.f32 %v10012_v49, %v5746_v50  ;;  %v5748_v41 = vld [vmem:[#allocation2 + $0xa1] sm:$0xff] }
 0x30b   : > { %v12688_v62 = vadd.f32 %v8933_v56, %v3684_v35  ;;  %v8886_v60 = vpop.f32.mrf.mxu1  ;;  %9686 = vrcp.f32 %v1786_v42  ;;  %v12708_v40 = vpop.eup %9666  ;;  %v1788_v3 = vadd.f32 1.0, %v9655_v16  ;;  %v5779_v0 = vmul.f32 %v10013_v8, %v5747_v19  ;;  %v14172_v8 = vld [vmem:[#allocation61_spill] sm:$0xff] }
 0x30c   : > { %v3974_v33 = vpop.f32.mrf.mxu0  ;;  %9185 = vmatmul.mubr.msk.f32.gmra.mxu1 %vm603_vm1, %v5776_v55  ;;  %v3686_v2 = vadd.f32 %v8886_v60, %v12262_v21  ;;  %v1874_v35 = vmul.f32 %v12606_v7, %v12315_v63  ;;  %v1789_v42 = vadd.f32 1.0, %v9663_v5  ;;  %9688 = vpow2.f32 %v7658_v47  ;;  %v10014_v63 = vld [vmem:[%s14040_s2 + $0x78] sm:$0xff] }
 0x30d   : > { %v12701_v6 = vadd.f32 %v3974_v33, %v3683_v38  ;;  %9187 = vmatprep.mubr.msk.f32.mxu1 %vm603_vm1, %v5777_v34  ;;  %v3566_v24 = vpop.f32.mrf.mxu1  ;;  %9235 = vmatmul.mubr.msk.f32.gmra.mxu0 %vm603_vm1, %v1872_v44  ;;  %v9669_v30 = vpop.eup %9668  ;;  %v1875_v45 = vmul.f32 %v9665_v14, %v12391_v29  ;;  %9690 = vrcp.f32 %v1787_v22  ;;  %v5780_v7 = vmul.f32 %v10014_v63, %v5748_v41  ;;  %v10017_v41 = vld [vmem:[%s14040_s2 + $0x90] sm:$0xff] }
 0x30e   : > { %v8936_v53 = vpop.f32.mrf.mxu0  ;;  %v3685_v58 = vadd.f32 %v3566_v24, %v12274_v28  ;;  %9237 = vmatprep.mubr.msk.f32.mxu0 %vm603_vm1, %v1873_v52  ;;  %v5749_v28 = vld [vmem:[#allocation2 + $0xa9] sm:$0xff]  ;;  %v9671_v56 = vpop.eup %9670  ;;  %9692 = vrcp.f32 %v1788_v3  ;;  %v5750_v52 = vld [vmem:[#allocation2 + $0xb1] sm:$0xff]  ;;  %v1876_v47 = vmul.f32 %v12667_v54, %v12362_v39  ;;  %v1790_v60 = vadd.f32 1.0, %v12681_v57  ;;  %v14171_v24 = vld [vmem:[#allocation65_spill] sm:$0xff] }
 0x30f   : > { %v12711_v21 = vadd.f32 %v8936_v53, %v3686_v2  ;;  %v8889_v36 = vpop.f32.mrf.mxu1  ;;  %9694 = vrcp.f32 %v1789_v42  ;;  %v1877_v22 = vmul.f32 %v9669_v30, %v12405_v17  ;;  %v1791_v2 = vadd.f32 1.0, %v9671_v56  ;;  %v10016_v57 = vld [vmem:[%s14040_s2 + $0x88] sm:$0xff] }
 0x310   : > { %v3984_v16 = vpop.f32.mrf.mxu0  ;;  %9188 = vmatmul.mubr.msk.f32.gmra.mxu1 %vm603_vm1, %v5778_v1  ;;  %v3688_v55 = vadd.f32 %v8889_v36, %v12287_v12  ;;  %v9673_v5 = vpop.eup %9672  ;;  %v10015_v12 = vld [vmem:[%s14040_s2 + $0x80] sm:$0xff]  ;;  %v5782_v3 = vmul.f32 %v10016_v57, %v5750_v52  ;;  %9696 = vrcp.f32 %v1790_v60 }
 0x311   : > { %v12722_v38 = vadd.f32 %v3984_v16, %v3685_v58  ;;  %9190 = vmatprep.mubr.msk.f32.mxu1 %vm603_vm1, %v5779_v0  ;;  %v3576_v61 = vpop.f32.mrf.mxu1  ;;  %9238 = vmatmul.mubr.msk.f32.gmra.mxu0 %vm603_vm1, %v1874_v35  ;;  %v5781_v44 = vmul.f32 %v10015_v12, %v5749_v28  ;;  %v5752_v35 = vld [vmem:[#allocation2 + $0xc1] sm:$0xff]  ;;  %9698 = vrcp.f32 %v1791_v2 }
 0x312   : > { %v8939_v34 = vpop.f32.mrf.mxu0  ;;  %v3687_v29 = vadd.f32 %v3576_v61, %v12301_v10  ;;  %9240 = vmatprep.mubr.msk.f32.mxu0 %vm603_vm1, %v1875_v45  ;;  %v5751_v10 = vld [vmem:[#allocation2 + $0xb9] sm:$0xff]  ;;  %v9675_v14 = vpop.eup %9674  ;;  %v1792_v45 = vadd.f32 1.0, %v12708_v40 }
 0x313   : > { %v12730_v50 = vadd.f32 %v8939_v34, %v3688_v55  ;;  %v8892_v33 = vpop.f32.mrf.mxu1  ;;  %v9677_v1 = vpop.eup %9676  ;;  %v5783_v30 = vmul.f32 %v10017_v41, %v5751_v10  ;;  %v14173_v36 = vld [vmem:[#allocation85_spill] sm:$0xff]  ;;  %v5753_v34 = vld [vmem:[#allocation2 + $0xc9] sm:$0xff]  ;;  %v10018_v40 = vld [vmem:[%s14040_s2 + $0x98] sm:$0xff] }
 0x314   : > { %v3994_v19 = vpop.f32.mrf.mxu0  ;;  %9191 = vmatmul.mubr.msk.f32.gmra.mxu1 %vm603_vm1, %v5780_v7  ;;  %v3690_v53 = vadd.f32 %v8892_v33, %v14171_v24  ;;  %v9679_v58 = vpop.eup %9678  ;;  %v1878_v16 = vmul.f32 %v9673_v5, %v14173_v36  ;;  %v14174_v28 = vld [vmem:[#allocation89_spill] sm:$0xff]  ;;  %v1793_v7 = vadd.f32 1.0, %v9677_v1  ;;  %v5784_v60 = vmul.f32 %v10018_v40, %v5752_v35  ;;  %v5754_v24 = vld [vmem:[#allocation2 + $0xd1] sm:$0xff] }
 0x315   : > { %v12742_v49 = vadd.f32 %v3994_v19, %v3687_v29  ;;  %9193 = vmatprep.mubr.msk.f32.mxu1 %vm603_vm1, %v5781_v44  ;;  %v3586_v39 = vpop.f32.mrf.mxu1  ;;  %9241 = vmatmul.mubr.msk.f32.gmra.mxu0 %vm603_vm1, %v1876_v47  ;;  %v9681_v42 = vpop.eup %9680  ;;  %v1879_v56 = vmul.f32 %v9675_v14, %v14174_v28  ;;  %v14175_v29 = vld [vmem:[#allocation63_spill] sm:$0xff]  ;;  %9700 = vrcp.f32 %v1792_v45  ;;  %v14177_v41 = vld [vmem:[#allocation68_spill] sm:$0xff] }
 0x316   : > { %v8942_v54 = vpop.f32.mrf.mxu0  ;;  %v3689_v17 = vadd.f32 %v3586_v39, %v14172_v8  ;;  %9243 = vmatprep.mubr.msk.f32.mxu0 %vm603_vm1, %v1877_v22  ;;  %v9683_v63 = vpop.eup %9682  ;;  %v14176_v19 = vld [vmem:[#allocation67_spill] sm:$0xff]  ;;  %v10019_v22 = vld [vmem:[%s14040_s2 + $0xa0] sm:$0xff]  ;;  %v1881_v1 = vmul.f32 %v9681_v42, %v12465_v46  ;;  %9702 = vrcp.f32 %v1793_v7  ;;  %v10020_v46 = vld [vmem:[%s14040_s2 + $0xa8] sm:$0xff] }
 0x317   : > { %v12750_v0 = vadd.f32 %v8942_v54, %v3690_v53  ;;  %v8895_v55 = vpop.f32.mrf.mxu1  ;;  %v9685_v5 = vpop.eup %9684  ;;  %v5785_v2 = vmul.f32 %v10019_v22, %v5753_v34  ;;  %v1880_v53 = vmul.f32 %v9679_v58, %v12452_v4  ;;  %v1794_v39 = vadd.f32 1.0, %v9683_v63  ;;  %v10021_v45 = vld [vmem:[%s14040_s2 + $0xb0] sm:$0xff] }
 0x318   : > { %v4004_v61 = vpop.f32.mrf.mxu0  ;;  %9194 = vmatmul.mubr.msk.f32.gmra.mxu1 %vm603_vm1, %v5782_v3  ;;  %v3692_v12 = vadd.f32 %v8895_v55, %v14175_v29  ;;  %v9687_v33 = vpop.eup %9686  ;;  %v5755_v3 = vld [vmem:[#allocation2 + $0xd9] sm:$0xff]  ;;  %v5786_v42 = vmul.f32 %v10020_v46, %v5754_v24 }
 0x319   : > { %v12761_v44 = vadd.f32 %v4004_v61, %v3689_v17  ;;  %9196 = vmatprep.mubr.msk.f32.mxu1 %vm603_vm1, %v5783_v30  ;;  %v3596_v52 = vpop.f32.mrf.mxu1  ;;  %9244 = vmatmul.mubr.msk.f32.gmra.mxu0 %vm603_vm1, %v1878_v16  ;;  %v9689_v8 = vpop.eup %9688  ;;  %v1795_v17 = vadd.f32 1.0, %v9685_v5  ;;  %v14178_v16 = vld [vmem:[#allocation70_spill] sm:$0xff]  ;;  %v5787_v55 = vmul.f32 %v10021_v45, %v5755_v3  ;;  %v1882_v63 = vmul.f32 %v9687_v33, %v12476_v48  ;;  %v10022_v48 = vld [vmem:[%s14040_s2 + $0xb8] sm:$0xff]  ;;  %v14182_v3 = vld [vmem:[#allocation59_spill] sm:$0xff] }
 0x31a   : > { %v8945_v47 = vpop.f32.mrf.mxu0  ;;  %v3691_v10 = vadd.f32 %v3596_v52, %v14176_v19  ;;  %9246 = vmatprep.mubr.msk.f32.mxu0 %vm603_vm1, %v1879_v56  ;;  %v9691_v36 = vpop.eup %9690  ;;  %v5756_v61 = vld [vmem:[#allocation2 + $0xe1] sm:$0xff]  ;;  %9704 = vrcp.f32 %v1794_v39  ;;  %v1796_v7 = vadd.f32 1.0, %v9689_v8  ;;  %v5757_v5 = vld [vmem:[#allocation2 + $0xe9] sm:$0xff]  ;;  %v14181_v24 = vld [vmem:[#allocation84_spill] sm:$0xff] }
 0x31b   : > { %v12769_v14 = vadd.f32 %v8945_v47, %v3692_v12  ;;  %v8898_v54 = vpop.f32.mrf.mxu1  ;;  %v9693_v34 = vpop.eup %9692  ;;  %v14179_v47 = vld [vmem:[#allocation73_spill] sm:$0xff]  ;;  %9706 = vrcp.f32 %v1795_v17  ;;  %v5788_v33 = vmul.f32 %v10022_v48, %v5756_v61  ;;  %v10024_v61 = vld [vmem:[%s14040_s2 + $0xc8] sm:$0xff] }
 0x31c   : > { %v4014_v57 = vpop.f32.mrf.mxu0  ;;  %9197 = vmatmul.mubr.msk.f32.gmra.mxu1 %vm603_vm1, %v5784_v60  ;;  %v3694_v30 = vadd.f32 %v8898_v54, %v14177_v41  ;;  %v9695_v52 = vpop.eup %9694  ;;  %v1883_v40 = vmul.f32 %v9691_v36, %v14179_v47  ;;  %v14180_v60 = vld [vmem:[#allocation81_spill] sm:$0xff]  ;;  %v1884_v8 = vmul.f32 %v9693_v34, %v14182_v3  ;;  %9708 = vrcp.f32 %v1796_v7  ;;  %v14184_v34 = vld [vmem:[#allocation88_spill] sm:$0xff] }
 0x31d   : > { %v12779_v35 = vadd.f32 %v4014_v57, %v3691_v10  ;;  %9199 = vmatprep.mubr.msk.f32.mxu1 %vm603_vm1, %v5785_v2  ;;  %v3606_v4 = vpop.f32.mrf.mxu1  ;;  %9247 = vmatmul.mubr.msk.f32.gmra.mxu0 %vm603_vm1, %v1880_v53  ;;  %v10023_v39 = vld [vmem:[%s14040_s2 + $0xc0] sm:$0xff]  ;;  %v5758_v57 = vld [vmem:[#allocation2 + $0xf1] sm:$0xff]  ;;  %v9697_v36 = vpop.eup %9696 }
 0x31e   : > { %v8948_v58 = vpop.f32.mrf.mxu0  ;;  %v3693_v28 = vadd.f32 %v3606_v4, %v14178_v16  ;;  %9249 = vmatprep.mubr.msk.f32.mxu0 %vm603_vm1, %v1881_v1  ;;  %v5789_v54 = vmul.f32 %v10023_v39, %v5757_v5  ;;  %v1885_v4 = vmul.f32 %v9695_v52, %v12530_v37  ;;  %v6485_v16 = vld [vmem:[%s13920_s15] sm:$0xff]  ;;  %v5790_v37 = vmul.f32 %v10024_v61, %v5758_v57  ;;  %v14186_v57 = vld [vmem:[#allocation54_spill] sm:$0xff] }
 0x31f   : > { %v12787_v56 = vadd.f32 %v8948_v58, %v3694_v30  ;;  %v8901_v29 = vpop.f32.mrf.mxu1  ;;  %v5759_v30 = vld [vmem:[#allocation2 + $0xf9] sm:$0xff]  ;;  %v14183_v58 = vld [vmem:[#allocation87_spill] sm:$0xff]  ;;  %9267 = vmatprep.subr.mxu1 %v6485_v16  ;;  %v5760_v5 = vld [vmem:[#allocation2 + $0x101] sm:$0xff]  ;;  %v1886_v52 = vmul.f32 %v9697_v36, %v12521_v32 }
 0x320   : > { %v4024_v12 = vpop.f32.mrf.mxu0  ;;  %9200 = vmatmul.mubr.msk.f32.gmra.mxu1 %vm603_vm1, %v5786_v42  ;;  %v3696_v19 = vadd.f32 %v8901_v29, %v14180_v60  ;;  %v10025_v29 = vld [vmem:[%s14040_s2 + $0xd0] sm:$0xff]  ;;  %v10026_v32 = vld [vmem:[%s14040_s2 + $0xd8] sm:$0xff] }
 0x321   : > { %v12797_v10 = vadd.f32 %v4024_v12, %v3693_v28  ;;  %9202 = vmatprep.mubr.msk.f32.mxu1 %vm603_vm1, %v5787_v55  ;;  %v3616_v22 = vpop.f32.mrf.mxu1  ;;  %9250 = vmatmul.mubr.msk.f32.gmra.mxu0 %vm603_vm1, %v1882_v63  ;;  %v9699_v28 = vpop.eup %9698  ;;  %v5791_v12 = vmul.f32 %v10025_v29, %v5759_v30  ;;  %v5792_v39 = vmul.f32 %v10026_v32, %v5760_v5 }
 0x322   : > { %v8951_v2 = vpop.f32.mrf.mxu0  ;;  %v3695_v53 = vadd.f32 %v3616_v22, %v14181_v24  ;;  %9252 = vmatprep.mubr.msk.f32.mxu0 %vm603_vm1, %v1883_v40  ;;  %9268 = vmatpush3.msra.mxu1 %v6485_v16  ;;  %v9701_v60 = vpop.eup %9700  ;;  %v14185_v22 = vld [vmem:[#allocation86_spill] sm:$0xff]  ;;  %v14188_v16 = vld [vmem:[#allocation64_spill] sm:$0xff] }
 0x323   : > { %v12805_v1 = vadd.f32 %v8951_v2, %v3696_v19  ;;  %v8904_v17 = vpop.f32.mrf.mxu1  ;;  %v1887_v19 = vmul.f32 %v9699_v28, %v12580_v25  ;;  %v10027_v28 = vld [vmem:[%s14040_s2 + $0xf0] sm:$0xff] }
 0x324   : > { %v4034_v41 = vpop.f32.mrf.mxu0  ;;  %9203 = vmatmul.mubr.msk.f32.gmra.mxu1 %vm603_vm1, %v5788_v33  ;;  %v3698_v46 = vadd.f32 %v8904_v17, %v14183_v58  ;;  %v9703_v33 = vpop.eup %9702 }
 0x325   : > { %v12815_v42 = vadd.f32 %v4034_v41, %v3695_v53  ;;  %9205 = vmatprep.mubr.msk.f32.mxu1 %vm603_vm1, %v5789_v54  ;;  %v3626_v45 = vpop.f32.mrf.mxu1  ;;  %9253 = vmatmul.mubr.msk.f32.gmra.mxu0 %vm603_vm1, %v1884_v8  ;;  %v5763_v54 = vld [vmem:[#allocation2 + $0x119] sm:$0xff]  ;;  %v1888_v8 = vmul.f32 %v9701_v60, %v12562_v31  ;;  %v1889_v36 = vmul.f32 %v9703_v33, %v12615_v43  ;;  %v5764_v31 = vld [vmem:[#allocation2 + $0x121] sm:$0xff] }
 0x326   : > { %v8954_v55 = vpop.f32.mrf.mxu0  ;;  %v3697_v63 = vadd.f32 %v3626_v45, %v14184_v34  ;;  %9255 = vmatprep.mubr.msk.f32.mxu0 %vm603_vm1, %v1885_v4  ;;  %v14187_v4 = vld [vmem:[#allocation57_spill] sm:$0xff]  ;;  %v5795_v45 = vmul.f32 %v10027_v28, %v5763_v54  ;;  %v14189_v34 = vld [vmem:[#allocation56_spill] sm:$0xff] }
 0x327   : > { %v12826_v7 = vadd.f32 %v8954_v55, %v3698_v46  ;;  %v8907_v47 = vpop.f32.mrf.mxu1  ;;  %v9705_v30 = vpop.eup %9704 }
 0x328   : > { %v4044_v40 = vpop.f32.mrf.mxu0  ;;  %9206 = vmatmul.mubr.msk.f32.gmra.mxu1 %vm603_vm1, %v5790_v37  ;;  %v3700_v2 = vadd.f32 %v8907_v47, %v14185_v22  ;;  %v9707_v55 = vpop.eup %9706  ;;  %v1890_v29 = vmul.f32 %v9705_v30, %v12640_v23  ;;  %v10028_v47 = vld [vmem:[%s14040_s2 + $0xf8] sm:$0xff]  ;;  %v14191_v22 = vld [vmem:[#allocation71_spill] sm:$0xff] }
 0x329   : > { %v12836_v48 = vadd.f32 %v4044_v40, %v3697_v63  ;;  %9208 = vmatprep.mubr.msk.f32.mxu1 %vm603_vm1, %v5791_v12  ;;  %v3636_v24 = vpop.f32.mrf.mxu1  ;;  %9256 = vmatmul.mubr.msk.f32.gmra.mxu0 %vm603_vm1, %v1886_v52  ;;  %v14190_v52 = vld [vmem:[#allocation60_spill] sm:$0xff]  ;;  %v5796_v40 = vmul.f32 %v10028_v47, %v5764_v31  ;;  %v9709_v60 = vpop.eup %9708 }
 0x32a   : > { %v8957_v53 = vpop.f32.mrf.mxu0  ;;  %v3699_v3 = vadd.f32 %v3636_v24, %v14186_v57  ;;  %9258 = vmatprep.mubr.msk.f32.mxu0 %vm603_vm1, %v1887_v19  ;;  %v1891_v19 = vmul.f32 %v9707_v55, %v12647_v59  ;;  %v1892_v54 = vmul.f32 %v9709_v60, %v12673_v13 }
 0x32b   : > { %v12844_v25 = vadd.f32 %v8957_v53, %v3700_v2  ;;  %v8910_v17 = vpop.f32.mrf.mxu1  ;;  %v14192_v53 = vld [vmem:[#allocation35_spill] sm:$0xff] }
 0x32c   : > { %v4054_v41 = vpop.f32.mrf.mxu0  ;;  %9209 = vmatmul.mubr.msk.f32.gmra.mxu1 %vm603_vm1, %v5792_v39  ;;  %v3702_v58 = vadd.f32 %v8910_v17, %v14187_v4 }
 0x32d   : > { %v12851_v46 = vadd.f32 %v4054_v41, %v3699_v3  ;;  %9211 = vmatprep.mubr.msk.f32.mxu1 %vm603_vm1, %v14188_v16  ;;  %v3646_v61 = vpop.f32.mrf.mxu1  ;;  %9259 = vmatmul.mubr.msk.f32.gmra.mxu0 %vm603_vm1, %v1888_v8  ;;  %v14193_v3 = vld [vmem:[#allocation36_spill] sm:$0xff] }
 0x32e   : > { %v8960_v37 = vpop.f32.mrf.mxu0  ;;  %v3701_v43 = vadd.f32 %v3646_v61, %v14189_v34  ;;  %9261 = vmatprep.mubr.msk.f32.mxu0 %vm603_vm1, %v1889_v36  ;;  %v14194_v36 = vld [vmem:[#allocation37_spill] sm:$0xff] }
 0x32f   : > { %v12860_v63 = vadd.f32 %v8960_v37, %v3702_v58  ;;  %v8913_v12 = vpop.f32.mrf.mxu1 }
 0x330   : > { %v4064_v5 = vpop.f32.mrf.mxu0  ;;  %9212 = vmatmul.mubr.msk.f32.gmra.mxu1 %vm603_vm1, %v14190_v52  ;;  %v3704_v2 = vadd.f32 %v8913_v12, %v14191_v22 }
 0x331   : > { %v12871_v33 = vadd.f32 %v4064_v5, %v3701_v43  ;;  %9214 = vmatprep.mubr.msk.f32.mxu1 %vm603_vm1, %v5795_v45  ;;  %v3656_v23 = vpop.f32.mrf.mxu1  ;;  %9262 = vmatmul.mubr.msk.f32.gmra.mxu0 %vm603_vm1, %v1890_v29 }
 0x332   : > { %v8963_v24 = vpop.f32.mrf.mxu0  ;;  %v3703_v32 = vadd.f32 %v3656_v23, %v14192_v53  ;;  %9264 = vmatprep.mubr.msk.f32.mxu0 %vm603_vm1, %v1891_v19 }
 0x333   : > { %v12876_v39 = vadd.f32 %v8963_v24, %v3704_v2  ;;  %v8916_v57 = vpop.f32.mrf.mxu1 }
 0x334   : > { %v4074_v59 = vpop.f32.mrf.mxu0  ;;  %9215 = vmatmul.mubr.msk.f32.gmra.mxu1 %vm603_vm1, %v5796_v40  ;;  %v3706_v8 = vadd.f32 %v8916_v57, %v14193_v3 }
 0x335   : > { %v12882_v17 = vadd.f32 %v4074_v59, %v3703_v32  ;;  %v3666_v41 = vpop.f32.mrf.mxu1  ;;  %9265 = vmatmul.mubr.msk.f32.gmra.mxu0 %vm603_vm1, %v1892_v54 }
 0x336   : > { %v8966_v30 = vpop.f32.mrf.mxu0  ;;  %v3705_v4 = vadd.f32 %v3666_v41, %v14194_v36 }
 0x337   : > { %v12886_v58 = vadd.f32 %v8966_v30, %v3706_v8  ;;  %v8971_v28 = vpop.f32.mrf.mxu1 }
 0x338   : > { %v4084_v16 = vpop.f32.mrf.mxu0  ;;  %v12891_v13 = vadd.f32 %v8971_v28, %v12571_v18 }
 0x339   : > { %v12888_v45 = vadd.f32 %v4084_v16, %v3705_v4  ;;  %v12893_v31 = vpop.f32.mrf.mxu1 }
 0x33a   : > { %v12895_v55 = vpop.f32.mrf.mxu0 }
 0x33b   : > { %v8974_v61 = vpop.f32.mrf.mxu1 }
 0x33c   : > { %v12897_v37 = vpop.f32.mrf.mxu0  ;;  %v4482_v34 = vadd.f32 %v8974_v61, %v12600_v51 }
 0x33d   : > { %v12900_v43 = vpop.f32.mrf.mxu1 }
 0x33e   : > { %v9024_v29 = vpop.f32.mrf.mxu0 }
 0x33f   : > { %v12902_v12 = vadd.f32 %v9024_v29, %v4482_v34  ;;  %v8977_v5 = vpop.f32.mrf.mxu1 }
 0x340   : > { %v12904_v52 = vpop.f32.mrf.mxu0  ;;  %v4484_v18 = vadd.f32 %v8977_v5, %v12633_v15 }
 0x341   : > { %v12907_v47 = vpop.f32.mrf.mxu1 }
 0x342   : > { %v9027_v40 = vpop.f32.mrf.mxu0 }
 0x343   : > { %v12909_v60 = vadd.f32 %v9027_v40, %v4484_v18  ;;  %v8980_v19 = vpop.f32.mrf.mxu1 }
 0x344   : > { %v12911_v22 = vpop.f32.mrf.mxu0  ;;  %v4486_v51 = vadd.f32 %v8980_v19, %v12661_v27 }
 0x345   : > { %v4350_v2 = vpop.f32.mrf.mxu1 }
 0x346   : > { %v9030_v23 = vpop.f32.mrf.mxu0  ;;  %v4485_v24 = vadd.f32 %v4350_v2, %v12678_v11 }
 0x347   : > { %v12915_v53 = vadd.f32 %v9030_v23, %v4486_v51  ;;  %v8983_v32 = vpop.f32.mrf.mxu1 }
 0x348   : > { %v4768_v54 = vpop.f32.mrf.mxu0  ;;  %v4488_v15 = vadd.f32 %v8983_v32, %v12688_v62 }
 0x349   : > { %v12918_v57 = vadd.f32 %v4768_v54, %v4485_v24  ;;  %v4360_v59 = vpop.f32.mrf.mxu1 }
 0x34a   : > { %v9033_v3 = vpop.f32.mrf.mxu0  ;;  %v4487_v8 = vadd.f32 %v4360_v59, %v12701_v6 }
 0x34b   : > { %v12921_v41 = vadd.f32 %v9033_v3, %v4488_v15  ;;  %v8986_v30 = vpop.f32.mrf.mxu1 }
 0x34c   : > { %v4778_v27 = vpop.f32.mrf.mxu0  ;;  %v4490_v36 = vadd.f32 %v8986_v30, %v12711_v21 }
 0x34d   : > { %v12924_v4 = vadd.f32 %v4778_v27, %v4487_v8  ;;  %v12926_v11 = vpop.f32.mrf.mxu1 }
 0x34e   : > { %v9036_v16 = vpop.f32.mrf.mxu0 }
 0x34f   : > { %v12928_v28 = vadd.f32 %v9036_v16, %v4490_v36  ;;  %v8989_v62 = vpop.f32.mrf.mxu1 }
 0x350   : > { %v12930_v61 = vpop.f32.mrf.mxu0  ;;  %v4492_v34 = vadd.f32 %v8989_v62, %v12730_v50 }
 0x351   : > { %v12933_v29 = vpop.f32.mrf.mxu1 }
 0x352   : > { %v9039_v6 = vpop.f32.mrf.mxu0 }
 0x353   : > { %v12935_v5 = vadd.f32 %v9039_v6, %v4492_v34  ;;  %v8992_v18 = vpop.f32.mrf.mxu1 }
 0x354   : > { %v12937_v40 = vpop.f32.mrf.mxu0  ;;  %v4494_v21 = vadd.f32 %v8992_v18, %v12750_v0 }
 0x355   : > { %v12940_v19 = vpop.f32.mrf.mxu1 }
 0x356   : > { %v9042_v51 = vpop.f32.mrf.mxu0 }
 0x357   : > { %v12942_v2 = vadd.f32 %v9042_v51, %v4494_v21  ;;  %v8995_v23 = vpop.f32.mrf.mxu1 }
 0x358   : > { %v12944_v24 = vpop.f32.mrf.mxu0  ;;  %v4496_v50 = vadd.f32 %v8995_v23, %v12769_v14 }
 0x359   : > { %v4400_v32 = vpop.f32.mrf.mxu1 }
 0x35a   : > { %v9045_v54 = vpop.f32.mrf.mxu0  ;;  %v12948_v15 = vadd.f32 %v4400_v32, %v12779_v35 }
 0x35b   : > { %v12950_v59 = vadd.f32 %v9045_v54, %v4496_v50  ;;  %v8998_v3 = vpop.f32.mrf.mxu1 }
 0x35c   : > { %v12952_v8 = vpop.f32.mrf.mxu0  ;;  %v4498_v0 = vadd.f32 %v8998_v3, %v12787_v56 }
 0x35d   : > { %v4410_v30 = vpop.f32.mrf.mxu1 }
 0x35e   : > { %v9048_v27 = vpop.f32.mrf.mxu0  ;;  %v12956_v36 = vadd.f32 %v4410_v30, %v12797_v10 }
 0x35f   : > { %v12958_v16 = vadd.f32 %v9048_v27, %v4498_v0  ;;  %v9001_v14 = vpop.f32.mrf.mxu1 }
 0x360   : > { %v12960_v62 = vpop.f32.mrf.mxu0  ;;  %v4500_v35 = vadd.f32 %v9001_v14, %v12805_v1 }
 0x361   : > { %v4420_v34 = vpop.f32.mrf.mxu1 }
 0x362   : > { %v9051_v6 = vpop.f32.mrf.mxu0  ;;  %v12964_v18 = vadd.f32 %v4420_v34, %v12815_v42 }
 0x363   : > { %v12966_v21 = vadd.f32 %v9051_v6, %v4500_v35  ;;  %v9004_v56 = vpop.f32.mrf.mxu1 }
 0x364   : > { %v12968_v51 = vpop.f32.mrf.mxu0  ;;  %v4502_v10 = vadd.f32 %v9004_v56, %v12826_v7 }
 0x365   : > { %v4430_v23 = vpop.f32.mrf.mxu1 }
 0x366   : > { %v9054_v50 = vpop.f32.mrf.mxu0  ;;  %v12972_v32 = vadd.f32 %v4430_v23, %v12836_v48 }
 0x367   : > { %v12974_v54 = vadd.f32 %v9054_v50, %v4502_v10  ;;  %v9007_v1 = vpop.f32.mrf.mxu1 }
 0x368   : > { %v12976_v3 = vpop.f32.mrf.mxu0  ;;  %v4504_v42 = vadd.f32 %v9007_v1, %v12844_v25 }
 0x369   : > { %v4440_v0 = vpop.f32.mrf.mxu1 }
 0x36a   : > { %v9057_v30 = vpop.f32.mrf.mxu0  ;;  %v12980_v27 = vadd.f32 %v4440_v0, %v12851_v46 }
 0x36b   : > { %v12982_v14 = vadd.f32 %v9057_v30, %v4504_v42  ;;  %v9010_v7 = vpop.f32.mrf.mxu1 }
 0x36c   : > { %14195 = vst [vmem:[#allocation38_spill] sm:$0xff] %v12980_v27  ;;  %v12984_v35 = vpop.f32.mrf.mxu0  ;;  %v4506_v48 = vadd.f32 %v9010_v7, %v12860_v63 }
 0x36d   : > { %14196 = vst [vmem:[#allocation39_spill] sm:$0xff] %v12984_v35  ;;  %v4450_v34 = vpop.f32.mrf.mxu1 }
 0x36e   : > { %v9060_v6 = vpop.f32.mrf.mxu0  ;;  %v12988_v56 = vadd.f32 %v4450_v34, %v12871_v33 }
 0x36f   : > { %v12990_v10 = vadd.f32 %v9060_v6, %v4506_v48  ;;  %v9013_v25 = vpop.f32.mrf.mxu1 }
 0x370   : > { %14197 = vst [vmem:[#allocation40_spill] sm:$0xff] %v12988_v56  ;;  %v12992_v23 = vpop.f32.mrf.mxu0  ;;  %v4508_v46 = vadd.f32 %v9013_v25, %v12876_v39 }
 0x371   : > { %14198 = vst [vmem:[#allocation41_spill] sm:$0xff] %v12992_v23  ;;  %v4460_v50 = vpop.f32.mrf.mxu1 }
 0x372   : > { %v9063_v1 = vpop.f32.mrf.mxu0  ;;  %v12996_v42 = vadd.f32 %v4460_v50, %v12882_v17 }
 0x373   : > { %v12998_v0 = vadd.f32 %v9063_v1, %v4508_v46  ;;  %v9016_v63 = vpop.f32.mrf.mxu1 }
 0x374   : > { %14199 = vst [vmem:[#allocation42_spill] sm:$0xff] %v12996_v42  ;;  %v13000_v30 = vpop.f32.mrf.mxu0  ;;  %v4510_v33 = vadd.f32 %v9016_v63, %v12886_v58 }
 0x375   : > { %14200 = vst [vmem:[#allocation43_spill] sm:$0xff] %v13000_v30  ;;  %v4470_v7 = vpop.f32.mrf.mxu1 }
 0x376   : > { %v9066_v48 = vpop.f32.mrf.mxu0  ;;  %v13004_v34 = vadd.f32 %v4470_v7, %v12888_v45 }
 0x377   : > { %v13006_v6 = vadd.f32 %v9066_v48, %v4510_v33  ;;  %v13010_v25 = vpop.f32.mrf.mxu1 }
 0x378   : > { %14201 = vst [vmem:[#allocation44_spill] sm:$0xff] %v13004_v34  ;;  %v13008_v39 = vpop.f32.mrf.mxu0 }
 0x379   : > { %14202 = vst [vmem:[#allocation45_spill] sm:$0xff] %v13008_v39  ;;  %v13012_v17 = vpop.f32.mrf.mxu1 }
 0x37a   : > { %v13014_v46 = vpop.f32.mrf.mxu0 }
 0x37b   : > { %v9074_v50 = vpop.f32.mrf.mxu1 }
 0x37c   : > { %v13016_v1 = vpop.f32.mrf.mxu0  ;;  %v13019_v58 = vadd.f32 %v9074_v50, %v12902_v12 }
 0x37d   : > { %v13021_v63 = vpop.f32.mrf.mxu1 }
 0x37e   : > { %v13023_v45 = vpop.f32.mrf.mxu0 }
 0x37f   : > { %v9077_v33 = vpop.f32.mrf.mxu1 }
 0x380   : > { %v13025_v7 = vpop.f32.mrf.mxu0  ;;  %v13028_v48 = vadd.f32 %v9077_v33, %v12909_v60 }
 0x381   : > { %v13030_v39 = vpop.f32.mrf.mxu1 }
 0x382   : > { %v13032_v34 = vpop.f32.mrf.mxu0 }
 0x383   : > { %14203 = vst [vmem:[#allocation46_spill] sm:$0xff] %v13032_v34  ;;  %v9080_v30 = vpop.f32.mrf.mxu1 }
 0x384   : > { %v13034_v42 = vpop.f32.mrf.mxu0  ;;  %v13037_v12 = vadd.f32 %v9080_v30, %v12915_v53 }
 0x385   : > { %14204 = vst [vmem:[#allocation47_spill] sm:$0xff] %v13034_v42  ;;  %v5186_v50 = vpop.f32.mrf.mxu1 }
 0x386   : > { %v13039_v23 = vpop.f32.mrf.mxu0  ;;  %v13042_v56 = vadd.f32 %v5186_v50, %v12918_v57 }
 0x387   : > { %14205 = vst [vmem:[#allocation49_spill] sm:$0xff] %v13039_v23  ;;  %v9083_v35 = vpop.f32.mrf.mxu1 }
 0x388   : > { %v13044_v27 = vpop.f32.mrf.mxu0  ;;  %v13047_v60 = vadd.f32 %v9083_v35, %v12921_v41 }
 0x389   : > { %14206 = vst [vmem:[#allocation50_spill] sm:$0xff] %v13044_v27  ;;  %v5196_v33 = vpop.f32.mrf.mxu1 }
 0x38a   : > { %v13049_v34 = vpop.f32.mrf.mxu0  ;;  %v13052_v42 = vadd.f32 %v5196_v33, %v12924_v4 }
 0x38b   : > { %14207 = vst [vmem:[#allocation51_spill] sm:$0xff] %v13049_v34  ;;  %v9086_v53 = vpop.f32.mrf.mxu1 }
 0x38c   : > { %v13054_v30 = vpop.f32.mrf.mxu0  ;;  %v13057_v23 = vadd.f32 %v9086_v53, %v12928_v28 }
 0x38d   : > { %14208 = vst [vmem:[#allocation53_spill] sm:$0xff] %v13054_v30  ;;  %v13059_v57 = vpop.f32.mrf.mxu1 }
 0x38e   : > { %14209 = vst [vmem:[#allocation52_spill] sm:$0xff] %v13057_v23  ;;  %v13061_v50 = vpop.f32.mrf.mxu0 }
 0x38f   : > { %14210 = vst [vmem:[#allocation58_spill] sm:$0xff] %v13061_v50  ;;  %v9089_v27 = vpop.f32.mrf.mxu1 }
 0x390   : > { %v13064_v41 = vadd.f32 %v9089_v27, %v12935_v5  ;;  %v13068_v34 = vpop.f32.mrf.mxu0 }
 0x391   : > { %v13066_v35 = vpop.f32.mrf.mxu1  ;;  %14212 = vst [vmem:[#allocation66_spill] sm:$0xff] %v13068_v34 }
 0x392   : > { %14211 = vst [vmem:[#allocation55_spill] sm:$0xff] %v13064_v41  ;;  %v13075_v28 = vpop.f32.mrf.mxu0 }
 0x393   : > { %v9092_v4 = vpop.f32.mrf.mxu1  ;;  %14214 = vst [vmem:[#allocation69_spill] sm:$0xff] %v13075_v28 }
 0x394   : > { %v13071_v33 = vadd.f32 %v9092_v4, %v12942_v2  ;;  %v13082_v5 = vpop.f32.mrf.mxu0 }
 0x395   : > { %v13073_v30 = vpop.f32.mrf.mxu1 }
 0x396   : > { %14213 = vst [vmem:[#allocation62_spill] sm:$0xff] %v13071_v33  ;;  %v13089_v2 = vpop.f32.mrf.mxu0 }
 0x397   : > { %v9095_v53 = vpop.f32.mrf.mxu1 }
 0x398   : > { %v13078_v23 = vadd.f32 %v9095_v53, %v12950_v59  ;;  %v13096_v59 = vpop.f32.mrf.mxu0 }
 0x399   : > { %v13080_v50 = vpop.f32.mrf.mxu1 }
 0x39a   : > { %14215 = vst [vmem:[#allocation72_spill] sm:$0xff] %v13078_v23  ;;  %14216 = vst [vmem:[#allocation74_spill] sm:$0xff] %v13080_v50 }
 0x39b   : > { %v9098_v27 = vpop.f32.mrf.mxu1 }
 0x39c   : > { %v13085_v41 = vadd.f32 %v9098_v27, %v12958_v16  ;;  %v13103_v16 = vpop.f32.mrf.mxu0 }
 0x39d   : > { %v13087_v34 = vpop.f32.mrf.mxu1 }
 0x39e   : > { %14217 = vst [vmem:[#allocation75_spill] sm:$0xff] %v13085_v41  ;;  %14218 = vst [vmem:[#allocation76_spill] sm:$0xff] %v13087_v34 }
 0x39f   : > { %v9101_v4 = vpop.f32.mrf.mxu1 }
 0x3a0   : > { %v13092_v33 = vadd.f32 %v9101_v4, %v12966_v21  ;;  %v13110_v21 = vpop.f32.mrf.mxu0 }
 0x3a1   : > { %v13094_v28 = vpop.f32.mrf.mxu1 }
 0x3a2   : > { %14219 = vst [vmem:[#allocation77_spill] sm:$0xff] %v13092_v33  ;;  %14220 = vst [vmem:[#allocation48_spill] sm:$0xff] %v13094_v28 }
 0x3a3   : > { %v9104_v53 = vpop.f32.mrf.mxu1 }
 0x3a4   : > { %v13099_v23 = vadd.f32 %v9104_v53, %v12974_v54  ;;  %v4479_v54 = vadd.f32 %v12893_v31, %v12586_v9  ;;  %v13119_v53 = vpop.f32.mrf.mxu0 }
 0x3a5   : > { %v13101_v50 = vpop.f32.mrf.mxu1 }
 0x3a6   : > { %14221 = vst [vmem:[#allocation83_spill] sm:$0xff] %v13099_v23 }
 0x3a7   : > { %v9107_v27 = vpop.f32.mrf.mxu1 }
 0x3a8   : > { %v13106_v41 = vadd.f32 %v9107_v27, %v12982_v14  ;;  %v4898_v14 = vadd.f32 %v12895_v55, %v12891_v13  ;;  %v4483_v13 = vadd.f32 %v12907_v47, %v12650_v20  ;;  %v4489_v55 = vadd.f32 %v12926_v11, %v12722_v38  ;;  %v13155_v20 = vld [vmem:[%s13918_s13] ss:$0 sm:$0xff] }
 0x3a9   : > { %v13108_v34 = vpop.f32.mrf.mxu1 }
 0x3aa   : > { %14222 = vst [vmem:[#allocation79_spill] sm:$0xff] %v13106_v41  ;;  %14223 = vst [vmem:[#allocation78_spill] sm:$0xff] %v13108_v34  ;;  %v4897_v34 = vadd.f32 %v12897_v37, %v4479_v54  ;;  %v4491_v37 = vadd.f32 %v12933_v29, %v12742_v49  ;;  %v4907_v11 = vadd.f32 %v12930_v61, %v4489_v55  ;;  %v14226_v54 = vld [vmem:[#allocation38_spill] sm:$0xff] }
 0x3ab   : > { %v9110_v4 = vpop.f32.mrf.mxu1 }
 0x3ac   : > { %v13113_v33 = vadd.f32 %v9110_v4, %v12990_v10  ;;  %v4481_v10 = vadd.f32 %v12900_v43, %v12620_v26  ;;  %v5316_v4 = vadd.f32 %v13010_v25, %v4898_v14  ;;  %v5315_v31 = vadd.f32 %v13012_v17, %v4897_v34  ;;  %v14228_v14 = vld [vmem:[#allocation40_spill] sm:$0xff] }
 0x3ad   : > { %v13115_v28 = vpop.f32.mrf.mxu1  ;;  %v4493_v26 = vadd.f32 %v12940_v19, %v12761_v44  ;;  %v4901_v44 = vadd.f32 %v12911_v22, %v4483_v13  ;;  %v13166_v19 = vld [vmem:[%s13919_s14] ss:$0 sm:$0xff]  ;;  %v13170_v17 = vadd.f32 %v12952_v8, %v12948_v15 }
 0x3ae   : > { %14224 = vst [vmem:[#allocation82_spill] sm:$0xff] %v13113_v33  ;;  %14225 = vst [vmem:[#allocation80_spill] sm:$0xff] %v13115_v28  ;;  %v13132_v33 = vpop.f32.mrf.mxu0  ;;  %v5701_v38 = vadd.f32 %v13016_v1, %v5315_v31  ;;  %v13185_v1 = vadd.f32 %v12976_v3, %v12972_v32  ;;  %v14229_v32 = vld [vmem:[#allocation41_spill] sm:$0xff] }
 0x3af   : > { %v9113_v23 = vpop.f32.mrf.mxu1  ;;  %v4911_v29 = vadd.f32 %v12944_v24, %v4493_v26  ;;  %v13181_v24 = vadd.f32 %v12968_v51, %v12964_v18  ;;  %v5319_v15 = vadd.f32 %v13030_v39, %v4901_v44  ;;  %v14227_v18 = vld [vmem:[#allocation39_spill] sm:$0xff]  ;;  %v13201_v3 = vadd.f32 %v14229_v32, %v14228_v14  ;;  %v14230_v39 = vld [vmem:[#allocation42_spill] sm:$0xff] }
 0x3b0   : > { %v13124_v27 = vadd.f32 %v9113_v23, %v12998_v0  ;;  %v4899_v23 = vadd.f32 %v12904_v52, %v4481_v10  ;;  %v5702_v0 = vadd.f32 %v13014_v46, %v5316_v4  ;;  %v13150_v34 = vpop.f32.mrf.mxu0  ;;  %v4909_v52 = vadd.f32 %v12937_v40, %v4491_v37  ;;  %v14231_v10 = vld [vmem:[#allocation43_spill] sm:$0xff] }
 0x3b1   : > { %v13126_v41 = vpop.f32.mrf.mxu1  ;;  %v5704_v46 = vadd.f32 %v13023_v45, %v13019_v58  ;;  %v13177_v40 = vadd.f32 %v12960_v62, %v12956_v36  ;;  %v13197_v51 = vadd.f32 %v14227_v18, %v14226_v54  ;;  %v13205_v4 = vadd.f32 %v14231_v10, %v14230_v39  ;;  %v14239_v39 = vld [vmem:[#allocation53_spill] sm:$0xff] }
 0x3b2   : > { %v5317_v49 = vadd.f32 %v13021_v63, %v4899_v23  ;;  %v13188_v8 = vpop.f32.mrf.mxu0  ;;  %v5709_v10 = vadd.f32 %v14239_v39, %v13052_v42 }
 0x3b3   : > { %v9116_v9 = vpop.f32.mrf.mxu1 }
 0x3b4   : > { %v13136_v28 = vadd.f32 %v9116_v9, %v13006_v6  ;;  %v5703_v63 = vadd.f32 %v13025_v7, %v5317_v49  ;;  %v14232_v9 = vld [vmem:[#allocation44_spill] sm:$0xff]  ;;  %v14233_v7 = vld [vmem:[#allocation45_spill] sm:$0xff] }
 0x3b5   : > { %v13146_v43 = vpop.f32.mrf.mxu1  ;;  %v13209_v31 = vadd.f32 %v14233_v7, %v14232_v9  ;;  %v14240_v9 = vld [vmem:[#allocation52_spill] sm:$0xff]  ;;  %v14241_v7 = vld [vmem:[#allocation58_spill] sm:$0xff] }
 0x3b8   : > { %v9171_v6 = vpop.f32.mrf.mxu1 }
 0x3b9   : > { %v6120_v47 = vadd.f32 %v9171_v6, %v5702_v0  ;;  %v14234_v0 = vld [vmem:[#allocation46_spill] sm:$0xff] }
 0x3ba   : > { %v5960_v25 = vpop.f32.mrf.mxu1  ;;  %v5706_v6 = vadd.f32 %v14234_v0, %v13028_v48  ;;  %v14238_v48 = vld [vmem:[#allocation51_spill] sm:$0xff] }
 0x3bb   : > { %v6159_v22 = vmul.f32 %v13155_v20, %v6120_v47  ;;  %v6119_v61 = vadd.f32 %v5960_v25, %v5701_v38  ;;  %v14235_v38 = vld [vmem:[#allocation47_spill] sm:$0xff]  ;;  %v14236_v47 = vld [vmem:[#allocation49_spill] sm:$0xff]  ;;  %v14237_v25 = vld [vmem:[#allocation50_spill] sm:$0xff] }
 0x3bc   : > { %v9174_v58 = vpop.f32.mrf.mxu1  ;;  %v5705_v49 = vadd.f32 %v14235_v38, %v5319_v15  ;;  %v5708_v44 = vadd.f32 %v14236_v47, %v13037_v12  ;;  %v5710_v15 = vadd.f32 %v14238_v48, %v13047_v60  ;;  %v5327_v12 = vadd.f32 %v13066_v35, %v4909_v52  ;;  %v14244_v38 = vld [vmem:[#allocation69_spill] sm:$0xff] }
 0x3bd   : > { %v13192_v45 = vadd.f32 %v13166_v19, %v6159_v22  ;;  %v6158_v36 = vmul.f32 %v13155_v20, %v6119_v61  ;;  %v6122_v62 = vadd.f32 %v9174_v58, %v5704_v46  ;;  %v5707_v46 = vadd.f32 %v14237_v25, %v13042_v56  ;;  %v13223_v22 = vpop.f32.mrf.mxu0 }
 0x3be   : > { %v5970_v13 = vpop.f32.mrf.mxu1  ;;  %v5329_v60 = vadd.f32 %v13073_v30, %v4911_v29 }
 0x3bf   : > { %v8016_v55 = vmul.f32 -1.442695, %v13192_v45  ;;  %v13213_v37 = vadd.f32 %v13166_v19, %v6158_v36  ;;  %v6161_v26 = vmul.f32 %v13155_v20, %v6122_v62  ;;  %v6121_v23 = vadd.f32 %v5970_v13, %v5703_v63 }
 0x3c0   : > { %v9177_v61 = vpop.f32.mrf.mxu1  ;;  %v5325_v62 = vadd.f32 %v13059_v57, %v4907_v11  ;;  %v5712_v13 = vadd.f32 %v14241_v7, %v14240_v9  ;;  %v5652_v57 = vpop.f32.mrf.mxu0 }
 0x3c1   : > { %9710 = vpow2.f32 %v8016_v55  ;;  %v8015_v58 = vmul.f32 -1.442695, %v13213_v37  ;;  %v13227_v36 = vadd.f32 %v13166_v19, %v6161_v26  ;;  %v6160_v63 = vmul.f32 %v13155_v20, %v6121_v23  ;;  %v14242_v23 = vld [vmem:[#allocation66_spill] sm:$0xff] }
 0x3c2   : > { %v6124_v54 = vadd.f32 %v9177_v61, %v5706_v6  ;;  %v5980_v56 = vpop.f32.mrf.mxu1  ;;  %v5711_v0 = vadd.f32 %v14242_v23, %v5325_v62  ;;  %v14243_v6 = vld [vmem:[#allocation55_spill] sm:$0xff]  ;;  %v9157_v62 = vpop.f32.mrf.mxu0 }
 0x3c3   : > { %9712 = vpow2.f32 %v8015_v58  ;;  %v8018_v18 = vmul.f32 -1.442695, %v13227_v36  ;;  %v13236_v14 = vadd.f32 %v13166_v19, %v6160_v63  ;;  %v6123_v32 = vadd.f32 %v5980_v56, %v5705_v49 }
 0x3c4   : > { %v6163_v35 = vmul.f32 %v13155_v20, %v6124_v54  ;;  %v9180_v11 = vpop.f32.mrf.mxu1  ;;  %v5714_v42 = vadd.f32 %v14244_v38, %v14243_v6  ;;  %v13250_v49 = vadd.f32 %v13082_v5, %v5327_v12  ;;  %v13264_v63 = vadd.f32 %v13096_v59, %v5329_v60  ;;  %v14246_v5 = vld [vmem:[#allocation74_spill] sm:$0xff]  ;;  %v14248_v59 = vld [vmem:[#allocation76_spill] sm:$0xff] }
 0x3c5   : > { %9714 = vpow2.f32 %v8018_v18  ;;  %v8017_v52 = vmul.f32 -1.442695, %v13236_v14  ;;  %v6162_v55 = vmul.f32 %v13155_v20, %v6123_v32  ;;  %v6126_v26 = vadd.f32 %v9180_v11, %v5708_v44  ;;  %v14245_v44 = vld [vmem:[#allocation62_spill] sm:$0xff] }
 0x3c6   : > { %v13253_v30 = vadd.f32 %v13166_v19, %v6163_v35  ;;  %v5990_v29 = vpop.f32.mrf.mxu1  ;;  %v13261_v58 = vadd.f32 %v13089_v2, %v14245_v44  ;;  %v5331_v48 = vadd.f32 %v14246_v5, %v13170_v17  ;;  %v14247_v2 = vld [vmem:[#allocation72_spill] sm:$0xff]  ;;  %v5333_v9 = vadd.f32 %v14248_v59, %v13177_v40 }
 0x3c7   : > { %9716 = vpow2.f32 %v8017_v52  ;;  %v13256_v47 = vadd.f32 %v13166_v19, %v6162_v55  ;;  %v6165_v25 = vmul.f32 %v13155_v20, %v6126_v26  ;;  %v6125_v61 = vadd.f32 %v5990_v29, %v5707_v46  ;;  %v14249_v17 = vld [vmem:[#allocation48_spill] sm:$0xff] }
 0x3c8   : > { %v8020_v12 = vmul.f32 -1.442695, %v13253_v30  ;;  %v9183_v54 = vpop.f32.mrf.mxu1  ;;  %v13276_v39 = vadd.f32 %v13103_v16, %v14247_v2  ;;  %v5335_v7 = vadd.f32 %v14249_v17, %v13181_v24  ;;  %v13288_v52 = vadd.f32 %v13110_v21, %v5331_v48  ;;  %v14250_v16 = vld [vmem:[#allocation75_spill] sm:$0xff]  ;;  %v5662_v24 = vpop.f32.mrf.mxu0  ;;  %v14253_v17 = vld [vmem:[#allocation78_spill] sm:$0xff] }
 0x3c9   : > { %v8019_v56 = vmul.f32 -1.442695, %v13256_v47  ;;  %v13271_v18 = vadd.f32 %v13166_v19, %v6165_v25  ;;  %v6164_v46 = vmul.f32 %v13155_v20, %v6125_v61  ;;  %v6128_v32 = vadd.f32 %v9183_v54, %v5710_v15  ;;  %v14251_v61 = vld [vmem:[#allocation77_spill] sm:$0xff] }
 0x3ca   : > { %9718 = vpow2.f32 %v8020_v12  ;;  %v6000_v60 = vpop.f32.mrf.mxu1  ;;  %v13292_v55 = vadd.f32 %v13119_v53, %v14250_v16  ;;  %v5337_v40 = vadd.f32 %v13101_v50, %v13185_v1  ;;  %v13301_v21 = vadd.f32 %v13132_v33, %v5333_v9  ;;  %v14252_v12 = vld [vmem:[#allocation83_spill] sm:$0xff] }
 0x3cb   : > { %9720 = vpow2.f32 %v8019_v56  ;;  %v8022_v35 = vmul.f32 -1.442695, %v13271_v18  ;;  %v13284_v11 = vadd.f32 %v13166_v19, %v6164_v46  ;;  %v6167_v15 = vmul.f32 %v13155_v20, %v6128_v32 }
 0x3cc   : > { %v6127_v26 = vadd.f32 %v6000_v60, %v5709_v10  ;;  %v9186_v23 = vpop.f32.mrf.mxu1  ;;  %v13305_v53 = vadd.f32 %v13150_v34, %v14251_v61  ;;  %v13308_v50 = vadd.f32 %v13188_v8, %v5335_v7  ;;  %v13315_v33 = vadd.f32 %v13223_v22, %v14252_v12  ;;  %v9160_v34 = vpop.f32.mrf.mxu0 }
 0x3cd   : > { %9722 = vpow2.f32 %v8022_v35  ;;  %v8021_v6 = vmul.f32 -1.442695, %v13284_v11  ;;  %v13298_v38 = vadd.f32 %v13166_v19, %v6167_v15  ;;  %v6130_v29 = vadd.f32 %v9186_v23, %v5712_v13 }
 0x3ce   : > { %v9711_v25 = vpop.eup %9710  ;;  %v6166_v1 = vmul.f32 %v13155_v20, %v6127_v26  ;;  %v6010_v10 = vpop.f32.mrf.mxu1  ;;  %v13317_v54 = vadd.f32 %v5652_v57, %v5337_v40  ;;  %v5339_v7 = vadd.f32 %v14253_v17, %v13197_v51  ;;  %v14254_v40 = vld [vmem:[#allocation79_spill] sm:$0xff] }
 0x3cf   : > { %v6326_v44 = vadd.f32 1.0, %v9711_v25  ;;  %9724 = vpow2.f32 %v8021_v6  ;;  %v8024_v5 = vmul.f32 -1.442695, %v13298_v38  ;;  %v6169_v13 = vmul.f32 %v13155_v20, %v6130_v29 }
 0x3d0   : > { %v9713_v48 = vpop.eup %9712  ;;  %v13320_v8 = vadd.f32 %v13166_v19, %v6166_v1  ;;  %v6129_v56 = vadd.f32 %v6010_v10, %v5711_v0  ;;  %v9189_v46 = vpop.f32.mrf.mxu1  ;;  %v13332_v26 = vadd.f32 %v9157_v62, %v14254_v40  ;;  %v13342_v1 = vadd.f32 %v5662_v24, %v5339_v7 }
 0x3d1   : > { %9726 = vrcp.f32 %v6326_v44  ;;  %v6325_v32 = vadd.f32 1.0, %v9713_v48  ;;  %v13323_v2 = vadd.f32 %v13166_v19, %v6169_v13  ;;  %v6132_v59 = vadd.f32 %v9189_v46, %v5714_v42  ;;  %v5672_v42 = vpop.f32.mrf.mxu0 }
 0x3d2   : > { %v9715_v9 = vpop.eup %9714  ;;  %9728 = vpow2.f32 %v8024_v5  ;;  %v8023_v22 = vmul.f32 -1.442695, %v13320_v8  ;;  %v6168_v57 = vmul.f32 %v13155_v20, %v6129_v56  ;;  %v6020_v60 = vpop.f32.mrf.mxu1  ;;  %v14255_v56 = vld [vmem:[#allocation80_spill] sm:$0xff] }
 0x3d3   : > { %9730 = vrcp.f32 %v6325_v32  ;;  %v6328_v35 = vadd.f32 1.0, %v9715_v9  ;;  %v8026_v0 = vmul.f32 -1.442695, %v13323_v2  ;;  %v6171_v15 = vmul.f32 %v13155_v20, %v6132_v59  ;;  %v9163_v24 = vpop.f32.mrf.mxu0 }
 0x3d4   : > { %v9717_v16 = vpop.eup %9716  ;;  %9732 = vpow2.f32 %v8023_v22  ;;  %v13335_v51 = vadd.f32 %v13166_v19, %v6168_v57  ;;  %v6131_v23 = vadd.f32 %v6020_v60, %v13250_v49  ;;  %v9192_v6 = vpop.f32.mrf.mxu1 }
 0x3d5   : > { %9734 = vrcp.f32 %v6328_v35  ;;  %v6327_v29 = vadd.f32 1.0, %v9717_v16  ;;  %v13339_v25 = vadd.f32 %v13166_v19, %v6171_v15  ;;  %v6134_v61 = vadd.f32 %v9192_v6, %v13261_v58 }
 0x3d6   : > { %9736 = vpow2.f32 %v8026_v0  ;;  %v8025_v62 = vmul.f32 -1.442695, %v13335_v51  ;;  %v6170_v10 = vmul.f32 %v13155_v20, %v6131_v23  ;;  %v6030_v44 = vpop.f32.mrf.mxu1  ;;  %v5341_v58 = vadd.f32 %v14255_v56, %v13201_v3 }
 0x3d7   : > { %v9719_v5 = vpop.eup %9718  ;;  %9738 = vrcp.f32 %v6327_v29  ;;  %v8028_v49 = vmul.f32 -1.442695, %v13339_v25  ;;  %v6173_v13 = vmul.f32 %v13155_v20, %v6134_v61  ;;  %v6133_v48 = vadd.f32 %v6030_v44, %v13264_v63  ;;  %v14256_v63 = vld [vmem:[#allocation82_spill] sm:$0xff] }
 0x3d8   : > { %v9721_v12 = vpop.eup %9720  ;;  %v6330_v46 = vadd.f32 1.0, %v9719_v5  ;;  %9740 = vpow2.f32 %v8025_v62  ;;  %v13352_v32 = vadd.f32 %v13166_v19, %v6170_v10  ;;  %v9195_v59 = vpop.f32.mrf.mxu1  ;;  %v13359_v57 = vadd.f32 %v9160_v34, %v14256_v63 }
 0x3d9   : > { %v6329_v9 = vadd.f32 1.0, %v9721_v12  ;;  %9742 = vpow2.f32 %v8028_v49  ;;  %v13355_v17 = vadd.f32 %v13166_v19, %v6173_v13  ;;  %v6172_v7 = vmul.f32 %v13155_v20, %v6133_v48  ;;  %v5682_v34 = vpop.f32.mrf.mxu0 }
 0x3da   : > { %v9723_v22 = vpop.eup %9722  ;;  %v5343_v3 = vadd.f32 %v13126_v41, %v13205_v4  ;;  %v8027_v60 = vmul.f32 -1.442695, %v13352_v32  ;;  %v6136_v35 = vadd.f32 %v9195_v59, %v13276_v39  ;;  %v6040_v0 = vpop.f32.mrf.mxu1  ;;  %v13369_v6 = vadd.f32 %v5672_v42, %v5341_v58 }
 0x3db   : > { %9744 = vrcp.f32 %v6329_v9  ;;  %v6332_v15 = vadd.f32 1.0, %v9723_v22  ;;  %v8030_v16 = vmul.f32 -1.442695, %v13355_v17  ;;  %v13367_v40 = vadd.f32 %v13166_v19, %v6172_v7 }
 0x3dc   : > { %v9725_v23 = vpop.eup %9724  ;;  %9746 = vpow2.f32 %v8027_v60  ;;  %v6175_v29 = vmul.f32 %v13155_v20, %v6136_v35  ;;  %v6135_v41 = vadd.f32 %v6040_v0, %v13288_v52  ;;  %v9198_v4 = vpop.f32.mrf.mxu1  ;;  %v13376_v44 = vadd.f32 %v9163_v24, %v13124_v27 }
 0x3dd   : > { %9748 = vrcp.f32 %v6330_v46  ;;  %v6331_v39 = vadd.f32 1.0, %v9725_v23  ;;  %v8029_v61 = vmul.f32 -1.442695, %v13367_v40  ;;  %v6138_v62 = vadd.f32 %v9198_v4, %v13292_v55 }
 0x3de   : > { %v9727_v10 = vpop.eup %9726  ;;  %9750 = vpow2.f32 %v8030_v16  ;;  %v13379_v42 = vadd.f32 %v13166_v19, %v6175_v29  ;;  %v6174_v5 = vmul.f32 %v13155_v20, %v6135_v41  ;;  %v6050_v49 = vpop.f32.mrf.mxu1  ;;  %v13382_v52 = vadd.f32 %v5682_v34, %v5343_v3 }
 0x3df   : > { %v9729_v13 = vpop.eup %9728  ;;  %9752 = vrcp.f32 %v6332_v15  ;;  %v6177_v48 = vmul.f32 %v13155_v20, %v6138_v62  ;;  %v6137_v12 = vadd.f32 %v6050_v49, %v13301_v21  ;;  %v6422_v59 = vmul.f32 %v9727_v10, %v13192_v45 }
 0x3e0   : > { %v9731_v55 = vpop.eup %9730  ;;  %v6334_v56 = vadd.f32 1.0, %v9729_v13  ;;  %9754 = vpow2.f32 %v8029_v61  ;;  %v8032_v27 = vmul.f32 -1.442695, %v13379_v42  ;;  %v13388_v58 = vadd.f32 %v13166_v19, %v6174_v5  ;;  %v9201_v24 = vpop.f32.mrf.mxu1 }
 0x3e1   : > { %v9733_v46 = vpop.eup %9732  ;;  %9756 = vrcp.f32 %v6331_v39  ;;  %v13392_v9 = vadd.f32 %v13166_v19, %v6177_v48  ;;  %v6176_v7 = vmul.f32 %v13155_v20, %v6137_v12  ;;  %v6140_v3 = vadd.f32 %v9201_v24, %v13305_v53  ;;  %v9166_v39 = vpop.f32.mrf.mxu0 }
 0x3e2   : > { %v9735_v22 = vpop.eup %9734  ;;  %9758 = vrcp.f32 %v6334_v56  ;;  %v6333_v21 = vadd.f32 1.0, %v9733_v46  ;;  %v8031_v63 = vmul.f32 -1.442695, %v13388_v58  ;;  %v6060_v60 = vpop.f32.mrf.mxu1  ;;  %v6421_v0 = vmul.f32 %v9731_v55, %v13213_v37  ;;  %v14257_v37 = vld [vmem:[#allocation4_spill] sm:$0xff] }
 0x3e3   : > { %v9737_v35 = vpop.eup %9736  ;;  %9760 = vpow2.f32 %v8032_v27  ;;  %v8034_v45 = vmul.f32 -1.442695, %v13392_v9  ;;  %v13400_v15 = vadd.f32 %v13166_v19, %v6176_v7  ;;  %v6179_v34 = vmul.f32 %v13155_v20, %v6140_v3  ;;  %v5692_v7 = vpop.f32.mrf.mxu0 }
 0x3e4   : > { %v9739_v16 = vpop.eup %9738  ;;  %9762 = vrcp.f32 %v6333_v21  ;;  %v6336_v23 = vadd.f32 1.0, %v9737_v35  ;;  %v6139_v29 = vadd.f32 %v6060_v60, %v13308_v50  ;;  %v9204_v41 = vpop.f32.mrf.mxu1  ;;  %v5345_v53 = vadd.f32 %v13146_v43, %v13209_v31  ;;  %v14258_v43 = vld [vmem:[#allocation3_spill] sm:$0xff] }
 0x3e5   : > { %v9741_v4 = vpop.eup %9740  ;;  %v6454_v61 = vadd.f32 %v6422_v59, %v14257_v37  ;;  %9764 = vpow2.f32 %v8031_v63  ;;  %v8033_v62 = vmul.f32 -1.442695, %v13400_v15  ;;  %v13409_v49 = vadd.f32 %v13166_v19, %v6179_v34  ;;  %v14259_v34 = vld [vmem:[#allocation5_spill] sm:$0xff] }
 0x3e6   : > { %v9743_v10 = vpop.eup %9742  ;;  %9766 = vrcp.f32 %v6336_v23  ;;  %v6335_v5 = vadd.f32 1.0, %v9741_v4  ;;  %v6178_v13 = vmul.f32 %v13155_v20, %v6139_v29  ;;  %v6070_v50 = vpop.f32.mrf.mxu1  ;;  %v6142_v12 = vadd.f32 %v9204_v41, %v13315_v33 }
 0x3e7   : > { %v6338_v48 = vadd.f32 1.0, %v9743_v10  ;;  %9768 = vpow2.f32 %v8034_v45  ;;  %v6453_v31 = vadd.f32 %v6421_v0, %v14258_v43  ;;  %v6423_v56 = vmul.f32 %v9739_v16, %v13236_v14 }
 0x3e8   : > { %v9745_v55 = vpop.eup %9744  ;;  %9770 = vrcp.f32 %v6335_v5  ;;  %v8036_v27 = vmul.f32 -1.442695, %v13409_v49  ;;  %v13417_v24 = vadd.f32 %v13166_v19, %v6178_v13  ;;  %v9207_v46 = vpop.f32.mrf.mxu1  ;;  %v6424_v21 = vmul.f32 %v9735_v22, %v13227_v36 }
 0x3e9   : > { %v9747_v59 = vpop.eup %9746  ;;  %9772 = vrcp.f32 %v6338_v48  ;;  %v6181_v63 = vmul.f32 %v13155_v20, %v6142_v12  ;;  %9269 = vmatprep.mubr.msk.f32.mxu1 %vm603_vm1, %v6453_v31  ;;  %v6141_v33 = vadd.f32 %v6070_v50, %v13317_v54  ;;  %v13424_v14 = vadd.f32 %v9166_v39, %v13136_v28  ;;  %v14260_v39 = vld [vmem:[#allocation6_spill] sm:$0xff]  ;;  %v14261_v12 = vld [vmem:[#allocation7_spill] sm:$0xff] }
 0x3ea   : > { %v9749_v3 = vpop.eup %9748  ;;  %v6337_v60 = vadd.f32 1.0, %v9747_v59  ;;  %9774 = vpow2.f32 %v8033_v62  ;;  %v8035_v35 = vmul.f32 -1.442695, %v13417_v24  ;;  %9270 = vmatmul.mubr.msk.f32.vlgmr.msra.gmra.mxu1 %vm603_vm1, %v6454_v61  ;;  %v6080_v0 = vpop.f32.mrf.mxu1  ;;  %v6425_v36 = vmul.f32 %v9745_v55, %v13256_v47 }
 0x3eb   : > { %v9751_v45 = vpop.eup %9750  ;;  %9776 = vpow2.f32 %v8036_v27  ;;  %v13430_v22 = vadd.f32 %v13166_v19, %v6181_v63  ;;  %v6180_v54 = vmul.f32 %v13155_v20, %v6141_v33  ;;  %v13433_v23 = vadd.f32 %v5692_v7, %v5345_v53  ;;  %v14262_v7 = vld [vmem:[#allocation8_spill] sm:$0xff] }
 0x3ec   : > { %v9753_v16 = vpop.eup %9752  ;;  %9778 = vrcp.f32 %v6337_v60  ;;  %v6144_v28 = vadd.f32 %v9207_v46, %v13332_v26  ;;  %v6455_v29 = vadd.f32 %v6423_v56, %v14259_v34  ;;  %v9210_v41 = vpop.f32.mrf.mxu1  ;;  %v6456_v37 = vadd.f32 %v6424_v21, %v14260_v39 }
 0x3ed   : > { %v9755_v4 = vpop.eup %9754  ;;  %v6426_v47 = vmul.f32 %v9749_v3, %v13253_v30  ;;  %9780 = vpow2.f32 %v8035_v35  ;;  %v8038_v61 = vmul.f32 -1.442695, %v13430_v22  ;;  %v6340_v10 = vadd.f32 1.0, %v9751_v45 }
 0x3ee   : > { %v9757_v62 = vpop.eup %9756  ;;  %v6339_v5 = vadd.f32 1.0, %v9755_v4  ;;  %v13441_v53 = vadd.f32 %v13166_v19, %v6180_v54  ;;  %v6183_v13 = vmul.f32 %v13155_v20, %v6144_v28  ;;  %9272 = vmatprep.mubr.msk.f32.mxu1 %vm603_vm1, %v6455_v29  ;;  %v6090_v26 = vpop.f32.mrf.mxu1  ;;  %v6143_v48 = vadd.f32 %v6080_v0, %v13342_v1 }
 0x3ef   : > { %v9759_v50 = vpop.eup %9758  ;;  %9782 = vpow2.f32 %v8038_v61  ;;  %9273 = vmatmul.mubr.msk.f32.gmra.mxu1 %vm603_vm1, %v6456_v37  ;;  %v6146_v30 = vadd.f32 %v9210_v41, %v13359_v57  ;;  %v6457_v43 = vadd.f32 %v6425_v36, %v14261_v12  ;;  %v6428_v55 = vmul.f32 %v9753_v16, %v13271_v18  ;;  %v14263_v16 = vld [vmem:[#allocation10_spill] sm:$0xff] }
 0x3f0   : > { %v9761_v31 = vpop.eup %9760  ;;  %9784 = vrcp.f32 %v6339_v5  ;;  %v8037_v56 = vmul.f32 -1.442695, %v13441_v53  ;;  %v13452_v27 = vadd.f32 %v13166_v19, %v6183_v13  ;;  %v9213_v46 = vpop.f32.mrf.mxu1  ;;  %v6458_v21 = vadd.f32 %v6426_v47, %v14262_v7  ;;  %v14264_v13 = vld [vmem:[#allocation9_spill] sm:$0xff] }
 0x3f1   : > { %v9763_v59 = vpop.eup %9762  ;;  %v6182_v1 = vmul.f32 %v13155_v20, %v6143_v48  ;;  %v6185_v63 = vmul.f32 %v13155_v20, %v6146_v30  ;;  %9275 = vmatprep.mubr.msk.f32.mxu1 %vm603_vm1, %v6457_v43  ;;  %v6145_v57 = vadd.f32 %v6090_v26, %v13369_v6  ;;  %v6427_v18 = vmul.f32 %v9757_v62, %v13284_v11 }
 0x3f2   : > { %v9765_v33 = vpop.eup %9764  ;;  %v6342_v3 = vadd.f32 1.0, %v9761_v31  ;;  %9786 = vpow2.f32 %v8037_v56  ;;  %v8040_v60 = vmul.f32 -1.442695, %v13452_v27  ;;  %v6100_v35 = vpop.f32.mrf.mxu1  ;;  %v6460_v28 = vadd.f32 %v6428_v55, %v14263_v16 }
 0x3f3   : > { %v9767_v0 = vpop.eup %9766  ;;  %9788 = vrcp.f32 %v6340_v10  ;;  %v6341_v45 = vadd.f32 1.0, %v9765_v33  ;;  %v13462_v36 = vadd.f32 %v13166_v19, %v6182_v1  ;;  %v13465_v54 = vadd.f32 %v13166_v19, %v6185_v63  ;;  %9276 = vmatmul.mubr.msk.f32.gmra.mxu1 %vm603_vm1, %v6458_v21  ;;  %v14265_v1 = vld [vmem:[#allocation12_spill] sm:$0xff]  ;;  %v14266_v33 = vld [vmem:[#allocation11_spill] sm:$0xff] }
 0x3f4   : > { %v9769_v6 = vpop.eup %9768  ;;  %9790 = vpow2.f32 %v8040_v60  ;;  %v6184_v11 = vmul.f32 %v13155_v20, %v6145_v57  ;;  %v6148_v34 = vadd.f32 %v9213_v46, %v13376_v44  ;;  %v9216_v37 = vpop.f32.mrf.mxu1  ;;  %v6430_v61 = vmul.f32 %v9759_v50, %v13298_v38 }
 0x3f5   : > { %v9771_v29 = vpop.eup %9770  ;;  %9792 = vrcp.f32 %v6341_v45  ;;  %v6344_v41 = vadd.f32 1.0, %v9769_v6  ;;  %v8039_v4 = vmul.f32 -1.442695, %v13462_v36  ;;  %v8042_v39 = vmul.f32 -1.442695, %v13465_v54  ;;  %v14268_v45 = vld [vmem:[#allocation13_spill] sm:$0xff] }
 0x3f6   : > { %v9773_v47 = vpop.eup %9772  ;;  %9794 = vrcp.f32 %v6342_v3  ;;  %v13475_v62 = vadd.f32 %v13166_v19, %v6184_v11  ;;  %v6187_v10 = vmul.f32 %v13155_v20, %v6148_v34  ;;  %v6429_v44 = vmul.f32 %v9763_v59, %v13320_v8  ;;  %v6110_v56 = vpop.f32.mrf.mxu1 }
 0x3f7   : > { %v9775_v5 = vpop.eup %9774  ;;  %9796 = vrcp.f32 %v6344_v41  ;;  %v6459_v26 = vadd.f32 %v6427_v18, %v14264_v13  ;;  %v6147_v48 = vadd.f32 %v6100_v35, %v13382_v52  ;;  %v6432_v31 = vmul.f32 %v9767_v0, %v13323_v2 }
 0x3f8   : > { %v9777_v30 = vpop.eup %9776  ;;  %v6343_v12 = vadd.f32 1.0, %v9775_v5  ;;  %9798 = vpow2.f32 %v8039_v4  ;;  %v8041_v43 = vmul.f32 -1.442695, %v13475_v62  ;;  %v13483_v38 = vadd.f32 %v13166_v19, %v6187_v10 }
 0x3f9   : > { %v9779_v50 = vpop.eup %9778  ;;  %v6431_v55 = vmul.f32 %v9771_v29, %v13335_v51  ;;  %9800 = vpow2.f32 %v8042_v39  ;;  %9278 = vmatprep.mubr.msk.f32.mxu1 %vm603_vm1, %v6459_v26  ;;  %v6186_v8 = vmul.f32 %v13155_v20, %v6147_v48  ;;  %v6346_v46 = vadd.f32 1.0, %v9777_v30  ;;  %v14269_v29 = vld [vmem:[#allocation15_spill] sm:$0xff]  ;;  %v14271_v30 = vld [vmem:[#allocation16_spill] sm:$0xff] }
 0x3fa   : > { %v9781_v52 = vpop.eup %9780  ;;  %9802 = vrcp.f32 %v6343_v12  ;;  %v8044_v59 = vmul.f32 -1.442695, %v13483_v38  ;;  %9279 = vmatmul.mubr.msk.f32.gmra.mxu1 %vm603_vm1, %v6460_v28  ;;  %v6150_v7 = vadd.f32 %v9216_v37, %v13424_v14  ;;  %v6433_v21 = vmul.f32 %v9779_v50, %v13352_v32  ;;  %v14267_v32 = vld [vmem:[#allocation14_spill] sm:$0xff] }
 0x3fb   : > { %v6345_v2 = vadd.f32 1.0, %v9781_v52  ;;  %v13494_v51 = vadd.f32 %v13166_v19, %v6186_v8  ;;  %v6461_v63 = vadd.f32 %v6429_v44, %v14265_v1  ;;  %v6462_v18 = vadd.f32 %v6430_v61, %v14266_v33  ;;  %v14272_v8 = vld [vmem:[#allocation19_spill] sm:$0xff]  ;;  %v14273_v52 = vld [vmem:[#allocation18_spill] sm:$0xff] }
 0x3fc   : > { %v9783_v57 = vpop.eup %9782  ;;  %9804 = vpow2.f32 %v8041_v43  ;;  %v6189_v3 = vmul.f32 %v13155_v20, %v6150_v7  ;;  %v6149_v60 = vadd.f32 %v6110_v56, %v13433_v23  ;;  %v6463_v0 = vadd.f32 %v6431_v55, %v14267_v32 }
 0x3fd   : > { %v9785_v35 = vpop.eup %9784  ;;  %9806 = vrcp.f32 %v6345_v2  ;;  %v8043_v14 = vmul.f32 -1.442695, %v13494_v51  ;;  %9281 = vmatprep.mubr.msk.f32.mxu1 %vm603_vm1, %v6461_v63  ;;  %v6464_v6 = vadd.f32 %v6432_v31, %v14268_v45  ;;  %v6434_v23 = vmul.f32 %v9773_v47, %v13339_v25  ;;  %v14270_v25 = vld [vmem:[#allocation17_spill] sm:$0xff] }
 0x3fe   : > { %v6435_v16 = vmul.f32 %v9785_v35, %v13367_v40  ;;  %9808 = vpow2.f32 %v8044_v59  ;;  %v13506_v28 = vadd.f32 %v13166_v19, %v6189_v3  ;;  %9282 = vmatmul.mubr.msk.f32.gmra.mxu1 %vm603_vm1, %v6462_v18  ;;  %v6188_v34 = vmul.f32 %v13155_v20, %v6149_v60  ;;  %v14275_v3 = vld [vmem:[#allocation20_spill] sm:$0xff] }
 0x3ff   : > { %v9787_v11 = vpop.eup %9786  ;;  %9810 = vrcp.f32 %v6346_v46  ;;  %9284 = vmatprep.mubr.msk.f32.mxu1 %vm603_vm1, %v6463_v0  ;;  %v6465_v41 = vadd.f32 %v6433_v21, %v14269_v29  ;;  %v6348_v39 = vadd.f32 1.0, %v9783_v57  ;;  %v6466_v12 = vadd.f32 %v6434_v23, %v14271_v30  ;;  %v14274_v57 = vld [vmem:[#allocation21_spill] sm:$0xff] }
 0x400   : > { %v9789_v4 = vpop.eup %9788  ;;  %v6347_v37 = vadd.f32 1.0, %v9787_v11  ;;  %9812 = vpow2.f32 %v8043_v14  ;;  %v8046_v40 = vmul.f32 -1.442695, %v13506_v28  ;;  %v13515_v10 = vadd.f32 %v13166_v19, %v6188_v34 }
 0x401   : > { %v9791_v61 = vpop.eup %9790  ;;  %v6467_v20 = vadd.f32 %v6435_v16, %v14270_v25  ;;  %v6436_v19 = vmul.f32 %v9789_v4, %v13355_v17  ;;  %v14278_v4 = vld [vmem:[#allocation25_spill] sm:$0xff] }
 0x402   : > { %v9793_v5 = vpop.eup %9792  ;;  %9814 = vrcp.f32 %v6347_v37  ;;  %9285 = vmatmul.mubr.msk.f32.gmra.mxu1 %vm603_vm1, %v6464_v6  ;;  %v6350_v13 = vadd.f32 1.0, %v9791_v61  ;;  %v8045_v26 = vmul.f32 -1.442695, %v13515_v10  ;;  %v14277_v6 = vld [vmem:[#allocation22_spill] sm:$0xff] }
 0x403   : > { %v9795_v47 = vpop.eup %9794  ;;  %v6437_v44 = vmul.f32 %v9793_v5, %v13388_v58  ;;  %9816 = vpow2.f32 %v8046_v40  ;;  %9287 = vmatprep.mubr.msk.f32.mxu1 %vm603_vm1, %v6465_v41  ;;  %v6468_v46 = vadd.f32 %v6436_v19, %v14273_v52  ;;  %v14279_v40 = vld [vmem:[#allocation24_spill] sm:$0xff] }
 0x404   : > { %v9797_v48 = vpop.eup %9796  ;;  %9818 = vrcp.f32 %v6348_v39  ;;  %v6438_v59 = vmul.f32 %v9795_v47, %v13379_v42 }
 0x405   : > { %v9799_v43 = vpop.eup %9798  ;;  %9820 = vpow2.f32 %v8045_v26  ;;  %v6469_v56 = vadd.f32 %v6437_v44, %v14272_v8  ;;  %v6440_v42 = vmul.f32 %v9797_v48, %v13392_v9  ;;  %v14285_v8 = vld [vmem:[#allocation31_spill] sm:$0xff] }
 0x406   : > { %v9801_v50 = vpop.eup %9800  ;;  %v6349_v31 = vadd.f32 1.0, %v9799_v43  ;;  %9288 = vmatmul.mubr.msk.f32.gmra.mxu1 %vm603_vm1, %v6466_v12  ;;  %9822 = vrcp.f32 %v6350_v13  ;;  %v6470_v60 = vadd.f32 %v6438_v59, %v14275_v3  ;;  %v14281_v13 = vld [vmem:[#allocation27_spill] sm:$0xff]  ;;  %v14283_v43 = vld [vmem:[#allocation29_spill] sm:$0xff]  ;;  %v14286_v59 = vld [vmem:[#allocation32_spill] sm:$0xff] }
 0x407   : > { %v9803_v55 = vpop.eup %9802  ;;  %v6352_v58 = vadd.f32 1.0, %v9801_v50  ;;  %9290 = vmatprep.mubr.msk.f32.mxu1 %vm603_vm1, %v6467_v20  ;;  %v6472_v16 = vadd.f32 %v6440_v42, %v14277_v6  ;;  %v14280_v20 = vld [vmem:[#allocation26_spill] sm:$0xff] }
 0x408   : > { %v6439_v17 = vmul.f32 %v9803_v55, %v13400_v15  ;;  %9824 = vrcp.f32 %v6349_v31 }
 0x409   : > { %v9805_v7 = vpop.eup %9804  ;;  %9826 = vrcp.f32 %v6352_v58 }
 0x40a   : > { %v9807_v21 = vpop.eup %9806  ;;  %v6351_v2 = vadd.f32 1.0, %v9805_v7  ;;  %9291 = vmatmul.mubr.msk.f32.gmra.mxu1 %vm603_vm1, %v6468_v46  ;;  %v6471_v33 = vadd.f32 %v6439_v17, %v14274_v57  ;;  %v14287_v7 = vld [vmem:[#allocation34_spill] sm:$0xff] }
 0x40b   : > { %v9809_v1 = vpop.eup %9808  ;;  %v6441_v63 = vmul.f32 %v9807_v21, %v13417_v24  ;;  %9293 = vmatprep.mubr.msk.f32.mxu1 %vm603_vm1, %v6469_v56  ;;  %v14276_v24 = vld [vmem:[#allocation23_spill] sm:$0xff] }
 0x40c   : > { %v9811_v18 = vpop.eup %9810  ;;  %9828 = vrcp.f32 %v6351_v2  ;;  %v6354_v15 = vadd.f32 1.0, %v9809_v1  ;;  %v9221_v1 = vpop.f32.mrf.mxu0 }
 0x40d   : > { %v9813_v35 = vpop.eup %9812  ;;  %v6473_v0 = vadd.f32 %v6441_v63, %v14276_v24  ;;  %v6442_v11 = vmul.f32 %v9811_v18, %v13409_v49 }
 0x40e   : > { %v6353_v14 = vadd.f32 1.0, %v9813_v35  ;;  %9294 = vmatmul.mubr.msk.f32.gmra.mxu1 %vm603_vm1, %v6470_v60  ;;  %9830 = vrcp.f32 %v6354_v15  ;;  %v6649_v63 = vpop.f32.mrf.mxu0 }
 0x40f   : > { %v9815_v32 = vpop.eup %9814  ;;  %9296 = vmatprep.mubr.msk.f32.mxu1 %vm603_vm1, %v6471_v33  ;;  %v6474_v61 = vadd.f32 %v6442_v11, %v14279_v40 }
 0x410   : > { %v9817_v45 = vpop.eup %9816  ;;  %v6443_v23 = vmul.f32 %v9815_v32, %v13441_v53  ;;  %9832 = vrcp.f32 %v6353_v14  ;;  %v9224_v57 = vpop.f32.mrf.mxu0 }
 0x411   : > { %v9819_v9 = vpop.eup %9818  ;;  %v6356_v34 = vadd.f32 1.0, %v9817_v45  ;;  %v13590_v45 = vld [vmem:[%s13922_s17] ss:$0 sm:$0xff] }
 0x412   : > { %v9821_v29 = vpop.eup %9820  ;;  %9297 = vmatmul.mubr.msk.f32.gmra.mxu1 %vm603_vm1, %v6472_v16  ;;  %v6475_v39 = vadd.f32 %v6443_v23, %v14278_v4  ;;  %v6444_v5 = vmul.f32 %v9819_v9, %v13430_v22  ;;  %v13595_v16 = vld [vmem:[%s13923_s18] ss:$0 sm:$0xff] }
 0x413   : > { %v6355_v41 = vadd.f32 1.0, %v9821_v29  ;;  %9299 = vmatprep.mubr.msk.f32.mxu1 %vm603_vm1, %v6473_v0  ;;  %v9823_v37 = vpop.eup %9822  ;;  %9834 = vrcp.f32 %v6356_v34 }
 0x414   : > { %v6476_v47 = vadd.f32 %v6444_v5, %v14280_v20  ;;  %v6446_v44 = vmul.f32 %v9823_v37, %v13452_v27  ;;  %v14284_v27 = vld [vmem:[#allocation30_spill] sm:$0xff] }
 0x415   : > { %v9825_v49 = vpop.eup %9824  ;;  %9836 = vrcp.f32 %v6355_v41 }
 0x416   : > { %v6445_v53 = vmul.f32 %v9825_v49, %v13462_v36  ;;  %9300 = vmatmul.mubr.msk.f32.gmra.mxu1 %vm603_vm1, %v6474_v61  ;;  %v9827_v25 = vpop.eup %9826  ;;  %v14282_v36 = vld [vmem:[#allocation28_spill] sm:$0xff] }
 0x417   : > { %9302 = vmatprep.mubr.msk.f32.mxu1 %vm603_vm1, %v6475_v39  ;;  %v6478_v12 = vadd.f32 %v6446_v44, %v14282_v36  ;;  %v6448_v19 = vmul.f32 %v9827_v25, %v13465_v54 }
 0x418   : > { %v6477_v26 = vadd.f32 %v6445_v53, %v14281_v13 }
 0x419   : > { %v9829_v48 = vpop.eup %9828 }
 0x41a   : > { %v6447_v30 = vmul.f32 %v9829_v48, %v13475_v62  ;;  %9303 = vmatmul.mubr.msk.f32.gmra.mxu1 %vm603_vm1, %v6476_v47  ;;  %v6480_v62 = vadd.f32 %v6448_v19, %v14284_v27 }
 0x41b   : > { %9305 = vmatprep.mubr.msk.f32.mxu1 %vm603_vm1, %v6477_v26  ;;  %v9831_v22 = vpop.eup %9830 }
 0x41c   : > { %v6479_v50 = vadd.f32 %v6447_v30, %v14283_v43  ;;  %v6450_v58 = vmul.f32 %v9831_v22, %v13483_v38  ;;  %v14288_v38 = vld [vmem:[#allocation33_spill] sm:$0xff] }
 0x41d   : > { %v9833_v31 = vpop.eup %9832 }
 0x41e   : > { %v6449_v55 = vmul.f32 %v9833_v31, %v13494_v51  ;;  %9306 = vmatmul.mubr.msk.f32.gmra.mxu1 %vm603_vm1, %v6478_v12  ;;  %v6482_v51 = vadd.f32 %v6450_v58, %v14286_v59 }
 0x41f   : > { %9308 = vmatprep.mubr.msk.f32.mxu1 %vm603_vm1, %v6479_v50 }
 0x420   : > { %v6481_v56 = vadd.f32 %v6449_v55, %v14285_v8  ;;  %v9835_v52 = vpop.eup %9834 }
 0x421   : > { %v6452_v17 = vmul.f32 %v9835_v52, %v13506_v28 }
 0x422   : > { %v9837_v46 = vpop.eup %9836  ;;  %9309 = vmatmul.mubr.msk.f32.gmra.mxu1 %vm603_vm1, %v6480_v62 }
 0x423   : > { %v6451_v54 = vmul.f32 %v9837_v46, %v13515_v10  ;;  %9311 = vmatprep.mubr.msk.f32.mxu1 %vm603_vm1, %v6481_v56  ;;  %v6484_v2 = vadd.f32 %v6452_v17, %v14288_v38  ;;  %v6659_v10 = vpop.f32.mrf.mxu0 }
 0x425   : > { %v6483_v21 = vadd.f32 %v6451_v54, %v14287_v7  ;;  %v9227_v33 = vpop.f32.mrf.mxu0 }
 0x426   : > { %9312 = vmatmul.mubr.msk.f32.gmra.mxu1 %vm603_vm1, %v6482_v51 }
 0x427   : > { %9314 = vmatprep.mubr.msk.f32.mxu1 %vm603_vm1, %v6483_v21  ;;  %v6669_v18 = vpop.f32.mrf.mxu0 }
 0x429   : > { %v9230_v3 = vpop.f32.mrf.mxu0 }
 0x42a   : > { %9315 = vmatmul.mubr.msk.f32.gmra.mxu1 %vm603_vm1, %v6484_v2 }
 0x42b   : > { %v6679_v60 = vpop.f32.mrf.mxu0 }
 0x42d   : > { %v9233_v42 = vpop.f32.mrf.mxu0 }
 0x42f   : > { %v13575_v28 = vpop.f32.mrf.mxu0 }
 0x431   : > { %v13577_v15 = vpop.f32.mrf.mxu0 }
 0x433   : > { %v13579_v35 = vpop.f32.mrf.mxu0 }
 0x435   : > { %v13581_v14 = vpop.f32.mrf.mxu0 }
 0x437   : > { %v13583_v32 = vpop.f32.mrf.mxu0 }
 0x439   : > { %v13585_v24 = vpop.f32.mrf.mxu0 }
 0x43b   : > { %v13597_v23 = vpop.f32.mrf.mxu0 }
 0x43d   : > { %v13604_v37 = vpop.f32.mrf.mxu0 }
 0x43f   : > { %v13616_v26 = vpop.f32.mrf.mxu0 }
 0x441   : > { %v13628_v31 = vpop.f32.mrf.mxu0 }
 0x443   : > { %v13635_v52 = vpop.f32.mrf.mxu0 }
 0x445   : > { %v13642_v2 = vpop.f32.mrf.mxu0 }
 0x4aa   : > { %v9271_v0 = vpop.f32.mrf.mxu1 }
 0x4ab   : > { %v6976_v6 = vadd.f32 %v9271_v0, %v9221_v1 }
 0x4ac   : > { %v6970_v11 = vpop.f32.mrf.mxu1 }
 0x4ad   : > { %v7137_v9 = vmul.f32 %v13590_v45, %v6976_v6  ;;  %v6971_v34 = vadd.f32 %v6970_v11, %v6649_v63 }
 0x4af   : > { %v13601_v29 = vadd.f32 %v13595_v16, %v7137_v9  ;;  %v7136_v41 = vmul.f32 %v13590_v45, %v6971_v34  ;;  %v9274_v4 = vpop.f32.mrf.mxu1 }
 0x4b0   : > { %v6986_v39 = vadd.f32 %v9274_v4, %v9224_v57 }
 0x4b1   : > { %v8114_v40 = vmul.f32 -1.442695, %v13601_v29  ;;  %v13608_v61 = vadd.f32 %v13595_v16, %v7136_v41  ;;  %v6980_v5 = vpop.f32.mrf.mxu1  ;;  %v13656_v41 = vpop.f32.mrf.mxu0 }
 0x4b2   : > { %v7139_v49 = vmul.f32 %v13590_v45, %v6986_v39  ;;  %v6981_v53 = vadd.f32 %v6980_v5, %v6659_v10 }
 0x4b3   : > { %9838 = vpow2.f32 %v8114_v40  ;;  %v8113_v25 = vmul.f32 -1.442695, %v13608_v61  ;;  %v9277_v20 = vpop.f32.mrf.mxu1 }
 0x4b4   : > { %v13613_v47 = vadd.f32 %v13595_v16, %v7139_v49  ;;  %v7138_v44 = vmul.f32 %v13590_v45, %v6981_v53  ;;  %v6996_v13 = vadd.f32 %v9277_v20, %v9227_v33 }
 0x4b5   : > { %9840 = vpow2.f32 %v8113_v25  ;;  %v6990_v48 = vpop.f32.mrf.mxu1 }
 0x4b6   : > { %v8116_v30 = vmul.f32 -1.442695, %v13613_v47  ;;  %v13620_v22 = vadd.f32 %v13595_v16, %v7138_v44  ;;  %v7141_v36 = vmul.f32 %v13590_v45, %v6996_v13  ;;  %v6991_v12 = vadd.f32 %v6990_v48, %v6669_v18 }
 0x4b8   : > { %9842 = vpow2.f32 %v8116_v30  ;;  %v8115_v19 = vmul.f32 -1.442695, %v13620_v22  ;;  %v13625_v43 = vadd.f32 %v13595_v16, %v7141_v36  ;;  %v7140_v50 = vmul.f32 %v13590_v45, %v6991_v12  ;;  %v13670_v30 = vpop.f32.mrf.mxu0 }
 0x4ba   : > { %9844 = vpow2.f32 %v8115_v19  ;;  %v8118_v55 = vmul.f32 -1.442695, %v13625_v43  ;;  %v13632_v27 = vadd.f32 %v13595_v16, %v7140_v50  ;;  %v9280_v62 = vpop.f32.mrf.mxu1 }
 0x4bb   : > { %v7006_v58 = vadd.f32 %v9280_v62, %v9230_v3 }
 0x4bc   : > { %9846 = vpow2.f32 %v8118_v55  ;;  %v8117_v8 = vmul.f32 -1.442695, %v13632_v27  ;;  %v7000_v56 = vpop.f32.mrf.mxu1 }
 0x4bd   : > { %v7143_v46 = vmul.f32 %v13590_v45, %v7006_v58  ;;  %v7001_v54 = vadd.f32 %v7000_v56, %v6679_v60 }
 0x4be   : > { %9848 = vpow2.f32 %v8117_v8  ;;  %v9283_v59 = vpop.f32.mrf.mxu1 }
 0x4bf   : > { %v13639_v51 = vadd.f32 %v13595_v16, %v7143_v46  ;;  %v7142_v17 = vmul.f32 %v13590_v45, %v7001_v54  ;;  %v7016_v7 = vadd.f32 %v9283_v59, %v9233_v42  ;;  %v13684_v59 = vpop.f32.mrf.mxu0 }
 0x4c0   : > { %v9839_v21 = vpop.eup %9838  ;;  %v7010_v38 = vpop.f32.mrf.mxu1 }
 0x4c1   : > { %v7304_v1 = vadd.f32 1.0, %v9839_v21  ;;  %v8120_v63 = vmul.f32 -1.442695, %v13639_v51  ;;  %v13646_v57 = vadd.f32 %v13595_v16, %v7142_v17  ;;  %v7145_v10 = vmul.f32 %v13590_v45, %v7016_v7 }
 0x4c2   : > { %v9841_v33 = vpop.eup %9840  ;;  %v7011_v18 = vadd.f32 %v7010_v38, %v13575_v28  ;;  %v9286_v3 = vpop.f32.mrf.mxu1 }
 0x4c3   : > { %9850 = vrcp.f32 %v7304_v1  ;;  %v7303_v60 = vadd.f32 1.0, %v9841_v33  ;;  %v8119_v42 = vmul.f32 -1.442695, %v13646_v57  ;;  %v13652_v0 = vadd.f32 %v13595_v16, %v7145_v10 }
 0x4c4   : > { %9852 = vpow2.f32 %v8120_v63  ;;  %v7144_v6 = vmul.f32 %v13590_v45, %v7011_v18  ;;  %v7026_v11 = vadd.f32 %v9286_v3, %v13577_v15  ;;  %v7020_v9 = vpop.f32.mrf.mxu1 }
 0x4c5   : > { %v9843_v34 = vpop.eup %9842  ;;  %9854 = vrcp.f32 %v7303_v60  ;;  %v8122_v28 = vmul.f32 -1.442695, %v13652_v0  ;;  %v7021_v4 = vadd.f32 %v7020_v9, %v13579_v35  ;;  %v13705_v60 = vpop.f32.mrf.mxu0 }
 0x4c6   : > { %v7306_v39 = vadd.f32 1.0, %v9843_v34  ;;  %9856 = vpow2.f32 %v8119_v42  ;;  %v13661_v40 = vadd.f32 %v13595_v16, %v7144_v6  ;;  %v7147_v5 = vmul.f32 %v13590_v45, %v7026_v11  ;;  %v9289_v49 = vpop.f32.mrf.mxu1 }
 0x4c7   : > { %v9845_v53 = vpop.eup %9844  ;;  %9858 = vpow2.f32 %v8122_v28  ;;  %v7146_v15 = vmul.f32 %v13590_v45, %v7021_v4  ;;  %v7036_v25 = vadd.f32 %v9289_v49, %v13581_v14 }
 0x4c8   : > { %9860 = vrcp.f32 %v7306_v39  ;;  %v7305_v20 = vadd.f32 1.0, %v9845_v53  ;;  %v8121_v44 = vmul.f32 -1.442695, %v13661_v40  ;;  %v13668_v35 = vadd.f32 %v13595_v16, %v7147_v5  ;;  %v7030_v13 = vpop.f32.mrf.mxu1 }
 0x4c9   : > { %v9847_v48 = vpop.eup %9846  ;;  %v13673_v36 = vadd.f32 %v13595_v16, %v7146_v15  ;;  %v7149_v12 = vmul.f32 %v13590_v45, %v7036_v25  ;;  %v7031_v19 = vadd.f32 %v7030_v13, %v13583_v32  ;;  %v13723_v13 = vpop.f32.mrf.mxu0 }
 0x4ca   : > { %9862 = vrcp.f32 %v7305_v20  ;;  %v7308_v14 = vadd.f32 1.0, %v9847_v48  ;;  %v8124_v50 = vmul.f32 -1.442695, %v13668_v35  ;;  %v9292_v55 = vpop.f32.mrf.mxu1 }
 0x4cb   : > { %v9849_v62 = vpop.eup %9848  ;;  %9864 = vpow2.f32 %v8121_v44  ;;  %v8123_v58 = vmul.f32 -1.442695, %v13673_v36  ;;  %v13680_v8 = vadd.f32 %v13595_v16, %v7149_v12  ;;  %v7148_v56 = vmul.f32 %v13590_v45, %v7031_v19 }
 0x4cc   : > { %9866 = vrcp.f32 %v7308_v14  ;;  %v7307_v46 = vadd.f32 1.0, %v9849_v62  ;;  %v7046_v54 = vadd.f32 %v9292_v55, %v13585_v24  ;;  %v7040_v32 = vpop.f32.mrf.mxu1 }
 0x4cd   : > { %9868 = vpow2.f32 %v8124_v50  ;;  %v8126_v17 = vmul.f32 -1.442695, %v13680_v8  ;;  %v13688_v7 = vadd.f32 %v13595_v16, %v7148_v56  ;;  %v7041_v21 = vadd.f32 %v7040_v32, %v13597_v23 }
 0x4ce   : > { %9870 = vrcp.f32 %v7307_v46  ;;  %v7151_v38 = vmul.f32 %v13590_v45, %v7046_v54  ;;  %v9295_v1 = vpop.f32.mrf.mxu1 }
 0x4cf   : > { %9872 = vpow2.f32 %v8123_v58  ;;  %v8125_v63 = vmul.f32 -1.442695, %v13688_v7  ;;  %v7150_v24 = vmul.f32 %v13590_v45, %v7041_v21  ;;  %v7056_v10 = vadd.f32 %v9295_v1, %v13604_v37 }
 0x4d0   : > { %v9851_v33 = vpop.eup %9850  ;;  %9874 = vpow2.f32 %v8126_v17  ;;  %v13703_v23 = vadd.f32 %v13595_v16, %v7151_v38  ;;  %v7050_v18 = vpop.f32.mrf.mxu1 }
 0x4d1   : > { %v9853_v3 = vpop.eup %9852  ;;  %v7400_v42 = vmul.f32 %v9851_v33, %v13601_v29  ;;  %9876 = vpow2.f32 %v8125_v63  ;;  %v13709_v37 = vadd.f32 %v13595_v16, %v7150_v24  ;;  %v7153_v6 = vmul.f32 %v13590_v45, %v7056_v10  ;;  %v13743_v17 = vpop.f32.mrf.mxu0 }
 0x4d2   : > { %v9855_v11 = vpop.eup %9854  ;;  %v7310_v9 = vadd.f32 1.0, %v9853_v3  ;;  %v8128_v34 = vmul.f32 -1.442695, %v13703_v23  ;;  %v7051_v28 = vadd.f32 %v7050_v18, %v13616_v26  ;;  %v9298_v4 = vpop.f32.mrf.mxu1 }
 0x4d3   : > { %v9857_v39 = vpop.eup %9856  ;;  %7432 = vst.msk [vmem:[%s13700_s26 + $0x8] sm:$0xff] %vm740_vm0, %v7400_v42  ;;  %v7399_v5 = vmul.f32 %v9855_v11, %v13608_v61  ;;  %v13718_v29 = vadd.f32 %v13595_v16, %v7153_v6  ;;  %v7066_v49 = vadd.f32 %v9298_v4, %v13628_v31  ;;  %v8127_v25 = vmul.f32 -1.442695, %v13709_v37 }
 0x4d4   : > { %v9859_v53 = vpop.eup %9858  ;;  %9878 = vrcp.f32 %v7310_v9  ;;  %v7309_v15 = vadd.f32 1.0, %v9857_v39  ;;  %v7152_v20 = vmul.f32 %v13590_v45, %v7051_v28  ;;  %v7060_v44 = vpop.f32.mrf.mxu1 }
 0x4d5   : > { %v9861_v26 = vpop.eup %9860  ;;  %7431 = vst.msk [vmem:[%s13700_s26] sm:$0xff] %vm740_vm0, %v7399_v5  ;;  %v7312_v61 = vadd.f32 1.0, %v9859_v53  ;;  %9880 = vpow2.f32 %v8128_v34  ;;  %v8130_v48 = vmul.f32 -1.442695, %v13718_v29  ;;  %v7155_v31 = vmul.f32 %v13590_v45, %v7066_v49  ;;  %v6779_v28 = vpop.f32.mrf.mxu0 }
 0x4d6   : > { %v7402_v12 = vmul.f32 %v9861_v26, %v13613_v47  ;;  %9882 = vrcp.f32 %v7309_v15  ;;  %v13731_v19 = vadd.f32 %v13595_v16, %v7152_v20  ;;  %v7061_v14 = vadd.f32 %v7060_v44, %v13635_v52  ;;  %v9301_v50 = vpop.f32.mrf.mxu1 }
 0x4d7   : > { %v9863_v55 = vpop.eup %9862  ;;  %9884 = vrcp.f32 %v7312_v61  ;;  %v13735_v62 = vadd.f32 %v13595_v16, %v7155_v31  ;;  %v7076_v58 = vadd.f32 %v9301_v50, %v13642_v2 }
 0x4d8   : > { %v9865_v56 = vpop.eup %9864  ;;  %7434 = vst.msk [vmem:[%s13700_s26 + $0x18] sm:$0xff] %vm740_vm0, %v7402_v12  ;;  %v7401_v47 = vmul.f32 %v9863_v55, %v13620_v22  ;;  %9886 = vpow2.f32 %v8127_v25  ;;  %v8129_v46 = vmul.f32 -1.442695, %v13731_v19  ;;  %v7154_v54 = vmul.f32 %v13590_v45, %v7061_v14  ;;  %v7070_v52 = vpop.f32.mrf.mxu1 }
 0x4d9   : > { %v9867_v32 = vpop.eup %9866  ;;  %v7311_v21 = vadd.f32 1.0, %v9865_v56  ;;  %9888 = vpow2.f32 %v8130_v48  ;;  %v8132_v38 = vmul.f32 -1.442695, %v13735_v62  ;;  %v7157_v2 = vmul.f32 %v13590_v45, %v7076_v58  ;;  %v9263_v12 = vpop.f32.mrf.mxu0 }
 0x4da   : > { %v9869_v1 = vpop.eup %9868  ;;  %7433 = vst.msk [vmem:[%s13700_s26 + $0x10] sm:$0xff] %vm740_vm0, %v7401_v47  ;;  %v7404_v22 = vmul.f32 %v9867_v32, %v13625_v43  ;;  %9890 = vpow2.f32 %v8129_v46  ;;  %v13751_v63 = vadd.f32 %v13595_v16, %v7154_v54  ;;  %v7071_v24 = vadd.f32 %v7070_v52, %v13656_v41  ;;  %v9304_v10 = vpop.f32.mrf.mxu1 }
 0x4db   : > { %v9871_v33 = vpop.eup %9870  ;;  %9892 = vrcp.f32 %v7311_v21  ;;  %v7314_v18 = vadd.f32 1.0, %v9869_v1  ;;  %v13755_v3 = vadd.f32 %v13595_v16, %v7157_v2  ;;  %v7086_v42 = vadd.f32 %v9304_v10, %v13670_v30  ;;  %v6789_v1 = vpop.f32.mrf.mxu0 }
 0x4dc   : > { %v9873_v6 = vpop.eup %9872  ;;  %7436 = vst.msk [vmem:[%s13700_s26 + $0x28] sm:$0xff] %vm740_vm0, %v7404_v22  ;;  %v7403_v43 = vmul.f32 %v9871_v33, %v13632_v27  ;;  %9894 = vpow2.f32 %v8132_v38  ;;  %v8131_v11 = vmul.f32 -1.442695, %v13751_v63  ;;  %v7156_v41 = vmul.f32 %v13590_v45, %v7071_v24  ;;  %v7080_v9 = vpop.f32.mrf.mxu1 }
 0x4dd   : > { %v9875_v34 = vpop.eup %9874  ;;  %9896 = vrcp.f32 %v7314_v18  ;;  %v7313_v4 = vadd.f32 1.0, %v9873_v6  ;;  %v8134_v39 = vmul.f32 -1.442695, %v13755_v3  ;;  %v7159_v5 = vmul.f32 %v13590_v45, %v7086_v42 }
 0x4de   : > { %v9877_v30 = vpop.eup %9876  ;;  %7435 = vst.msk [vmem:[%s13700_s26 + $0x20] sm:$0xff] %vm740_vm0, %v7403_v43  ;;  %v7316_v49 = vadd.f32 1.0, %v9875_v34  ;;  %9898 = vpow2.f32 %v8131_v11  ;;  %v13768_v27 = vadd.f32 %v13595_v16, %v7156_v41  ;;  %v7081_v53 = vadd.f32 %v7080_v9, %v13684_v59  ;;  %v9307_v15 = vpop.f32.mrf.mxu1 }
 0x4df   : > { %9900 = vrcp.f32 %v7313_v4  ;;  %v7315_v25 = vadd.f32 1.0, %v9877_v30  ;;  %v13772_v20 = vadd.f32 %v13595_v16, %v7159_v5  ;;  %v7096_v44 = vadd.f32 %v9307_v15, %v13705_v60  ;;  %v9266_v5 = vpop.f32.mrf.mxu0 }
 0x4e0   : > { %9902 = vrcp.f32 %v7316_v49  ;;  %v8133_v26 = vmul.f32 -1.442695, %v13768_v27  ;;  %v7158_v61 = vmul.f32 %v13590_v45, %v7081_v53  ;;  %v7090_v48 = vpop.f32.mrf.mxu1 }
 0x4e1   : > { %v9879_v31 = vpop.eup %9878  ;;  %9904 = vrcp.f32 %v7315_v25  ;;  %v8136_v59 = vmul.f32 -1.442695, %v13772_v20  ;;  %v7161_v14 = vmul.f32 %v13590_v45, %v7096_v44  ;;  %v7091_v50 = vadd.f32 %v7090_v48, %v13723_v13 }
 0x4e2   : > { %v9881_v55 = vpop.eup %9880  ;;  %v7406_v58 = vmul.f32 %v9879_v31, %v13639_v51  ;;  %9906 = vpow2.f32 %v8134_v39  ;;  %v13782_v60 = vadd.f32 %v13595_v16, %v7158_v61  ;;  %v9310_v56 = vpop.f32.mrf.mxu1 }
 0x4e3   : > { %v9883_v47 = vpop.eup %9882  ;;  %v7318_v46 = vadd.f32 1.0, %v9881_v55  ;;  %9908 = vpow2.f32 %v8133_v26  ;;  %v13785_v54 = vadd.f32 %v13595_v16, %v7161_v14  ;;  %v7160_v52 = vmul.f32 %v13590_v45, %v7091_v50 }
 0x4e4   : > { %v9885_v32 = vpop.eup %9884  ;;  %7438 = vst.msk [vmem:[%s13700_s26 + $0x38] sm:$0xff] %vm740_vm0, %v7406_v58  ;;  %v7405_v13 = vmul.f32 %v9883_v47, %v13646_v57  ;;  %9910 = vpow2.f32 %v8136_v59  ;;  %v8135_v51 = vmul.f32 -1.442695, %v13782_v60  ;;  %v7106_v21 = vadd.f32 %v9310_v56, %v13743_v17  ;;  %v7100_v38 = vpop.f32.mrf.mxu1 }
 0x4e5   : > { %v9887_v2 = vpop.eup %9886  ;;  %v7408_v22 = vmul.f32 %v9885_v32, %v13652_v0  ;;  %9912 = vrcp.f32 %v7318_v46  ;;  %v8138_v24 = vmul.f32 -1.442695, %v13785_v54  ;;  %v13796_v10 = vadd.f32 %v13595_v16, %v7160_v52  ;;  %v6799_v47 = vpop.f32.mrf.mxu0 }
 0x4e6   : > { %v9889_v33 = vpop.eup %9888  ;;  %7437 = vst.msk [vmem:[%s13700_s26 + $0x30] sm:$0xff] %vm740_vm0, %v7405_v13  ;;  %v7317_v57 = vadd.f32 1.0, %v9887_v2  ;;  %9914 = vpow2.f32 %v8135_v51  ;;  %v7163_v18 = vmul.f32 %v13590_v45, %v7106_v21  ;;  %v7101_v17 = vadd.f32 %v7100_v38, %v6779_v28  ;;  %v9313_v42 = vpop.f32.mrf.mxu1 }
 0x4e7   : > { %v9891_v6 = vpop.eup %9890  ;;  %7440 = vst.msk [vmem:[%s13700_s26 + $0x48] sm:$0xff] %vm740_vm0, %v7408_v22  ;;  %v7320_v43 = vadd.f32 1.0, %v9889_v33  ;;  %9916 = vpow2.f32 %v8138_v24  ;;  %v8137_v0 = vmul.f32 -1.442695, %v13796_v10  ;;  %v7116_v11 = vadd.f32 %v9313_v42, %v9263_v12 }
 0x4e8   : > { %v9893_v41 = vpop.eup %9892  ;;  %9918 = vrcp.f32 %v7317_v57  ;;  %v7319_v9 = vadd.f32 1.0, %v9891_v6  ;;  %v13805_v34 = vadd.f32 %v13595_v16, %v7163_v18  ;;  %v7162_v4 = vmul.f32 %v13590_v45, %v7101_v17  ;;  %v7110_v39 = vpop.f32.mrf.mxu1 }
 0x4e9   : > { %v9895_v28 = vpop.eup %9894  ;;  %v7407_v30 = vmul.f32 %v9893_v41, %v13661_v40  ;;  %9920 = vrcp.f32 %v7320_v43  ;;  %v7165_v49 = vmul.f32 %v13590_v45, %v7116_v11  ;;  %v7111_v53 = vadd.f32 %v7110_v39, %v6789_v1 }
 0x4ea   : > { %v9897_v15 = vpop.eup %9896  ;;  %9922 = vrcp.f32 %v7319_v9  ;;  %v7322_v25 = vadd.f32 1.0, %v9895_v28  ;;  %v8140_v44 = vmul.f32 -1.442695, %v13805_v34  ;;  %v13812_v26 = vadd.f32 %v13595_v16, %v7162_v4  ;;  %v9316_v61 = vpop.f32.mrf.mxu1 }
 0x4eb   : > { %v9899_v48 = vpop.eup %9898  ;;  %7439 = vst.msk [vmem:[%s13700_s26 + $0x40] sm:$0xff] %vm740_vm0, %v7407_v30  ;;  %v7410_v31 = vmul.f32 %v9897_v15, %v13668_v35  ;;  %9924 = vpow2.f32 %v8137_v0  ;;  %v13818_v40 = vadd.f32 %v13595_v16, %v7165_v49  ;;  %v7164_v12 = vmul.f32 %v13590_v45, %v7111_v53 }
 0x4ec   : > { %v9901_v59 = vpop.eup %9900  ;;  %9926 = vrcp.f32 %v7322_v25  ;;  %v7321_v14 = vadd.f32 1.0, %v9899_v48  ;;  %v8139_v50 = vmul.f32 -1.442695, %v13812_v26  ;;  %v7126_v55 = vadd.f32 %v9316_v61, %v9266_v5  ;;  %v7120_v58 = vpop.f32.mrf.mxu1 }
 0x4ed   : > { %v9903_v56 = vpop.eup %9902  ;;  %7442 = vst.msk [vmem:[%s13700_s26 + $0x58] sm:$0xff] %vm740_vm0, %v7410_v31  ;;  %v7409_v35 = vmul.f32 %v9901_v59, %v13673_v36  ;;  %9928 = vpow2.f32 %v8140_v44  ;;  %v8142_v46 = vmul.f32 -1.442695, %v13818_v40  ;;  %v13827_v52 = vadd.f32 %v13595_v16, %v7164_v12 }
 0x4ee   : > { %v9905_v32 = vpop.eup %9904  ;;  %v7412_v13 = vmul.f32 %v9903_v56, %v13680_v8  ;;  %9930 = vrcp.f32 %v7321_v14  ;;  %v7167_v51 = vmul.f32 %v13590_v45, %v7126_v55  ;;  %v7121_v21 = vadd.f32 %v7120_v58, %v6799_v47 }
 0x4ef   : > { %v9907_v38 = vpop.eup %9906  ;;  %7441 = vst.msk [vmem:[%s13700_s26 + $0x50] sm:$0xff] %vm740_vm0, %v7409_v35  ;;  %v7411_v2 = vmul.f32 %v9905_v32, %v13688_v7  ;;  %9932 = vpow2.f32 %v8139_v50  ;;  %v8141_v36 = vmul.f32 -1.442695, %v13827_v52 }
 0x4f0   : > { %v9909_v1 = vpop.eup %9908  ;;  %7444 = vst.msk [vmem:[%s13700_s26 + $0x68] sm:$0xff] %vm740_vm0, %v7412_v13  ;;  %v7324_v22 = vadd.f32 1.0, %v9907_v38  ;;  %9934 = vpow2.f32 %v8142_v46  ;;  %v13838_v8 = vadd.f32 %v13595_v16, %v7167_v51  ;;  %v7166_v24 = vmul.f32 %v13590_v45, %v7121_v21 }
 0x4f1   : > { %v9911_v33 = vpop.eup %9910  ;;  %7443 = vst.msk [vmem:[%s13700_s26 + $0x60] sm:$0xff] %vm740_vm0, %v7411_v2  ;;  %v7323_v57 = vadd.f32 1.0, %v9909_v1  ;;  %9936 = vpow2.f32 %v8141_v36 }
 0x4f2   : > { %v9913_v7 = vpop.eup %9912  ;;  %9938 = vrcp.f32 %v7324_v22  ;;  %v7326_v18 = vadd.f32 1.0, %v9911_v33  ;;  %v8144_v17 = vmul.f32 -1.442695, %v13838_v8  ;;  %v13845_v42 = vadd.f32 %v13595_v16, %v7166_v24 }
 0x4f3   : > { %v9915_v6 = vpop.eup %9914  ;;  %v7414_v43 = vmul.f32 %v9913_v7, %v13703_v23  ;;  %9940 = vrcp.f32 %v7323_v57 }
 0x4f4   : > { %v9917_v45 = vpop.eup %9916  ;;  %9942 = vrcp.f32 %v7326_v18  ;;  %v7325_v0 = vadd.f32 1.0, %v9915_v6  ;;  %v8143_v11 = vmul.f32 -1.442695, %v13845_v42 }
 0x4f5   : > { %v9919_v41 = vpop.eup %9918  ;;  %7446 = vst.msk [vmem:[%s13700_s26 + $0x78] sm:$0xff] %vm740_vm0, %v7414_v43  ;;  %v7328_v9 = vadd.f32 1.0, %v9917_v45  ;;  %9944 = vpow2.f32 %v8144_v17 }
 0x4f6   : > { %v9921_v4 = vpop.eup %9920  ;;  %v7413_v16 = vmul.f32 %v9919_v41, %v13709_v37  ;;  %9946 = vrcp.f32 %v7325_v0 }
 0x4f7   : > { %v9923_v39 = vpop.eup %9922  ;;  %v7416_v23 = vmul.f32 %v9921_v4, %v13718_v29  ;;  %9948 = vrcp.f32 %v7328_v9 }
 0x4f8   : > { %v9925_v28 = vpop.eup %9924  ;;  %7445 = vst.msk [vmem:[%s13700_s26 + $0x70] sm:$0xff] %vm740_vm0, %v7413_v16  ;;  %v7415_v5 = vmul.f32 %v9923_v39, %v13731_v19  ;;  %9950 = vpow2.f32 %v8143_v11 }
 0x4f9   : > { %v9927_v30 = vpop.eup %9926  ;;  %7448 = vst.msk [vmem:[%s13700_s26 + $0x88] sm:$0xff] %vm740_vm0, %v7416_v23  ;;  %v7327_v49 = vadd.f32 1.0, %v9925_v28 }
 0x4fa   : > { %v9929_v53 = vpop.eup %9928  ;;  %7447 = vst.msk [vmem:[%s13700_s26 + $0x80] sm:$0xff] %vm740_vm0, %v7415_v5  ;;  %v7418_v37 = vmul.f32 %v9927_v30, %v13735_v62 }
 0x4fb   : > { %v9931_v15 = vpop.eup %9930  ;;  %9952 = vrcp.f32 %v7327_v49  ;;  %v7330_v29 = vadd.f32 1.0, %v9929_v53 }
 0x4fc   : > { %v9933_v25 = vpop.eup %9932  ;;  %7450 = vst.msk [vmem:[%s13700_s26 + $0x98] sm:$0xff] %vm740_vm0, %v7418_v37  ;;  %v7417_v44 = vmul.f32 %v9931_v15, %v13751_v63 }
 0x4fd   : > { %v9935_v19 = vpop.eup %9934  ;;  %9954 = vrcp.f32 %v7330_v29  ;;  %v7329_v61 = vadd.f32 1.0, %v9933_v25 }
 0x4fe   : > { %v9937_v48 = vpop.eup %9936  ;;  %7449 = vst.msk [vmem:[%s13700_s26 + $0x90] sm:$0xff] %vm740_vm0, %v7417_v44  ;;  %v7332_v31 = vadd.f32 1.0, %v9935_v19 }
 0x4ff   : > { %v9939_v12 = vpop.eup %9938  ;;  %9956 = vrcp.f32 %v7329_v61  ;;  %v7331_v62 = vadd.f32 1.0, %v9937_v48 }
 0x500   : > { %v9941_v59 = vpop.eup %9940  ;;  %v7420_v14 = vmul.f32 %v9939_v12, %v13755_v3  ;;  %9958 = vrcp.f32 %v7332_v31 }
 0x501   : > { %v9943_v50 = vpop.eup %9942  ;;  %v7419_v63 = vmul.f32 %v9941_v59, %v13768_v27  ;;  %9960 = vrcp.f32 %v7331_v62 }
 0x502   : > { %v9945_v55 = vpop.eup %9944  ;;  %7452 = vst.msk [vmem:[%s13700_s26 + $0xa8] sm:$0xff] %vm740_vm0, %v7420_v14  ;;  %v7422_v58 = vmul.f32 %v9943_v50, %v13772_v20 }
 0x503   : > { %v9947_v56 = vpop.eup %9946  ;;  %7451 = vst.msk [vmem:[%s13700_s26 + $0xa0] sm:$0xff] %vm740_vm0, %v7419_v63  ;;  %v7334_v47 = vadd.f32 1.0, %v9945_v55 }
 0x504   : > { %v9949_v35 = vpop.eup %9948  ;;  %7454 = vst.msk [vmem:[%s13700_s26 + $0xb8] sm:$0xff] %vm740_vm0, %v7422_v58  ;;  %v7421_v3 = vmul.f32 %v9947_v56, %v13782_v60 }
 0x505   : > { %v9951_v46 = vpop.eup %9950  ;;  %v7424_v27 = vmul.f32 %v9949_v35, %v13785_v54  ;;  %9962 = vrcp.f32 %v7334_v47 }
 0x506   : > { %7453 = vst.msk [vmem:[%s13700_s26 + $0xb0] sm:$0xff] %vm740_vm0, %v7421_v3  ;;  %v7333_v32 = vadd.f32 1.0, %v9951_v46 }
 0x507   : > { %7456 = vst.msk [vmem:[%s13700_s26 + $0xc8] sm:$0xff] %vm740_vm0, %v7424_v27 }
 0x508   : > { %v9953_v20 = vpop.eup %9952  ;;  %9964 = vrcp.f32 %v7333_v32 }
 0x509   : > { %v7423_v13 = vmul.f32 %v9953_v20, %v13796_v10 }
 0x50a   : > { %v9955_v51 = vpop.eup %9954 }
 0x50b   : > { %7455 = vst.msk [vmem:[%s13700_s26 + $0xc0] sm:$0xff] %vm740_vm0, %v7423_v13  ;;  %v7426_v60 = vmul.f32 %v9955_v51, %v13805_v34 }
 0x50c   : > { %v9957_v54 = vpop.eup %9956 }
 0x50d   : > { %v9959_v21 = vpop.eup %9958  ;;  %7458 = vst.msk [vmem:[%s13700_s26 + $0xd8] sm:$0xff] %vm740_vm0, %v7426_v60  ;;  %v7425_v38 = vmul.f32 %v9957_v54, %v13812_v26 }
 0x50e   : > { %v9961_v2 = vpop.eup %9960  ;;  %v7428_v36 = vmul.f32 %v9959_v21, %v13818_v40 }
 0x50f   : > { %7457 = vst.msk [vmem:[%s13700_s26 + $0xd0] sm:$0xff] %vm740_vm0, %v7425_v38  ;;  %v7427_v10 = vmul.f32 %v9961_v2, %v13827_v52 }
 0x510   : > { %7460 = vst.msk [vmem:[%s13700_s26 + $0xe8] sm:$0xff] %vm740_vm0, %v7428_v36 }
 0x511   : > { %7459 = vst.msk [vmem:[%s13700_s26 + $0xe0] sm:$0xff] %vm740_vm0, %v7427_v10 }
 0x512   : > { %v9963_v1 = vpop.eup %9962 }
 0x513   : > { %v7430_v34 = vmul.f32 %v9963_v1, %v13838_v8 }
 0x515   : > { %v9965_v22 = vpop.eup %9964  ;;  %7462 = vst.msk [vmem:[%s13700_s26 + $0xf8] sm:$0xff] %vm740_vm0, %v7430_v34 }
 0x516   : > { %v7429_v24 = vmul.f32 %v9965_v22, %v13845_v42 }
 0x518   : > { %7461 = vst.msk [vmem:[%s13700_s26 + $0xf0] sm:$0xff] %vm740_vm0, %v7429_v24 }
 0x519 PF: > { %s29_s0 = sadd.s32 1, %s10035_s0  }
 0x51a   : > { %p26_p4 = scmp.ge.s32.totalorder %s29_s0, 4  }
 0x51c   :  { %28 = sbr.rel (!%p26_p4) target bundleno = 5 (0x5), region = 126 }

</bundles_post_ra>
